<compile_context>
chip_gen: v6e
topology: v6e:2x2x1
jax: 0.10.0
libtpu: 0.0.40
codegen_flags: <defaults>
</compile_context>

<pallas_src>
import functools
import math

import jax
import jax.numpy as jnp
from jax.experimental import pallas as pl
from jax.experimental.pallas import tpu as pltpu


# ------------------------------ fused kernel ------------------------------- #

def _vit_forward_kernel(
    # inputs (whole arrays, VMEM resident)
    patches_ref,            # (M, C*P*P)        f32   M = B * num_patches
    patch_w_ref,            # (C*P*P, E)        bf16
    patch_b_ref,            # (1, E)            f32
    head_proj_ref,          # (E, E)            f32   block-diag head segment-sum
    wq_ref, wk_ref, wv_ref, wo_ref,   # (L, E, E) bf16
    w1_ref,                 # (L, E, F)         bf16
    w2_ref,                 # (L, F, E)         bf16
    bq_ref, bk_ref, bv_ref, bo_ref,   # (L, 1, E) f32
    b1_ref,                 # (L, 1, F)         f32
    b2_ref,                 # (L, 1, E)         f32
    g1_ref, beta1_ref, g2_ref, beta2_ref,   # (L, 1, E) f32
    cls_w_ref,              # (E, num_classes)  bf16
    cls_b_ref,              # (1, num_classes)  f32
    # output
    out_ref,                # (M, num_classes)  f32
    *, num_layers, seq_len, tokens, eps):
  """Whole ViT forward (patch-embed -> L encoder layers -> classifier).

  All activations and residuals stay in VMEM/vregs; the only HBM traffic is
  the one-time DMA of inputs/weights and the final logits store.
  """
  S, Nb = seq_len, tokens

  def mm(x, w_bf16):
    # bf16 operands on the MXU with f32 accumulation (v6e/v7x recipe); all
    # epilogues below run in f32, which keeps v5e's VPU/EUP on its native path.
    return jnp.dot(x.astype(jnp.bfloat16), w_bf16,
                   preferred_element_type=jnp.float32)

  def layer_norm(x, g, b):
    mean = jnp.mean(x, axis=-1, keepdims=True)
    cen = x - mean
    var = jnp.mean(cen * cen, axis=-1, keepdims=True)
    return cen * jax.lax.rsqrt(var + eps) * g + b

  head_proj = head_proj_ref[...]

  def attention(q, k, v):
    # q, k, v: (S*Nb, E) f32.  batch_first=False semantics: seq position i
    # owns the Nb contiguous rows [i*Nb, (i+1)*Nb).  Heads are folded into the
    # lane axis: (q_i * k_j) @ head_proj yields every head's dot product
    # replicated across that head's Dh lanes, so softmax and the value
    # weighting are lane-dense (width E) elementwise ops — no batched einsums
    # over tiny operands, no transposes.  The 1/sqrt(Dh) scale is already
    # folded into the Q projection weights.
    ctx_blocks = []
    for i in range(S):
      qi = q[i * Nb:(i + 1) * Nb, :]
      scores = [
          jnp.dot(qi * k[j * Nb:(j + 1) * Nb, :], head_proj,
                  preferred_element_type=jnp.float32)
          for j in range(S)
      ]
      m = scores[0]
      for s in scores[1:]:
        m = jnp.maximum(m, s)
      probs = [jnp.exp(s - m) for s in scores]
      denom = probs[0]
      for p in probs[1:]:
        denom = denom + p
      inv = pl.reciprocal(denom, approx=True)            # EUP slot, f32
      ctx = None
      for j in range(S):
        contrib = (probs[j] * inv) * v[j * Nb:(j + 1) * Nb, :]
        ctx = contrib if ctx is None else ctx + contrib
      ctx_blocks.append(ctx)
    return jnp.concatenate(ctx_blocks, axis=0)            # (S*Nb, E)

  # Patch embedding: Conv2d(kernel=stride=P) as a single matmul + bias.
  x = mm(patches_ref[...], patch_w_ref[...]) + patch_b_ref[...]

  for l in range(num_layers):                 # static unroll (L is small)
    q = mm(x, wq_ref[l]) + bq_ref[l]
    k = mm(x, wk_ref[l]) + bk_ref[l]
    v = mm(x, wv_ref[l]) + bv_ref[l]
    attn_out = mm(attention(q, k, v), wo_ref[l]) + bo_ref[l]
    h1 = layer_norm(x + attn_out, g1_ref[l], beta1_ref[l])      # post-norm
    ff = jnp.maximum(mm(h1, w1_ref[l]) + b1_ref[l], 0.0)        # fused ReLU
    ff = mm(ff, w2_ref[l]) + b2_ref[l]
    x = layer_norm(h1 + ff, g2_ref[l], beta2_ref[l])

  # Classifier over every token row (extra rows cost ~10 KFLOP); the wrapper
  # picks the CLS rows (token 0 of each image) — avoids in-kernel row gathers.
  out_ref[...] = mm(x, cls_w_ref[...]) + cls_b_ref[...]


# --------------------------------- wrapper ---------------------------------- #

def vision_transformer_forward(x, params, *, patch_size, num_heads):
  """NCHW image batch -> (B, num_classes) logits (eval-mode ViT forward)."""
  del num_heads  # head structure is baked into params["head_proj"]
  B, C, H, W = x.shape
  P = patch_size
  nh, nw = H // P, W // P
  Nb = nh * nw                        # tokens per image
  M = B * Nb
  E = params["patch_b"].shape[-1]
  F = params["b1"].shape[-1]
  L = params["wq"].shape[0]
  num_classes = params["cls_b"].shape[-1]

  # im2col for the stride==kernel conv: (c, ph, pw) order matches the
  # flattened Conv2d weight.  ~8 KiB at these shapes.
  # TODO(synk): stream patch rows via a BlockSpec index_map for large images.
  patches = x.reshape(B, C, nh, P, nw, P).transpose(0, 2, 4, 1, 3, 5)
  patches = patches.reshape(M, C * P * P)

  args = (
      patches, params["patch_w"], params["patch_b"], params["head_proj"],
      params["wq"], params["wk"], params["wv"], params["wo"],
      params["w1"], params["w2"],
      params["bq"], params["bk"], params["bv"], params["bo"],
      params["b1"], params["b2"],
      params["g1"], params["beta1"], params["g2"], params["beta2"],
      params["cls_w"], params["cls_b"],
  )

  def full_block(a):
    nd = a.ndim
    return pl.BlockSpec(tuple(a.shape), lambda i: (0,) * nd)

  Kp = C * P * P
  flops = (2 * M * Kp * E
           + L * (8 * M * E * E + 4 * M * E * F + 2 * B * B * Nb * E * E)
           + 2 * M * E * num_classes)
  transcendentals = L * (B * B * Nb * E + B * Nb * E + 2 * M)
  bytes_accessed = int(sum(a.size * a.dtype.itemsize for a in args)
                       + M * num_classes * 4)

  kernel = functools.partial(_vit_forward_kernel,
                             num_layers=L, seq_len=B, tokens=Nb, eps=1e-5)

  logits_all = pl.pallas_call(
      kernel,
      out_shape=jax.ShapeDtypeStruct((M, num_classes), jnp.float32),
      grid=(1,),
      in_specs=[full_block(a) for a in args],
      out_specs=pl.BlockSpec((M, num_classes), lambda i: (0, 0)),
      compiler_params=pltpu.CompilerParams(
          dimension_semantics=("arbitrary",),
          vmem_limit_bytes=32 * 1024 * 1024),
      cost_estimate=pl.CostEstimate(flops=int(flops),
                                    transcendentals=int(transcendentals),
                                    bytes_accessed=bytes_accessed),
  )(*args)

  # CLS token = token 0 of each image (flat row b * Nb).
  return logits_all.reshape(B, Nb, num_classes)[:, 0, :]


# ------------------------- deterministic parameters ------------------------- #

def init_params(key, *, patch_size, in_channels, embed_dim, num_heads,
                num_layers, num_classes, dim_feedforward=2048):
  assert embed_dim % num_heads == 0
  head_dim = embed_dim // num_heads
  scale = 1.0 / math.sqrt(head_dim)
  flatten_size = patch_size * patch_size * in_channels
  keys = jax.random.split(key, 2 + num_layers)

  def w(k, shape, s=0.02):
    return s * jax.random.normal(k, shape, dtype=jnp.float32)

  params = {}
  conv_w = w(keys[0], (embed_dim, in_channels, patch_size, patch_size))
  params["patch_w"] = conv_w.reshape(embed_dim, flatten_size).T.astype(jnp.bfloat16)
  params["patch_b"] = jnp.zeros((1, embed_dim), jnp.float32)

  # Block-diagonal per-head segment-sum matrix: head_proj[e1, e2] == 1 iff
  # e1 and e2 belong to the same attention head.
  head_of = jnp.arange(embed_dim) // head_dim
  params["head_proj"] = (head_of[:, None] == head_of[None, :]).astype(jnp.float32)

  wq, wk, wv, wo, w1, w2 = [], [], [], [], [], []
  for l in range(num_layers):
    lk = jax.random.split(keys[1 + l], 6)
    # 1/sqrt(head_dim) attention scale folded into the Q projection
    # (the Q bias is zero, so the fold is exact).
    wq.append(w(lk[0], (embed_dim, embed_dim)) * scale)
    wk.append(w(lk[1], (embed_dim, embed_dim)))
    wv.append(w(lk[2], (embed_dim, embed_dim)))
    wo.append(w(lk[3], (embed_dim, embed_dim)))
    w1.append(w(lk[4], (embed_dim, dim_feedforward)))
    w2.append(w(lk[5], (dim_feedforward, embed_dim)))

  def stack_bf16(ws):
    return jnp.stack(ws, axis=0).astype(jnp.bfloat16)

  params["wq"], params["wk"] = stack_bf16(wq), stack_bf16(wk)
  params["wv"], params["wo"] = stack_bf16(wv), stack_bf16(wo)
  params["w1"], params["w2"] = stack_bf16(w1), stack_bf16(w2)

  zeros_e = jnp.zeros((num_layers, 1, embed_dim), jnp.float32)
  params["bq"] = zeros_e              # scale * 0 == 0 (folded scale is exact)
  params["bk"] = zeros_e
  params["bv"] = zeros_e
  params["bo"] = zeros_e
  params["b1"] = jnp.zeros((num_layers, 1, dim_feedforward), jnp.float32)
  params["b2"] = zeros_e
  params["g1"] = jnp.ones((num_layers, 1, embed_dim), jnp.float32)
  params["beta1"] = zeros_e
  params["g2"] = jnp.ones((num_layers, 1, embed_dim), jnp.float32)
  params["beta2"] = zeros_e

  params["cls_w"] = w(keys[1 + num_layers],
                      (embed_dim, num_classes)).astype(jnp.bfloat16)
  params["cls_b"] = jnp.zeros((1, num_classes), jnp.float32)
  return params


# ----------------------------------- main ----------------------------------- #

if __name__ == "__main__":
  image_size = (16, 16)
  patch_size = 4
  in_channels = 4
  embed_dim = 32
  num_heads = 4
  num_layers = 2
  num_classes = 10
  batch = 2

  key = jax.random.PRNGKey(0)
  pkey, xkey = jax.random.split(key)
  params = init_params(
      pkey, patch_size=patch_size, in_channels=in_channels,
      embed_dim=embed_dim, num_heads=num_heads, num_layers=num_layers,
      num_classes=num_classes)
  x = jax.random.normal(
      xkey, (batch, in_channels, image_size[0], image_size[1]), jnp.float32)

  fwd = jax.jit(functools.partial(
      vision_transformer_forward, patch_size=patch_size, num_heads=num_heads))
  out = fwd(x, params)
  jax.block_until_ready(out)
  assert out.shape == (batch, num_classes)
  assert out.dtype == jnp.float32
  print("KERNEL_OK")
</pallas_src>

<mosaic_0001>
module attributes {stable_mosaic.version = 11 : i64} {
  func.func @_vit_forward_kernel(%arg0: i32, %arg1: memref<32x64xf32, #tpu.memory_space<vmem>>, %arg2: memref<64x32xbf16, #tpu.memory_space<vmem>>, %arg3: memref<1x32xf32, #tpu.memory_space<vmem>>, %arg4: memref<32x32xf32, #tpu.memory_space<vmem>>, %arg5: memref<2x32x32xbf16, #tpu.memory_space<vmem>>, %arg6: memref<2x32x32xbf16, #tpu.memory_space<vmem>>, %arg7: memref<2x32x32xbf16, #tpu.memory_space<vmem>>, %arg8: memref<2x32x32xbf16, #tpu.memory_space<vmem>>, %arg9: memref<2x32x2048xbf16, #tpu.memory_space<vmem>>, %arg10: memref<2x2048x32xbf16, #tpu.memory_space<vmem>>, %arg11: memref<2x1x32xf32, #tpu.memory_space<vmem>>, %arg12: memref<2x1x32xf32, #tpu.memory_space<vmem>>, %arg13: memref<2x1x32xf32, #tpu.memory_space<vmem>>, %arg14: memref<2x1x32xf32, #tpu.memory_space<vmem>>, %arg15: memref<2x1x2048xf32, #tpu.memory_space<vmem>>, %arg16: memref<2x1x32xf32, #tpu.memory_space<vmem>>, %arg17: memref<2x1x32xf32, #tpu.memory_space<vmem>>, %arg18: memref<2x1x32xf32, #tpu.memory_space<vmem>>, %arg19: memref<2x1x32xf32, #tpu.memory_space<vmem>>, %arg20: memref<2x1x32xf32, #tpu.memory_space<vmem>>, %arg21: memref<32x10xbf16, #tpu.memory_space<vmem>>, %arg22: memref<1x10xf32, #tpu.memory_space<vmem>>, %arg23: memref<32x10xf32, #tpu.memory_space<vmem>>) attributes {dimension_semantics = [#tpu.dimension_semantics<arbitrary>], iteration_bounds = array<i64: 1>, scalar_prefetch = 0 : i64, scratch_operands = 0 : i64, tpu.core_type = #tpu.core_type<tc>, window_params = [{pipeline_mode = #tpu.pipeline_mode<synchronous>, transform_indices = @transform_0, window_bounds = array<i64: 32, 64>}, {pipeline_mode = #tpu.pipeline_mode<synchronous>, transform_indices = @transform_1, window_bounds = array<i64: 64, 32>}, {pipeline_mode = #tpu.pipeline_mode<synchronous>, transform_indices = @transform_2, window_bounds = array<i64: 1, 32>}, {pipeline_mode = #tpu.pipeline_mode<synchronous>, transform_indices = @transform_3, window_bounds = array<i64: 32, 32>}, {pipeline_mode = #tpu.pipeline_mode<synchronous>, transform_indices = @transform_4, window_bounds = array<i64: 2, 32, 32>}, {pipeline_mode = #tpu.pipeline_mode<synchronous>, transform_indices = @transform_5, window_bounds = array<i64: 2, 32, 32>}, {pipeline_mode = #tpu.pipeline_mode<synchronous>, transform_indices = @transform_6, window_bounds = array<i64: 2, 32, 32>}, {pipeline_mode = #tpu.pipeline_mode<synchronous>, transform_indices = @transform_7, window_bounds = array<i64: 2, 32, 32>}, {pipeline_mode = #tpu.pipeline_mode<synchronous>, transform_indices = @transform_8, window_bounds = array<i64: 2, 32, 2048>}, {pipeline_mode = #tpu.pipeline_mode<synchronous>, transform_indices = @transform_9, window_bounds = array<i64: 2, 2048, 32>}, {pipeline_mode = #tpu.pipeline_mode<synchronous>, transform_indices = @transform_10, window_bounds = array<i64: 2, 1, 32>}, {pipeline_mode = #tpu.pipeline_mode<synchronous>, transform_indices = @transform_11, window_bounds = array<i64: 2, 1, 32>}, {pipeline_mode = #tpu.pipeline_mode<synchronous>, transform_indices = @transform_12, window_bounds = array<i64: 2, 1, 32>}, {pipeline_mode = #tpu.pipeline_mode<synchronous>, transform_indices = @transform_13, window_bounds = array<i64: 2, 1, 32>}, {pipeline_mode = #tpu.pipeline_mode<synchronous>, transform_indices = @transform_14, window_bounds = array<i64: 2, 1, 2048>}, {pipeline_mode = #tpu.pipeline_mode<synchronous>, transform_indices = @transform_15, window_bounds = array<i64: 2, 1, 32>}, {pipeline_mode = #tpu.pipeline_mode<synchronous>, transform_indices = @transform_16, window_bounds = array<i64: 2, 1, 32>}, {pipeline_mode = #tpu.pipeline_mode<synchronous>, transform_indices = @transform_17, window_bounds = array<i64: 2, 1, 32>}, {pipeline_mode = #tpu.pipeline_mode<synchronous>, transform_indices = @transform_18, window_bounds = array<i64: 2, 1, 32>}, {pipeline_mode = #tpu.pipeline_mode<synchronous>, transform_indices = @transform_19, window_bounds = array<i64: 2, 1, 32>}, {pipeline_mode = #tpu.pipeline_mode<synchronous>, transform_indices = @transform_20, window_bounds = array<i64: 32, 10>}, {pipeline_mode = #tpu.pipeline_mode<synchronous>, transform_indices = @transform_21, window_bounds = array<i64: 1, 10>}, {pipeline_mode = #tpu.pipeline_mode<synchronous>, transform_indices = @transform_22, window_bounds = array<i64: 32, 10>}]} {
    %c0 = arith.constant 0 : index
    %c0_0 = arith.constant 0 : index
    %0 = vector.load %arg4[%c0, %c0_0] : memref<32x32xf32, #tpu.memory_space<vmem>>, vector<32x32xf32>
    %c0_1 = arith.constant 0 : index
    %c0_2 = arith.constant 0 : index
    %1 = vector.load %arg1[%c0_1, %c0_2] : memref<32x64xf32, #tpu.memory_space<vmem>>, vector<32x64xf32>
    %c0_3 = arith.constant 0 : index
    %c0_4 = arith.constant 0 : index
    %2 = vector.load %arg2[%c0_3, %c0_4] : memref<64x32xbf16, #tpu.memory_space<vmem>>, vector<64x32xbf16>
    %3 = arith.truncf %1 : vector<32x64xf32> to vector<32x64xbf16>
    %cst = arith.constant dense<0.000000e+00> : vector<32x32xf32>
    %4 = tpu.matmul %3, %2, %cst {dimension_numbers = #tpu.dot_dimension_numbers<[1], [0], [0], [1], [0, 0, 1, 1], [], []>} : vector<32x64xbf16>, vector<64x32xbf16>, vector<32x32xf32> -> vector<32x32xf32>
    %c0_5 = arith.constant 0 : index
    %c0_6 = arith.constant 0 : index
    %5 = vector.load %arg3[%c0_5, %c0_6] : memref<1x32xf32, #tpu.memory_space<vmem>>, vector<1x32xf32>
    %6 = vector.broadcast %5 : vector<1x32xf32> to vector<32x32xf32>
    %7 = arith.addf %4, %6 : vector<32x32xf32>
    %c0_7 = arith.constant 0 : index
    %c0_8 = arith.constant 0 : index
    %c0_9 = arith.constant 0 : index
    %8 = vector.load %arg5[%c0_7, %c0_8, %c0_9] : memref<2x32x32xbf16, #tpu.memory_space<vmem>>, vector<1x32x32xbf16>
    %9 = vector.shape_cast %8 : vector<1x32x32xbf16> to vector<32x32xbf16>
    %10 = arith.truncf %7 : vector<32x32xf32> to vector<32x32xbf16>
    %cst_10 = arith.constant dense<0.000000e+00> : vector<32x32xf32>
    %11 = tpu.matmul %10, %9, %cst_10 {dimension_numbers = #tpu.dot_dimension_numbers<[1], [0], [0], [1], [0, 0, 1, 1], [], []>} : vector<32x32xbf16>, vector<32x32xbf16>, vector<32x32xf32> -> vector<32x32xf32>
    %c0_11 = arith.constant 0 : index
    %c0_12 = arith.constant 0 : index
    %c0_13 = arith.constant 0 : index
    %12 = vector.load %arg11[%c0_11, %c0_12, %c0_13] : memref<2x1x32xf32, #tpu.memory_space<vmem>>, vector<1x1x32xf32>
    %13 = vector.shape_cast %12 : vector<1x1x32xf32> to vector<1x32xf32>
    %14 = vector.broadcast %13 : vector<1x32xf32> to vector<32x32xf32>
    %15 = arith.addf %11, %14 : vector<32x32xf32>
    %c0_14 = arith.constant 0 : index
    %c0_15 = arith.constant 0 : index
    %c0_16 = arith.constant 0 : index
    %16 = vector.load %arg6[%c0_14, %c0_15, %c0_16] : memref<2x32x32xbf16, #tpu.memory_space<vmem>>, vector<1x32x32xbf16>
    %17 = vector.shape_cast %16 : vector<1x32x32xbf16> to vector<32x32xbf16>
    %18 = arith.truncf %7 : vector<32x32xf32> to vector<32x32xbf16>
    %cst_17 = arith.constant dense<0.000000e+00> : vector<32x32xf32>
    %19 = tpu.matmul %18, %17, %cst_17 {dimension_numbers = #tpu.dot_dimension_numbers<[1], [0], [0], [1], [0, 0, 1, 1], [], []>} : vector<32x32xbf16>, vector<32x32xbf16>, vector<32x32xf32> -> vector<32x32xf32>
    %c0_18 = arith.constant 0 : index
    %c0_19 = arith.constant 0 : index
    %c0_20 = arith.constant 0 : index
    %20 = vector.load %arg12[%c0_18, %c0_19, %c0_20] : memref<2x1x32xf32, #tpu.memory_space<vmem>>, vector<1x1x32xf32>
    %21 = vector.shape_cast %20 : vector<1x1x32xf32> to vector<1x32xf32>
    %22 = vector.broadcast %21 : vector<1x32xf32> to vector<32x32xf32>
    %23 = arith.addf %19, %22 : vector<32x32xf32>
    %c0_21 = arith.constant 0 : index
    %c0_22 = arith.constant 0 : index
    %c0_23 = arith.constant 0 : index
    %24 = vector.load %arg7[%c0_21, %c0_22, %c0_23] : memref<2x32x32xbf16, #tpu.memory_space<vmem>>, vector<1x32x32xbf16>
    %25 = vector.shape_cast %24 : vector<1x32x32xbf16> to vector<32x32xbf16>
    %26 = arith.truncf %7 : vector<32x32xf32> to vector<32x32xbf16>
    %cst_24 = arith.constant dense<0.000000e+00> : vector<32x32xf32>
    %27 = tpu.matmul %26, %25, %cst_24 {dimension_numbers = #tpu.dot_dimension_numbers<[1], [0], [0], [1], [0, 0, 1, 1], [], []>} : vector<32x32xbf16>, vector<32x32xbf16>, vector<32x32xf32> -> vector<32x32xf32>
    %c0_25 = arith.constant 0 : index
    %c0_26 = arith.constant 0 : index
    %c0_27 = arith.constant 0 : index
    %28 = vector.load %arg13[%c0_25, %c0_26, %c0_27] : memref<2x1x32xf32, #tpu.memory_space<vmem>>, vector<1x1x32xf32>
    %29 = vector.shape_cast %28 : vector<1x1x32xf32> to vector<1x32xf32>
    %30 = vector.broadcast %29 : vector<1x32xf32> to vector<32x32xf32>
    %31 = arith.addf %27, %30 : vector<32x32xf32>
    %32 = vector.extract_strided_slice %15 {offsets = [0, 0], sizes = [16, 32], strides = [1, 1]} : vector<32x32xf32> to vector<16x32xf32>
    %33 = vector.extract_strided_slice %23 {offsets = [0, 0], sizes = [16, 32], strides = [1, 1]} : vector<32x32xf32> to vector<16x32xf32>
    %34 = arith.mulf %32, %33 : vector<16x32xf32>
    %cst_28 = arith.constant dense<0.000000e+00> : vector<16x32xf32>
    %35 = tpu.matmul %34, %0, %cst_28 {dimension_numbers = #tpu.dot_dimension_numbers<[1], [0], [0], [1], [0, 0, 1, 1], [], []>} : vector<16x32xf32>, vector<32x32xf32>, vector<16x32xf32> -> vector<16x32xf32>
    %36 = vector.extract_strided_slice %23 {offsets = [16, 0], sizes = [16, 32], strides = [1, 1]} : vector<32x32xf32> to vector<16x32xf32>
    %37 = arith.mulf %32, %36 : vector<16x32xf32>
    %cst_29 = arith.constant dense<0.000000e+00> : vector<16x32xf32>
    %38 = tpu.matmul %37, %0, %cst_29 {dimension_numbers = #tpu.dot_dimension_numbers<[1], [0], [0], [1], [0, 0, 1, 1], [], []>} : vector<16x32xf32>, vector<32x32xf32>, vector<16x32xf32> -> vector<16x32xf32>
    %39 = arith.maximumf %35, %38 : vector<16x32xf32>
    %40 = arith.subf %35, %39 : vector<16x32xf32>
    %41 = math.exp %40 : vector<16x32xf32>
    %42 = arith.subf %38, %39 : vector<16x32xf32>
    %43 = math.exp %42 : vector<16x32xf32>
    %44 = arith.addf %41, %43 : vector<16x32xf32>
    %45 = tpu.reciprocal %44 {approx = true} : vector<16x32xf32> -> vector<16x32xf32>
    %46 = arith.mulf %41, %45 : vector<16x32xf32>
    %47 = vector.extract_strided_slice %31 {offsets = [0, 0], sizes = [16, 32], strides = [1, 1]} : vector<32x32xf32> to vector<16x32xf32>
    %48 = arith.mulf %46, %47 : vector<16x32xf32>
    %49 = arith.mulf %43, %45 : vector<16x32xf32>
    %50 = vector.extract_strided_slice %31 {offsets = [16, 0], sizes = [16, 32], strides = [1, 1]} : vector<32x32xf32> to vector<16x32xf32>
    %51 = arith.mulf %49, %50 : vector<16x32xf32>
    %52 = arith.addf %48, %51 : vector<16x32xf32>
    %53 = vector.extract_strided_slice %15 {offsets = [16, 0], sizes = [16, 32], strides = [1, 1]} : vector<32x32xf32> to vector<16x32xf32>
    %54 = vector.extract_strided_slice %23 {offsets = [0, 0], sizes = [16, 32], strides = [1, 1]} : vector<32x32xf32> to vector<16x32xf32>
    %55 = arith.mulf %53, %54 : vector<16x32xf32>
    %cst_30 = arith.constant dense<0.000000e+00> : vector<16x32xf32>
    %56 = tpu.matmul %55, %0, %cst_30 {dimension_numbers = #tpu.dot_dimension_numbers<[1], [0], [0], [1], [0, 0, 1, 1], [], []>} : vector<16x32xf32>, vector<32x32xf32>, vector<16x32xf32> -> vector<16x32xf32>
    %57 = vector.extract_strided_slice %23 {offsets = [16, 0], sizes = [16, 32], strides = [1, 1]} : vector<32x32xf32> to vector<16x32xf32>
    %58 = arith.mulf %53, %57 : vector<16x32xf32>
    %cst_31 = arith.constant dense<0.000000e+00> : vector<16x32xf32>
    %59 = tpu.matmul %58, %0, %cst_31 {dimension_numbers = #tpu.dot_dimension_numbers<[1], [0], [0], [1], [0, 0, 1, 1], [], []>} : vector<16x32xf32>, vector<32x32xf32>, vector<16x32xf32> -> vector<16x32xf32>
    %60 = arith.maximumf %56, %59 : vector<16x32xf32>
    %61 = arith.subf %56, %60 : vector<16x32xf32>
    %62 = math.exp %61 : vector<16x32xf32>
    %63 = arith.subf %59, %60 : vector<16x32xf32>
    %64 = math.exp %63 : vector<16x32xf32>
    %65 = arith.addf %62, %64 : vector<16x32xf32>
    %66 = tpu.reciprocal %65 {approx = true} : vector<16x32xf32> -> vector<16x32xf32>
    %67 = arith.mulf %62, %66 : vector<16x32xf32>
    %68 = vector.extract_strided_slice %31 {offsets = [0, 0], sizes = [16, 32], strides = [1, 1]} : vector<32x32xf32> to vector<16x32xf32>
    %69 = arith.mulf %67, %68 : vector<16x32xf32>
    %70 = arith.mulf %64, %66 : vector<16x32xf32>
    %71 = vector.extract_strided_slice %31 {offsets = [16, 0], sizes = [16, 32], strides = [1, 1]} : vector<32x32xf32> to vector<16x32xf32>
    %72 = arith.mulf %70, %71 : vector<16x32xf32>
    %73 = arith.addf %69, %72 : vector<16x32xf32>
    %74 = tpu.concatenate %52, %73 in 0 : vector<16x32xf32>, vector<16x32xf32> -> vector<32x32xf32>
    %c0_32 = arith.constant 0 : index
    %c0_33 = arith.constant 0 : index
    %c0_34 = arith.constant 0 : index
    %75 = vector.load %arg8[%c0_32, %c0_33, %c0_34] : memref<2x32x32xbf16, #tpu.memory_space<vmem>>, vector<1x32x32xbf16>
    %76 = vector.shape_cast %75 : vector<1x32x32xbf16> to vector<32x32xbf16>
    %77 = arith.truncf %74 : vector<32x32xf32> to vector<32x32xbf16>
    %cst_35 = arith.constant dense<0.000000e+00> : vector<32x32xf32>
    %78 = tpu.matmul %77, %76, %cst_35 {dimension_numbers = #tpu.dot_dimension_numbers<[1], [0], [0], [1], [0, 0, 1, 1], [], []>} : vector<32x32xbf16>, vector<32x32xbf16>, vector<32x32xf32> -> vector<32x32xf32>
    %c0_36 = arith.constant 0 : index
    %c0_37 = arith.constant 0 : index
    %c0_38 = arith.constant 0 : index
    %79 = vector.load %arg14[%c0_36, %c0_37, %c0_38] : memref<2x1x32xf32, #tpu.memory_space<vmem>>, vector<1x1x32xf32>
    %80 = vector.shape_cast %79 : vector<1x1x32xf32> to vector<1x32xf32>
    %81 = vector.broadcast %80 : vector<1x32xf32> to vector<32x32xf32>
    %82 = arith.addf %78, %81 : vector<32x32xf32>
    %83 = arith.addf %7, %82 : vector<32x32xf32>
    %c0_39 = arith.constant 0 : index
    %c0_40 = arith.constant 0 : index
    %c0_41 = arith.constant 0 : index
    %84 = vector.load %arg17[%c0_39, %c0_40, %c0_41] : memref<2x1x32xf32, #tpu.memory_space<vmem>>, vector<1x1x32xf32>
    %85 = vector.shape_cast %84 : vector<1x1x32xf32> to vector<1x32xf32>
    %c0_42 = arith.constant 0 : index
    %c0_43 = arith.constant 0 : index
    %c0_44 = arith.constant 0 : index
    %86 = vector.load %arg18[%c0_42, %c0_43, %c0_44] : memref<2x1x32xf32, #tpu.memory_space<vmem>>, vector<1x1x32xf32>
    %87 = vector.shape_cast %86 : vector<1x1x32xf32> to vector<1x32xf32>
    %cst_45 = arith.constant dense<0.000000e+00> : vector<32xf32>
    %88 = vector.multi_reduction <add>, %83, %cst_45 [1] : vector<32x32xf32> to vector<32xf32>
    %89 = vector.shape_cast %88 : vector<32xf32> to vector<32x1xf32>
    %cst_46 = arith.constant 3.200000e+01 : f32
    %90 = vector.broadcast %cst_46 : f32 to vector<32x1xf32>
    %91 = arith.divf %89, %90 : vector<32x1xf32>
    %92 = vector.broadcast %91 : vector<32x1xf32> to vector<32x32xf32>
    %93 = arith.subf %83, %92 : vector<32x32xf32>
    %94 = arith.mulf %93, %93 : vector<32x32xf32>
    %cst_47 = arith.constant dense<0.000000e+00> : vector<32xf32>
    %95 = vector.multi_reduction <add>, %94, %cst_47 [1] : vector<32x32xf32> to vector<32xf32>
    %96 = vector.shape_cast %95 : vector<32xf32> to vector<32x1xf32>
    %cst_48 = arith.constant 3.200000e+01 : f32
    %97 = vector.broadcast %cst_48 : f32 to vector<32x1xf32>
    %98 = arith.divf %96, %97 : vector<32x1xf32>
    %cst_49 = arith.constant 9.99999974E-6 : f32
    %99 = vector.broadcast %cst_49 : f32 to vector<32x1xf32>
    %100 = arith.addf %98, %99 : vector<32x1xf32>
    %101 = math.rsqrt %100 : vector<32x1xf32>
    %102 = vector.broadcast %101 : vector<32x1xf32> to vector<32x32xf32>
    %103 = arith.mulf %93, %102 : vector<32x32xf32>
    %104 = vector.broadcast %85 : vector<1x32xf32> to vector<32x32xf32>
    %105 = arith.mulf %103, %104 : vector<32x32xf32>
    %106 = vector.broadcast %87 : vector<1x32xf32> to vector<32x32xf32>
    %107 = arith.addf %105, %106 : vector<32x32xf32>
    %c0_50 = arith.constant 0 : index
    %c0_51 = arith.constant 0 : index
    %c0_52 = arith.constant 0 : index
    %108 = vector.load %arg9[%c0_50, %c0_51, %c0_52] : memref<2x32x2048xbf16, #tpu.memory_space<vmem>>, vector<1x32x2048xbf16>
    %109 = vector.shape_cast %108 : vector<1x32x2048xbf16> to vector<32x2048xbf16>
    %110 = arith.truncf %107 : vector<32x32xf32> to vector<32x32xbf16>
    %cst_53 = arith.constant dense<0.000000e+00> : vector<32x2048xf32>
    %111 = tpu.matmul %110, %109, %cst_53 {dimension_numbers = #tpu.dot_dimension_numbers<[1], [0], [0], [1], [0, 0, 1, 1], [], []>} : vector<32x32xbf16>, vector<32x2048xbf16>, vector<32x2048xf32> -> vector<32x2048xf32>
    %c0_54 = arith.constant 0 : index
    %c0_55 = arith.constant 0 : index
    %c0_56 = arith.constant 0 : index
    %112 = vector.load %arg15[%c0_54, %c0_55, %c0_56] : memref<2x1x2048xf32, #tpu.memory_space<vmem>>, vector<1x1x2048xf32>
    %113 = vector.shape_cast %112 : vector<1x1x2048xf32> to vector<1x2048xf32>
    %114 = vector.broadcast %113 : vector<1x2048xf32> to vector<32x2048xf32>
    %115 = arith.addf %111, %114 : vector<32x2048xf32>
    %cst_57 = arith.constant 0.000000e+00 : f32
    %116 = vector.broadcast %cst_57 : f32 to vector<32x2048xf32>
    %117 = arith.maximumf %115, %116 : vector<32x2048xf32>
    %c0_58 = arith.constant 0 : index
    %c0_59 = arith.constant 0 : index
    %c0_60 = arith.constant 0 : index
    %118 = vector.load %arg10[%c0_58, %c0_59, %c0_60] : memref<2x2048x32xbf16, #tpu.memory_space<vmem>>, vector<1x2048x32xbf16>
    %119 = vector.shape_cast %118 : vector<1x2048x32xbf16> to vector<2048x32xbf16>
    %120 = arith.truncf %117 : vector<32x2048xf32> to vector<32x2048xbf16>
    %cst_61 = arith.constant dense<0.000000e+00> : vector<32x32xf32>
    %121 = tpu.matmul %120, %119, %cst_61 {dimension_numbers = #tpu.dot_dimension_numbers<[1], [0], [0], [1], [0, 0, 1, 1], [], []>} : vector<32x2048xbf16>, vector<2048x32xbf16>, vector<32x32xf32> -> vector<32x32xf32>
    %c0_62 = arith.constant 0 : index
    %c0_63 = arith.constant 0 : index
    %c0_64 = arith.constant 0 : index
    %122 = vector.load %arg16[%c0_62, %c0_63, %c0_64] : memref<2x1x32xf32, #tpu.memory_space<vmem>>, vector<1x1x32xf32>
    %123 = vector.shape_cast %122 : vector<1x1x32xf32> to vector<1x32xf32>
    %124 = vector.broadcast %123 : vector<1x32xf32> to vector<32x32xf32>
    %125 = arith.addf %121, %124 : vector<32x32xf32>
    %126 = arith.addf %107, %125 : vector<32x32xf32>
    %c0_65 = arith.constant 0 : index
    %c0_66 = arith.constant 0 : index
    %c0_67 = arith.constant 0 : index
    %127 = vector.load %arg19[%c0_65, %c0_66, %c0_67] : memref<2x1x32xf32, #tpu.memory_space<vmem>>, vector<1x1x32xf32>
    %128 = vector.shape_cast %127 : vector<1x1x32xf32> to vector<1x32xf32>
    %c0_68 = arith.constant 0 : index
    %c0_69 = arith.constant 0 : index
    %c0_70 = arith.constant 0 : index
    %129 = vector.load %arg20[%c0_68, %c0_69, %c0_70] : memref<2x1x32xf32, #tpu.memory_space<vmem>>, vector<1x1x32xf32>
    %130 = vector.shape_cast %129 : vector<1x1x32xf32> to vector<1x32xf32>
    %cst_71 = arith.constant dense<0.000000e+00> : vector<32xf32>
    %131 = vector.multi_reduction <add>, %126, %cst_71 [1] : vector<32x32xf32> to vector<32xf32>
    %132 = vector.shape_cast %131 : vector<32xf32> to vector<32x1xf32>
    %cst_72 = arith.constant 3.200000e+01 : f32
    %133 = vector.broadcast %cst_72 : f32 to vector<32x1xf32>
    %134 = arith.divf %132, %133 : vector<32x1xf32>
    %135 = vector.broadcast %134 : vector<32x1xf32> to vector<32x32xf32>
    %136 = arith.subf %126, %135 : vector<32x32xf32>
    %137 = arith.mulf %136, %136 : vector<32x32xf32>
    %cst_73 = arith.constant dense<0.000000e+00> : vector<32xf32>
    %138 = vector.multi_reduction <add>, %137, %cst_73 [1] : vector<32x32xf32> to vector<32xf32>
    %139 = vector.shape_cast %138 : vector<32xf32> to vector<32x1xf32>
    %cst_74 = arith.constant 3.200000e+01 : f32
    %140 = vector.broadcast %cst_74 : f32 to vector<32x1xf32>
    %141 = arith.divf %139, %140 : vector<32x1xf32>
    %cst_75 = arith.constant 9.99999974E-6 : f32
    %142 = vector.broadcast %cst_75 : f32 to vector<32x1xf32>
    %143 = arith.addf %141, %142 : vector<32x1xf32>
    %144 = math.rsqrt %143 : vector<32x1xf32>
    %145 = vector.broadcast %144 : vector<32x1xf32> to vector<32x32xf32>
    %146 = arith.mulf %136, %145 : vector<32x32xf32>
    %147 = vector.broadcast %128 : vector<1x32xf32> to vector<32x32xf32>
    %148 = arith.mulf %146, %147 : vector<32x32xf32>
    %149 = vector.broadcast %130 : vector<1x32xf32> to vector<32x32xf32>
    %150 = arith.addf %148, %149 : vector<32x32xf32>
    %c1 = arith.constant 1 : index
    %c0_76 = arith.constant 0 : index
    %c0_77 = arith.constant 0 : index
    %151 = vector.load %arg5[%c1, %c0_76, %c0_77] : memref<2x32x32xbf16, #tpu.memory_space<vmem>>, vector<1x32x32xbf16>
    %152 = vector.shape_cast %151 : vector<1x32x32xbf16> to vector<32x32xbf16>
    %153 = arith.truncf %150 : vector<32x32xf32> to vector<32x32xbf16>
    %cst_78 = arith.constant dense<0.000000e+00> : vector<32x32xf32>
    %154 = tpu.matmul %153, %152, %cst_78 {dimension_numbers = #tpu.dot_dimension_numbers<[1], [0], [0], [1], [0, 0, 1, 1], [], []>} : vector<32x32xbf16>, vector<32x32xbf16>, vector<32x32xf32> -> vector<32x32xf32>
    %c1_79 = arith.constant 1 : index
    %c0_80 = arith.constant 0 : index
    %c0_81 = arith.constant 0 : index
    %155 = vector.load %arg11[%c1_79, %c0_80, %c0_81] : memref<2x1x32xf32, #tpu.memory_space<vmem>>, vector<1x1x32xf32>
    %156 = vector.shape_cast %155 : vector<1x1x32xf32> to vector<1x32xf32>
    %157 = vector.broadcast %156 : vector<1x32xf32> to vector<32x32xf32>
    %158 = arith.addf %154, %157 : vector<32x32xf32>
    %c1_82 = arith.constant 1 : index
    %c0_83 = arith.constant 0 : index
    %c0_84 = arith.constant 0 : index
    %159 = vector.load %arg6[%c1_82, %c0_83, %c0_84] : memref<2x32x32xbf16, #tpu.memory_space<vmem>>, vector<1x32x32xbf16>
    %160 = vector.shape_cast %159 : vector<1x32x32xbf16> to vector<32x32xbf16>
    %161 = arith.truncf %150 : vector<32x32xf32> to vector<32x32xbf16>
    %cst_85 = arith.constant dense<0.000000e+00> : vector<32x32xf32>
    %162 = tpu.matmul %161, %160, %cst_85 {dimension_numbers = #tpu.dot_dimension_numbers<[1], [0], [0], [1], [0, 0, 1, 1], [], []>} : vector<32x32xbf16>, vector<32x32xbf16>, vector<32x32xf32> -> vector<32x32xf32>
    %c1_86 = arith.constant 1 : index
    %c0_87 = arith.constant 0 : index
    %c0_88 = arith.constant 0 : index
    %163 = vector.load %arg12[%c1_86, %c0_87, %c0_88] : memref<2x1x32xf32, #tpu.memory_space<vmem>>, vector<1x1x32xf32>
    %164 = vector.shape_cast %163 : vector<1x1x32xf32> to vector<1x32xf32>
    %165 = vector.broadcast %164 : vector<1x32xf32> to vector<32x32xf32>
    %166 = arith.addf %162, %165 : vector<32x32xf32>
    %c1_89 = arith.constant 1 : index
    %c0_90 = arith.constant 0 : index
    %c0_91 = arith.constant 0 : index
    %167 = vector.load %arg7[%c1_89, %c0_90, %c0_91] : memref<2x32x32xbf16, #tpu.memory_space<vmem>>, vector<1x32x32xbf16>
    %168 = vector.shape_cast %167 : vector<1x32x32xbf16> to vector<32x32xbf16>
    %169 = arith.truncf %150 : vector<32x32xf32> to vector<32x32xbf16>
    %cst_92 = arith.constant dense<0.000000e+00> : vector<32x32xf32>
    %170 = tpu.matmul %169, %168, %cst_92 {dimension_numbers = #tpu.dot_dimension_numbers<[1], [0], [0], [1], [0, 0, 1, 1], [], []>} : vector<32x32xbf16>, vector<32x32xbf16>, vector<32x32xf32> -> vector<32x32xf32>
    %c1_93 = arith.constant 1 : index
    %c0_94 = arith.constant 0 : index
    %c0_95 = arith.constant 0 : index
    %171 = vector.load %arg13[%c1_93, %c0_94, %c0_95] : memref<2x1x32xf32, #tpu.memory_space<vmem>>, vector<1x1x32xf32>
    %172 = vector.shape_cast %171 : vector<1x1x32xf32> to vector<1x32xf32>
    %173 = vector.broadcast %172 : vector<1x32xf32> to vector<32x32xf32>
    %174 = arith.addf %170, %173 : vector<32x32xf32>
    %175 = vector.extract_strided_slice %158 {offsets = [0, 0], sizes = [16, 32], strides = [1, 1]} : vector<32x32xf32> to vector<16x32xf32>
    %176 = vector.extract_strided_slice %166 {offsets = [0, 0], sizes = [16, 32], strides = [1, 1]} : vector<32x32xf32> to vector<16x32xf32>
    %177 = arith.mulf %175, %176 : vector<16x32xf32>
    %cst_96 = arith.constant dense<0.000000e+00> : vector<16x32xf32>
    %178 = tpu.matmul %177, %0, %cst_96 {dimension_numbers = #tpu.dot_dimension_numbers<[1], [0], [0], [1], [0, 0, 1, 1], [], []>} : vector<16x32xf32>, vector<32x32xf32>, vector<16x32xf32> -> vector<16x32xf32>
    %179 = vector.extract_strided_slice %166 {offsets = [16, 0], sizes = [16, 32], strides = [1, 1]} : vector<32x32xf32> to vector<16x32xf32>
    %180 = arith.mulf %175, %179 : vector<16x32xf32>
    %cst_97 = arith.constant dense<0.000000e+00> : vector<16x32xf32>
    %181 = tpu.matmul %180, %0, %cst_97 {dimension_numbers = #tpu.dot_dimension_numbers<[1], [0], [0], [1], [0, 0, 1, 1], [], []>} : vector<16x32xf32>, vector<32x32xf32>, vector<16x32xf32> -> vector<16x32xf32>
    %182 = arith.maximumf %178, %181 : vector<16x32xf32>
    %183 = arith.subf %178, %182 : vector<16x32xf32>
    %184 = math.exp %183 : vector<16x32xf32>
    %185 = arith.subf %181, %182 : vector<16x32xf32>
    %186 = math.exp %185 : vector<16x32xf32>
    %187 = arith.addf %184, %186 : vector<16x32xf32>
    %188 = tpu.reciprocal %187 {approx = true} : vector<16x32xf32> -> vector<16x32xf32>
    %189 = arith.mulf %184, %188 : vector<16x32xf32>
    %190 = vector.extract_strided_slice %174 {offsets = [0, 0], sizes = [16, 32], strides = [1, 1]} : vector<32x32xf32> to vector<16x32xf32>
    %191 = arith.mulf %189, %190 : vector<16x32xf32>
    %192 = arith.mulf %186, %188 : vector<16x32xf32>
    %193 = vector.extract_strided_slice %174 {offsets = [16, 0], sizes = [16, 32], strides = [1, 1]} : vector<32x32xf32> to vector<16x32xf32>
    %194 = arith.mulf %192, %193 : vector<16x32xf32>
    %195 = arith.addf %191, %194 : vector<16x32xf32>
    %196 = vector.extract_strided_slice %158 {offsets = [16, 0], sizes = [16, 32], strides = [1, 1]} : vector<32x32xf32> to vector<16x32xf32>
    %197 = vector.extract_strided_slice %166 {offsets = [0, 0], sizes = [16, 32], strides = [1, 1]} : vector<32x32xf32> to vector<16x32xf32>
    %198 = arith.mulf %196, %197 : vector<16x32xf32>
    %cst_98 = arith.constant dense<0.000000e+00> : vector<16x32xf32>
    %199 = tpu.matmul %198, %0, %cst_98 {dimension_numbers = #tpu.dot_dimension_numbers<[1], [0], [0], [1], [0, 0, 1, 1], [], []>} : vector<16x32xf32>, vector<32x32xf32>, vector<16x32xf32> -> vector<16x32xf32>
    %200 = vector.extract_strided_slice %166 {offsets = [16, 0], sizes = [16, 32], strides = [1, 1]} : vector<32x32xf32> to vector<16x32xf32>
    %201 = arith.mulf %196, %200 : vector<16x32xf32>
    %cst_99 = arith.constant dense<0.000000e+00> : vector<16x32xf32>
    %202 = tpu.matmul %201, %0, %cst_99 {dimension_numbers = #tpu.dot_dimension_numbers<[1], [0], [0], [1], [0, 0, 1, 1], [], []>} : vector<16x32xf32>, vector<32x32xf32>, vector<16x32xf32> -> vector<16x32xf32>
    %203 = arith.maximumf %199, %202 : vector<16x32xf32>
    %204 = arith.subf %199, %203 : vector<16x32xf32>
    %205 = math.exp %204 : vector<16x32xf32>
    %206 = arith.subf %202, %203 : vector<16x32xf32>
    %207 = math.exp %206 : vector<16x32xf32>
    %208 = arith.addf %205, %207 : vector<16x32xf32>
    %209 = tpu.reciprocal %208 {approx = true} : vector<16x32xf32> -> vector<16x32xf32>
    %210 = arith.mulf %205, %209 : vector<16x32xf32>
    %211 = vector.extract_strided_slice %174 {offsets = [0, 0], sizes = [16, 32], strides = [1, 1]} : vector<32x32xf32> to vector<16x32xf32>
    %212 = arith.mulf %210, %211 : vector<16x32xf32>
    %213 = arith.mulf %207, %209 : vector<16x32xf32>
    %214 = vector.extract_strided_slice %174 {offsets = [16, 0], sizes = [16, 32], strides = [1, 1]} : vector<32x32xf32> to vector<16x32xf32>
    %215 = arith.mulf %213, %214 : vector<16x32xf32>
    %216 = arith.addf %212, %215 : vector<16x32xf32>
    %217 = tpu.concatenate %195, %216 in 0 : vector<16x32xf32>, vector<16x32xf32> -> vector<32x32xf32>
    %c1_100 = arith.constant 1 : index
    %c0_101 = arith.constant 0 : index
    %c0_102 = arith.constant 0 : index
    %218 = vector.load %arg8[%c1_100, %c0_101, %c0_102] : memref<2x32x32xbf16, #tpu.memory_space<vmem>>, vector<1x32x32xbf16>
    %219 = vector.shape_cast %218 : vector<1x32x32xbf16> to vector<32x32xbf16>
    %220 = arith.truncf %217 : vector<32x32xf32> to vector<32x32xbf16>
    %cst_103 = arith.constant dense<0.000000e+00> : vector<32x32xf32>
    %221 = tpu.matmul %220, %219, %cst_103 {dimension_numbers = #tpu.dot_dimension_numbers<[1], [0], [0], [1], [0, 0, 1, 1], [], []>} : vector<32x32xbf16>, vector<32x32xbf16>, vector<32x32xf32> -> vector<32x32xf32>
    %c1_104 = arith.constant 1 : index
    %c0_105 = arith.constant 0 : index
    %c0_106 = arith.constant 0 : index
    %222 = vector.load %arg14[%c1_104, %c0_105, %c0_106] : memref<2x1x32xf32, #tpu.memory_space<vmem>>, vector<1x1x32xf32>
    %223 = vector.shape_cast %222 : vector<1x1x32xf32> to vector<1x32xf32>
    %224 = vector.broadcast %223 : vector<1x32xf32> to vector<32x32xf32>
    %225 = arith.addf %221, %224 : vector<32x32xf32>
    %226 = arith.addf %150, %225 : vector<32x32xf32>
    %c1_107 = arith.constant 1 : index
    %c0_108 = arith.constant 0 : index
    %c0_109 = arith.constant 0 : index
    %227 = vector.load %arg17[%c1_107, %c0_108, %c0_109] : memref<2x1x32xf32, #tpu.memory_space<vmem>>, vector<1x1x32xf32>
    %228 = vector.shape_cast %227 : vector<1x1x32xf32> to vector<1x32xf32>
    %c1_110 = arith.constant 1 : index
    %c0_111 = arith.constant 0 : index
    %c0_112 = arith.constant 0 : index
    %229 = vector.load %arg18[%c1_110, %c0_111, %c0_112] : memref<2x1x32xf32, #tpu.memory_space<vmem>>, vector<1x1x32xf32>
    %230 = vector.shape_cast %229 : vector<1x1x32xf32> to vector<1x32xf32>
    %cst_113 = arith.constant dense<0.000000e+00> : vector<32xf32>
    %231 = vector.multi_reduction <add>, %226, %cst_113 [1] : vector<32x32xf32> to vector<32xf32>
    %232 = vector.shape_cast %231 : vector<32xf32> to vector<32x1xf32>
    %cst_114 = arith.constant 3.200000e+01 : f32
    %233 = vector.broadcast %cst_114 : f32 to vector<32x1xf32>
    %234 = arith.divf %232, %233 : vector<32x1xf32>
    %235 = vector.broadcast %234 : vector<32x1xf32> to vector<32x32xf32>
    %236 = arith.subf %226, %235 : vector<32x32xf32>
    %237 = arith.mulf %236, %236 : vector<32x32xf32>
    %cst_115 = arith.constant dense<0.000000e+00> : vector<32xf32>
    %238 = vector.multi_reduction <add>, %237, %cst_115 [1] : vector<32x32xf32> to vector<32xf32>
    %239 = vector.shape_cast %238 : vector<32xf32> to vector<32x1xf32>
    %cst_116 = arith.constant 3.200000e+01 : f32
    %240 = vector.broadcast %cst_116 : f32 to vector<32x1xf32>
    %241 = arith.divf %239, %240 : vector<32x1xf32>
    %cst_117 = arith.constant 9.99999974E-6 : f32
    %242 = vector.broadcast %cst_117 : f32 to vector<32x1xf32>
    %243 = arith.addf %241, %242 : vector<32x1xf32>
    %244 = math.rsqrt %243 : vector<32x1xf32>
    %245 = vector.broadcast %244 : vector<32x1xf32> to vector<32x32xf32>
    %246 = arith.mulf %236, %245 : vector<32x32xf32>
    %247 = vector.broadcast %228 : vector<1x32xf32> to vector<32x32xf32>
    %248 = arith.mulf %246, %247 : vector<32x32xf32>
    %249 = vector.broadcast %230 : vector<1x32xf32> to vector<32x32xf32>
    %250 = arith.addf %248, %249 : vector<32x32xf32>
    %c1_118 = arith.constant 1 : index
    %c0_119 = arith.constant 0 : index
    %c0_120 = arith.constant 0 : index
    %251 = vector.load %arg9[%c1_118, %c0_119, %c0_120] : memref<2x32x2048xbf16, #tpu.memory_space<vmem>>, vector<1x32x2048xbf16>
    %252 = vector.shape_cast %251 : vector<1x32x2048xbf16> to vector<32x2048xbf16>
    %253 = arith.truncf %250 : vector<32x32xf32> to vector<32x32xbf16>
    %cst_121 = arith.constant dense<0.000000e+00> : vector<32x2048xf32>
    %254 = tpu.matmul %253, %252, %cst_121 {dimension_numbers = #tpu.dot_dimension_numbers<[1], [0], [0], [1], [0, 0, 1, 1], [], []>} : vector<32x32xbf16>, vector<32x2048xbf16>, vector<32x2048xf32> -> vector<32x2048xf32>
    %c1_122 = arith.constant 1 : index
    %c0_123 = arith.constant 0 : index
    %c0_124 = arith.constant 0 : index
    %255 = vector.load %arg15[%c1_122, %c0_123, %c0_124] : memref<2x1x2048xf32, #tpu.memory_space<vmem>>, vector<1x1x2048xf32>
    %256 = vector.shape_cast %255 : vector<1x1x2048xf32> to vector<1x2048xf32>
    %257 = vector.broadcast %256 : vector<1x2048xf32> to vector<32x2048xf32>
    %258 = arith.addf %254, %257 : vector<32x2048xf32>
    %cst_125 = arith.constant 0.000000e+00 : f32
    %259 = vector.broadcast %cst_125 : f32 to vector<32x2048xf32>
    %260 = arith.maximumf %258, %259 : vector<32x2048xf32>
    %c1_126 = arith.constant 1 : index
    %c0_127 = arith.constant 0 : index
    %c0_128 = arith.constant 0 : index
    %261 = vector.load %arg10[%c1_126, %c0_127, %c0_128] : memref<2x2048x32xbf16, #tpu.memory_space<vmem>>, vector<1x2048x32xbf16>
    %262 = vector.shape_cast %261 : vector<1x2048x32xbf16> to vector<2048x32xbf16>
    %263 = arith.truncf %260 : vector<32x2048xf32> to vector<32x2048xbf16>
    %cst_129 = arith.constant dense<0.000000e+00> : vector<32x32xf32>
    %264 = tpu.matmul %263, %262, %cst_129 {dimension_numbers = #tpu.dot_dimension_numbers<[1], [0], [0], [1], [0, 0, 1, 1], [], []>} : vector<32x2048xbf16>, vector<2048x32xbf16>, vector<32x32xf32> -> vector<32x32xf32>
    %c1_130 = arith.constant 1 : index
    %c0_131 = arith.constant 0 : index
    %c0_132 = arith.constant 0 : index
    %265 = vector.load %arg16[%c1_130, %c0_131, %c0_132] : memref<2x1x32xf32, #tpu.memory_space<vmem>>, vector<1x1x32xf32>
    %266 = vector.shape_cast %265 : vector<1x1x32xf32> to vector<1x32xf32>
    %267 = vector.broadcast %266 : vector<1x32xf32> to vector<32x32xf32>
    %268 = arith.addf %264, %267 : vector<32x32xf32>
    %269 = arith.addf %250, %268 : vector<32x32xf32>
    %c1_133 = arith.constant 1 : index
    %c0_134 = arith.constant 0 : index
    %c0_135 = arith.constant 0 : index
    %270 = vector.load %arg19[%c1_133, %c0_134, %c0_135] : memref<2x1x32xf32, #tpu.memory_space<vmem>>, vector<1x1x32xf32>
    %271 = vector.shape_cast %270 : vector<1x1x32xf32> to vector<1x32xf32>
    %c1_136 = arith.constant 1 : index
    %c0_137 = arith.constant 0 : index
    %c0_138 = arith.constant 0 : index
    %272 = vector.load %arg20[%c1_136, %c0_137, %c0_138] : memref<2x1x32xf32, #tpu.memory_space<vmem>>, vector<1x1x32xf32>
    %273 = vector.shape_cast %272 : vector<1x1x32xf32> to vector<1x32xf32>
    %cst_139 = arith.constant dense<0.000000e+00> : vector<32xf32>
    %274 = vector.multi_reduction <add>, %269, %cst_139 [1] : vector<32x32xf32> to vector<32xf32>
    %275 = vector.shape_cast %274 : vector<32xf32> to vector<32x1xf32>
    %cst_140 = arith.constant 3.200000e+01 : f32
    %276 = vector.broadcast %cst_140 : f32 to vector<32x1xf32>
    %277 = arith.divf %275, %276 : vector<32x1xf32>
    %278 = vector.broadcast %277 : vector<32x1xf32> to vector<32x32xf32>
    %279 = arith.subf %269, %278 : vector<32x32xf32>
    %280 = arith.mulf %279, %279 : vector<32x32xf32>
    %cst_141 = arith.constant dense<0.000000e+00> : vector<32xf32>
    %281 = vector.multi_reduction <add>, %280, %cst_141 [1] : vector<32x32xf32> to vector<32xf32>
    %282 = vector.shape_cast %281 : vector<32xf32> to vector<32x1xf32>
    %cst_142 = arith.constant 3.200000e+01 : f32
    %283 = vector.broadcast %cst_142 : f32 to vector<32x1xf32>
    %284 = arith.divf %282, %283 : vector<32x1xf32>
    %cst_143 = arith.constant 9.99999974E-6 : f32
    %285 = vector.broadcast %cst_143 : f32 to vector<32x1xf32>
    %286 = arith.addf %284, %285 : vector<32x1xf32>
    %287 = math.rsqrt %286 : vector<32x1xf32>
    %288 = vector.broadcast %287 : vector<32x1xf32> to vector<32x32xf32>
    %289 = arith.mulf %279, %288 : vector<32x32xf32>
    %290 = vector.broadcast %271 : vector<1x32xf32> to vector<32x32xf32>
    %291 = arith.mulf %289, %290 : vector<32x32xf32>
    %292 = vector.broadcast %273 : vector<1x32xf32> to vector<32x32xf32>
    %293 = arith.addf %291, %292 : vector<32x32xf32>
    %c0_144 = arith.constant 0 : index
    %c0_145 = arith.constant 0 : index
    %294 = vector.load %arg21[%c0_144, %c0_145] : memref<32x10xbf16, #tpu.memory_space<vmem>>, vector<32x10xbf16>
    %295 = arith.truncf %293 : vector<32x32xf32> to vector<32x32xbf16>
    %cst_146 = arith.constant dense<0.000000e+00> : vector<32x10xf32>
    %296 = tpu.matmul %295, %294, %cst_146 {dimension_numbers = #tpu.dot_dimension_numbers<[1], [0], [0], [1], [0, 0, 1, 1], [], []>} : vector<32x32xbf16>, vector<32x10xbf16>, vector<32x10xf32> -> vector<32x10xf32>
    %c0_147 = arith.constant 0 : index
    %c0_148 = arith.constant 0 : index
    %297 = vector.load %arg22[%c0_147, %c0_148] : memref<1x10xf32, #tpu.memory_space<vmem>>, vector<1x10xf32>
    %298 = vector.broadcast %297 : vector<1x10xf32> to vector<32x10xf32>
    %299 = arith.addf %296, %298 : vector<32x10xf32>
    %c0_149 = arith.constant 0 : index
    %c0_150 = arith.constant 0 : index
    %300 = vector.load %arg23[%c0_149, %c0_150] : memref<32x10xf32, #tpu.memory_space<vmem>>, vector<32x10xf32>
    tpu.vector_store %arg23[%c0_149, %c0_150], %299 {strides = array<i32>} : memref<32x10xf32, #tpu.memory_space<vmem>>, vector<32x10xf32>,
    return
  }
  func.func @transform_0(%arg0: i32) -> (i32, i32) {
    %c0_i32 = arith.constant 0 : i32
    %c0_i32_0 = arith.constant 0 : i32
    %c0_i32_1 = arith.constant 0 : i32
    return %c0_i32, %c0_i32_0 : i32, i32
  }
  func.func @transform_1(%arg0: i32) -> (i32, i32) {
    %c0_i32 = arith.constant 0 : i32
    %c0_i32_0 = arith.constant 0 : i32
    %c0_i32_1 = arith.constant 0 : i32
    return %c0_i32, %c0_i32_0 : i32, i32
  }
  func.func @transform_2(%arg0: i32) -> (i32, i32) {
    %c0_i32 = arith.constant 0 : i32
    %c0_i32_0 = arith.constant 0 : i32
    %c0_i32_1 = arith.constant 0 : i32
    return %c0_i32, %c0_i32_0 : i32, i32
  }
  func.func @transform_3(%arg0: i32) -> (i32, i32) {
    %c0_i32 = arith.constant 0 : i32
    %c0_i32_0 = arith.constant 0 : i32
    %c0_i32_1 = arith.constant 0 : i32
    return %c0_i32, %c0_i32_0 : i32, i32
  }
  func.func @transform_4(%arg0: i32) -> (i32, i32, i32) {
    %c0_i32 = arith.constant 0 : i32
    %c0_i32_0 = arith.constant 0 : i32
    %c0_i32_1 = arith.constant 0 : i32
    %c0_i32_2 = arith.constant 0 : i32
    return %c0_i32, %c0_i32_0, %c0_i32_1 : i32, i32, i32
  }
  func.func @transform_5(%arg0: i32) -> (i32, i32, i32) {
    %c0_i32 = arith.constant 0 : i32
    %c0_i32_0 = arith.constant 0 : i32
    %c0_i32_1 = arith.constant 0 : i32
    %c0_i32_2 = arith.constant 0 : i32
    return %c0_i32, %c0_i32_0, %c0_i32_1 : i32, i32, i32
  }
  func.func @transform_6(%arg0: i32) -> (i32, i32, i32) {
    %c0_i32 = arith.constant 0 : i32
    %c0_i32_0 = arith.constant 0 : i32
    %c0_i32_1 = arith.constant 0 : i32
    %c0_i32_2 = arith.constant 0 : i32
    return %c0_i32, %c0_i32_0, %c0_i32_1 : i32, i32, i32
  }
  func.func @transform_7(%arg0: i32) -> (i32, i32, i32) {
    %c0_i32 = arith.constant 0 : i32
    %c0_i32_0 = arith.constant 0 : i32
    %c0_i32_1 = arith.constant 0 : i32
    %c0_i32_2 = arith.constant 0 : i32
    return %c0_i32, %c0_i32_0, %c0_i32_1 : i32, i32, i32
  }
  func.func @transform_8(%arg0: i32) -> (i32, i32, i32) {
    %c0_i32 = arith.constant 0 : i32
    %c0_i32_0 = arith.constant 0 : i32
    %c0_i32_1 = arith.constant 0 : i32
    %c0_i32_2 = arith.constant 0 : i32
    return %c0_i32, %c0_i32_0, %c0_i32_1 : i32, i32, i32
  }
  func.func @transform_9(%arg0: i32) -> (i32, i32, i32) {
    %c0_i32 = arith.constant 0 : i32
    %c0_i32_0 = arith.constant 0 : i32
    %c0_i32_1 = arith.constant 0 : i32
    %c0_i32_2 = arith.constant 0 : i32
    return %c0_i32, %c0_i32_0, %c0_i32_1 : i32, i32, i32
  }
  func.func @transform_10(%arg0: i32) -> (i32, i32, i32) {
    %c0_i32 = arith.constant 0 : i32
    %c0_i32_0 = arith.constant 0 : i32
    %c0_i32_1 = arith.constant 0 : i32
    %c0_i32_2 = arith.constant 0 : i32
    return %c0_i32, %c0_i32_0, %c0_i32_1 : i32, i32, i32
  }
  func.func @transform_11(%arg0: i32) -> (i32, i32, i32) {
    %c0_i32 = arith.constant 0 : i32
    %c0_i32_0 = arith.constant 0 : i32
    %c0_i32_1 = arith.constant 0 : i32
    %c0_i32_2 = arith.constant 0 : i32
    return %c0_i32, %c0_i32_0, %c0_i32_1 : i32, i32, i32
  }
  func.func @transform_12(%arg0: i32) -> (i32, i32, i32) {
    %c0_i32 = arith.constant 0 : i32
    %c0_i32_0 = arith.constant 0 : i32
    %c0_i32_1 = arith.constant 0 : i32
    %c0_i32_2 = arith.constant 0 : i32
    return %c0_i32, %c0_i32_0, %c0_i32_1 : i32, i32, i32
  }
  func.func @transform_13(%arg0: i32) -> (i32, i32, i32) {
    %c0_i32 = arith.constant 0 : i32
    %c0_i32_0 = arith.constant 0 : i32
    %c0_i32_1 = arith.constant 0 : i32
    %c0_i32_2 = arith.constant 0 : i32
    return %c0_i32, %c0_i32_0, %c0_i32_1 : i32, i32, i32
  }
  func.func @transform_14(%arg0: i32) -> (i32, i32, i32) {
    %c0_i32 = arith.constant 0 : i32
    %c0_i32_0 = arith.constant 0 : i32
    %c0_i32_1 = arith.constant 0 : i32
    %c0_i32_2 = arith.constant 0 : i32
    return %c0_i32, %c0_i32_0, %c0_i32_1 : i32, i32, i32
  }
  func.func @transform_15(%arg0: i32) -> (i32, i32, i32) {
    %c0_i32 = arith.constant 0 : i32
    %c0_i32_0 = arith.constant 0 : i32
    %c0_i32_1 = arith.constant 0 : i32
    %c0_i32_2 = arith.constant 0 : i32
    return %c0_i32, %c0_i32_0, %c0_i32_1 : i32, i32, i32
  }
  func.func @transform_16(%arg0: i32) -> (i32, i32, i32) {
    %c0_i32 = arith.constant 0 : i32
    %c0_i32_0 = arith.constant 0 : i32
    %c0_i32_1 = arith.constant 0 : i32
    %c0_i32_2 = arith.constant 0 : i32
    return %c0_i32, %c0_i32_0, %c0_i32_1 : i32, i32, i32
  }
  func.func @transform_17(%arg0: i32) -> (i32, i32, i32) {
    %c0_i32 = arith.constant 0 : i32
    %c0_i32_0 = arith.constant 0 : i32
    %c0_i32_1 = arith.constant 0 : i32
    %c0_i32_2 = arith.constant 0 : i32
    return %c0_i32, %c0_i32_0, %c0_i32_1 : i32, i32, i32
  }
  func.func @transform_18(%arg0: i32) -> (i32, i32, i32) {
    %c0_i32 = arith.constant 0 : i32
    %c0_i32_0 = arith.constant 0 : i32
    %c0_i32_1 = arith.constant 0 : i32
    %c0_i32_2 = arith.constant 0 : i32
    return %c0_i32, %c0_i32_0, %c0_i32_1 : i32, i32, i32
  }
  func.func @transform_19(%arg0: i32) -> (i32, i32, i32) {
    %c0_i32 = arith.constant 0 : i32
    %c0_i32_0 = arith.constant 0 : i32
    %c0_i32_1 = arith.constant 0 : i32
    %c0_i32_2 = arith.constant 0 : i32
    return %c0_i32, %c0_i32_0, %c0_i32_1 : i32, i32, i32
  }
  func.func @transform_20(%arg0: i32) -> (i32, i32) {
    %c0_i32 = arith.constant 0 : i32
    %c0_i32_0 = arith.constant 0 : i32
    %c0_i32_1 = arith.constant 0 : i32
    return %c0_i32, %c0_i32_0 : i32, i32
  }
  func.func @transform_21(%arg0: i32) -> (i32, i32) {
    %c0_i32 = arith.constant 0 : i32
    %c0_i32_0 = arith.constant 0 : i32
    %c0_i32_1 = arith.constant 0 : i32
    return %c0_i32, %c0_i32_0 : i32, i32
  }
  func.func @transform_22(%arg0: i32) -> (i32, i32) {
    %c0_i32 = arith.constant 0 : i32
    %c0_i32_0 = arith.constant 0 : i32
    %c0_i32_1 = arith.constant 0 : i32
    return %c0_i32, %c0_i32_0 : i32, i32
  }
}

</mosaic_0001>

<bundles_post_ra>
// kernel: vision_transformer_forward.1
= control target key start
LH: loop header
LB: loop body
LE: loop exit
PB: predicated region body
PF: predicated region fallthrough
CT: control target
= control target key end

     0   :  { %vm121_vm0 = vcmask 523264   ;;  %vm202_vm1 = vcmask 261120   ;;  %vm6425_vm2 = vcmask 80896   ;;  %s10148_s1 = inlined_call_operand.vmem [shape: bf16[64,32], index: 1, kind: input, shape index: {}]   ;;  %s10149_s0 = inlined_call_operand.vmem [shape: f32[32,64], index: 0, kind: input, shape index: {}]   ;;  %s10150_s4 = inlined_call_operand.vmem [shape: bf16[2,32,32], index: 4, kind: input, shape index: {}]   ;;  %s10151_s6 = inlined_call_operand.vmem [shape: bf16[2,32,32], index: 6, kind: input, shape index: {}]   ;;  %s10152_s5 = inlined_call_operand.vmem [shape: bf16[2,32,32], index: 5, kind: input, shape index: {}]   ;;  %s10153_s2 = inlined_call_operand.vmem [shape: f32[1,32], index: 2, kind: input, shape index: {}]   ;;  %s10154_s3 = inlined_call_operand.vmem [shape: f32[32,32], index: 3, kind: input, shape index: {}]   ;;  %s10155_s11 = inlined_call_operand.vmem [shape: f32[2,1,32], index: 11, kind: input, shape index: {}]   ;;  %s10156_s10 = inlined_call_operand.vmem [shape: f32[2,1,32], index: 10, kind: input, shape index: {}]   ;;  %s10157_s7 = inlined_call_operand.vmem [shape: bf16[2,32,32], index: 7, kind: input, shape index: {}]   ;;  %s10158_s12 = inlined_call_operand.vmem [shape: f32[2,1,32], index: 12, kind: input, shape index: {}]   ;;  %s10159_s13 = inlined_call_operand.vmem [shape: f32[2,1,32], index: 13, kind: input, shape index: {}]   ;;  %s10160_s8 = inlined_call_operand.vmem [shape: bf16[2,32,2048], index: 8, kind: input, shape index: {}]   ;;  %s10161_s9 = inlined_call_operand.vmem [shape: bf16[2,2048,32], index: 9, kind: input, shape index: {}]   ;;  %s10162_s16 = inlined_call_operand.vmem [shape: f32[2,1,32], index: 16, kind: input, shape index: {}]   ;;  %s10163_s17 = inlined_call_operand.vmem [shape: f32[2,1,32], index: 17, kind: input, shape index: {}]   ;;  %s10164_s14 = inlined_call_operand.vmem [shape: f32[2,1,2048], index: 14, kind: input, shape index: {}]   ;;  %s10165_s15 = inlined_call_operand.vmem [shape: f32[2,1,32], index: 15, kind: input, shape index: {}]   ;;  %s10166_s18 = inlined_call_operand.vmem [shape: f32[2,1,32], index: 18, kind: input, shape index: {}]   ;;  %s10167_s19 = inlined_call_operand.vmem [shape: f32[2,1,32], index: 19, kind: input, shape index: {}]   ;;  %s10168_s20 = inlined_call_operand.vmem [shape: bf16[32,10], index: 20, kind: input, shape index: {}]   ;;  %s10169_s21 = inlined_call_operand.vmem [shape: f32[1,10], index: 21, kind: input, shape index: {}]   ;;  %s10170_s22 = inlined_call_operand.vmem [shape: f32[32,10], index: 22, kind: output, shape index: {}]  }
   0x1   :  { %10197 = sst [smem:[#allocation11_spill]] %s10148_s1  ;;  %v6446_v35 = vld [vmem:[%s10155_s11] ss:$0 sm:$0xff]  ;;  %v7900_v57 = vld [vmem:[%s10157_s7 + $0x8] sm:$0xff]  }
   0x2   :  { %10198 = sst [smem:[#allocation12_spill]] %s10149_s0  ;;  %v6441_v36 = vld [vmem:[%s10156_s10] ss:$0 sm:$0xff] }
   0x3   :  { %10199 = sst [smem:[#allocation13_spill]] %s10150_s4  ;;  %v7901_v58 = vld [vmem:[%s10157_s7] sm:$0xff]  }
   0x4   :  { %10200 = sst [smem:[#allocation14_spill]] %s10151_s6 }
   0x5   :  { %10201 = sst [smem:[#allocation15_spill]] %s10152_s5 }
   0x6   :  { %10202 = sst [smem:[#allocation16_spill]] %s10153_s2 }
   0x7   :  { %10203 = sst [smem:[#allocation17_spill]] %s10154_s3 }
   0x8   :  { %s10204_s29 = sld [smem:[#allocation11_spill]] }
   0x9   :  { %s10205_s24 = sld [smem:[#allocation12_spill]] }
   0xa   :  { %s10206_s23 = sld [smem:[#allocation13_spill]] }
   0xb   :  { %s10208_s6 = sld [smem:[#allocation15_spill]] }
   0xc   :  { %s10209_s5 = sld [smem:[#allocation16_spill]] }
   0xd   :  { %s10210_s25 = sld [smem:[#allocation17_spill]] }
   0xe   :  { %v7890_v0 = vld [vmem:[%s10204_s29 + $0x18] sm:$0xff]   ;;  %v7891_v1 = vld [vmem:[%s10204_s29 + $0x10] sm:$0xff]   ;;  %v7892_v2 = vld [vmem:[%s10204_s29 + $0x8] sm:$0xff]  }
   0xf   :  { %7717 = vmatprep.subr.bf16.mxu0 %v7890_v0  ;;  %v76_v3 = vld [vmem:[%s10205_s24] sm:$0xff]  ;;  %v77_v4 = vld [vmem:[%s10205_s24 + $0x8] sm:$0xff]  ;;  %v78_v7 = vld [vmem:[%s10205_s24 + $0x10] sm:$0xff] }
  0x10   :  { %7718 = vmatpush3.bf16.msra.mxu0 %v7890_v0  ;;  %v88_v5 = vpack.c.bf16 %v77_v4, %v76_v3  ;;  %v7893_v6 = vld [vmem:[%s10204_s29] sm:$0xff]   ;;  %v79_v8 = vld [vmem:[%s10205_s24 + $0x18] sm:$0xff]  ;;  %v7894_v10 = vld [vmem:[%s10206_s23 + $0x8] sm:$0xff]   ;;  %s10207_s29 = sld [smem:[#allocation14_spill]] }
  0x11   :  { %7719 = vmatprep.subr.bf16.mxu0 %v7891_v1  ;;  %v89_v9 = vpack.c.bf16 %v79_v8, %v78_v7  ;;  %7729 = vmatprep.subr.bf16.mxu1 %v7894_v10  ;;  %v7896_v12 = vld [vmem:[%s10206_s23] sm:$0xff]   ;;  %v7898_v14 = vld [vmem:[%s10208_s6 + $0x8] sm:$0xff]  }
  0x12   :  { %7725 = vmatprep.mubr.msk.bf16.mxu0 %vm121_vm0, %v88_v5  ;;  %7730 = vmatpush3.bf16.msra.mxu1 %v7894_v10  ;;  %v6434_v18 = vld [vmem:[%s10209_s5] ss:$0 sm:$0xff] }
  0x13   :  { %7731 = vmatprep.subr.bf16.mxu1 %v7896_v12  ;;  %v7899_v26 = vld [vmem:[%s10208_s6] sm:$0xff]   ;;  %v75_v27 = vld [vmem:[%s10210_s25 + $0x18] sm:$0xff]  ;;  %v74_v28 = vld [vmem:[%s10210_s25 + $0x10] sm:$0xff] }
  0x14   :  { %7720 = vmatpush3.bf16.msra.mxu0 %v7891_v1  ;;  %v73_v29 = vld [vmem:[%s10210_s25 + $0x8] sm:$0xff]  ;;  %v72_v30 = vld [vmem:[%s10210_s25] sm:$0xff] }
  0x15   :  { %7721 = vmatprep.subr.bf16.mxu0 %v7892_v2 }
  0x16   :  { %v7895_v11 = vld [vmem:[%s10207_s29 + $0x8] sm:$0xff]   ;;  %v7897_v13 = vld [vmem:[%s10207_s29] sm:$0xff]   ;;  %7732 = vmatpush3.bf16.msra.mxu1 %v7896_v12 }
  0x17   :  { %7737 = vmatprep.subr.bf16.mxu1 %v7898_v14 }
  0x18   :  { %7722 = vmatpush3.bf16.msra.mxu0 %v7892_v2 }
  0x19   :  { %7723 = vmatprep.subr.bf16.mxu0 %v7893_v6 }
  0x1c   :  { %7724 = vmatpush3.bf16.msra.mxu0 %v7893_v6 }
  0x1d   :  { %7745 = vmatprep.subr.bf16.mxu0 %v7895_v11 }
  0x1f   :  { %7726 = vmatmul.mubr.msk.bf16.vlgmr.msra.gmra.mxu0 %vm121_vm0, %v89_v9 }
  0x20   :  { %7746 = vmatpush3.bf16.msra.mxu0 %v7895_v11 }
  0x21   :  { %7747 = vmatprep.subr.bf16.mxu0 %v7897_v13 }
  0x24   :  { %7748 = vmatpush3.bf16.msra.mxu0 %v7897_v13 }
  0x25   :  { %7764 = vmatprep.subr.mxu0 %v75_v27 }
  0xdf   :  { %v7727_v15 = vpop.f32.mrf.mxu0 }
  0xe0   :  { %v8416_v23 = vadd.f32 %v7727_v15, %v6434_v18 }
  0xe1   :  { %v162_v16 = vpop.f32.mrf.mxu0 }
  0xe2   :  { %v8412_v21 = vadd.f32 %v6434_v18, %v162_v16 }
  0xe3   :  { %v7728_v17 = vpop.f32.mrf.mxu0 }
  0xe4   :  { %v8410_v19 = vadd.f32 %v7728_v17, %v6434_v18 }
  0xe5   :  { %v165_v20 = vpop.f32.mrf.mxu0 }
  0xe6   :  { %v8414_v22 = vadd.f32 %v6434_v18, %v165_v20  ;;  %v182_v25 = vpack.c.bf16 %v8410_v19, %v8416_v23 }
  0xe8   :  { %v181_v24 = vpack.c.bf16 %v8414_v22, %v8412_v21 }
  0xea   :  { %7733 = vmatprep.mubr.msk.bf16.mxu1 %vm202_vm1, %v181_v24  ;;  %7749 = vmatprep.mubr.msk.bf16.mxu0 %vm202_vm1, %v181_v24 }
  0xeb   :  { %7734 = vmatmul.mubr.msk.bf16.vlgmr.msra.gmra.mxu1 %vm202_vm1, %v182_v25  ;;  %7750 = vmatmul.mubr.msk.bf16.vlgmr.msra.gmra.mxu0 %vm202_vm1, %v182_v25 }
  0xec   :  { %7738 = vmatpush3.bf16.msra.mxu1 %v7898_v14  ;;  %7741 = vmatprep.mubr.msk.bf16.mxu1 %vm202_vm1, %v181_v24 }
  0xed   :  { %7739 = vmatprep.subr.bf16.mxu1 %v7899_v26  ;;  %7765 = vmatpush3.msra.mxu0 %v75_v27 }
  0xee   :  { %7766 = vmatprep.subr.mxu0 %v74_v28 }
  0xef   :  { %7767 = vmatpush3.msra.mxu0 %v74_v28 }
  0xf0   :  { %7740 = vmatpush3.bf16.msra.mxu1 %v7899_v26  ;;  %7768 = vmatprep.subr.mxu0 %v73_v29 }
  0xf1   :  { %7753 = vmatprep.subr.mxu1 %v75_v27  ;;  %7769 = vmatpush3.msra.mxu0 %v73_v29 }
  0xf2   :  { %7770 = vmatprep.subr.mxu0 %v72_v30 }
  0xf3   :  { %7742 = vmatmul.mubr.msk.bf16.vlgmr.msra.gmra.mxu1 %vm202_vm1, %v182_v25  ;;  %7771 = vmatpush3.msra.mxu0 %v72_v30 }
  0xf4   :  { %7754 = vmatpush3.msra.mxu1 %v75_v27  ;;  %7786 = vmatprep.subr.mxu0 %v75_v27 }
  0xf5   :  { %7755 = vmatprep.subr.mxu1 %v74_v28 }
  0xf6   :  { %7756 = vmatpush3.msra.mxu1 %v74_v28 }
  0xf7   :  { %7757 = vmatprep.subr.mxu1 %v73_v29 }
  0xf8   :  { %7758 = vmatpush3.msra.mxu1 %v73_v29 }
  0xf9   :  { %7759 = vmatprep.subr.mxu1 %v72_v30 }
  0xfa   :  { %7760 = vmatpush3.msra.mxu1 %v72_v30 }
  0xfb   :  { %7775 = vmatprep.subr.mxu1 %v75_v27 }
 0x1ab   :  { %v7735_v31 = vpop.f32.mrf.mxu1  ;;  %v8463_v59 = vpop.f32.mrf.mxu0 }
 0x1ac   :  { %v252_v47 = vadd.f32 %v7735_v31, %v6441_v36 }
 0x1ad   :  { %v243_v32 = vpop.f32.mrf.mxu1  ;;  %v8465_v60 = vpop.f32.mrf.mxu0 }
 0x1ae   :  { %v244_v38 = vadd.f32 %v6441_v36, %v243_v32 }
 0x1af   :  { %v7736_v33 = vpop.f32.mrf.mxu1  ;;  %v7752_v61 = vpop.f32.mrf.mxu0 }
 0x1b0   :  { %v255_v54 = vadd.f32 %v7736_v33, %v6441_v36 }
 0x1b1   :  { %v246_v34 = vpop.f32.mrf.mxu1  ;;  %v390_v62 = vpop.f32.mrf.mxu0 }
 0x1b2   :  { %v247_v44 = vadd.f32 %v6441_v36, %v246_v34 }
 0x1b3   :  { %v7743_v37 = vpop.f32.mrf.mxu1 }
 0x1b4   :  { %v324_v39 = vadd.f32 %v7743_v37, %v6446_v35 }
 0x1b5   :  { %v315_v40 = vpop.f32.mrf.mxu1 }
 0x1b6   :  { %v485_v41 = vmul.f32 %v324_v39, %v244_v38  ;;  %v316_v42 = vadd.f32 %v6446_v35, %v315_v40  ;;  %v679_v51 = vmul.f32 %v324_v39, %v252_v47 }
 0x1b7   :  { %v7744_v43 = vpop.f32.mrf.mxu1 }
 0x1b8   :  { %v402_v45 = vmul.f32 %v316_v42, %v244_v38  ;;  %v327_v46 = vadd.f32 %v7744_v43, %v6446_v35  ;;  %7772 = vmatprep.mubr.msk.f32.mxu0 %vm202_vm1, %v485_v41  ;;  %v596_v53 = vmul.f32 %v316_v42, %v252_v47  ;;  %v6451_v43 = vld [vmem:[%s10158_s12] ss:$0 sm:$0xff] }
 0x1b9   :  { %v318_v48 = vpop.f32.mrf.mxu1 }
 0x1ba   :  { %v486_v49 = vmul.f32 %v327_v46, %v247_v44  ;;  %v319_v50 = vadd.f32 %v6446_v35, %v318_v48  ;;  %7761 = vmatprep.mubr.msk.f32.mxu1 %vm202_vm1, %v402_v45  ;;  %v680_v55 = vmul.f32 %v327_v46, %v255_v54  ;;  %v399_v45 = vadd.f32 %v7752_v61, %v6451_v43 }
 0x1bb   :  { %v391_v46 = vadd.f32 %v6451_v43, %v390_v62 }
 0x1bc   :  { %v403_v52 = vmul.f32 %v319_v50, %v247_v44  ;;  %7773 = vmatmul.mubr.msk.f32.vlgmr.msra.gmra.mxu0 %vm202_vm1, %v486_v49  ;;  %v597_v56 = vmul.f32 %v319_v50, %v255_v54  ;;  %v396_v50 = vadd.f32 %v8463_v59, %v6451_v43 }
 0x1bd   :  { %7787 = vmatpush3.msra.mxu0 %v75_v27  ;;  %7794 = vmatprep.mubr.msk.f32.mxu0 %vm202_vm1, %v679_v51  ;;  %v388_v51 = vadd.f32 %v6451_v43, %v8465_v60 }
 0x1be   :  { %7788 = vmatprep.subr.mxu0 %v74_v28  ;;  %7762 = vmatmul.mubr.msk.f32.vlgmr.msra.gmra.mxu1 %vm202_vm1, %v403_v52 }
 0x1bf   :  { %7776 = vmatpush3.msra.mxu1 %v75_v27  ;;  %7789 = vmatpush3.msra.mxu0 %v74_v28 }
 0x1c0   :  { %7777 = vmatprep.subr.mxu1 %v74_v28  ;;  %7783 = vmatprep.mubr.msk.f32.mxu1 %vm202_vm1, %v596_v53 }
 0x1c1   :  { %7790 = vmatprep.subr.mxu0 %v73_v29  ;;  %7778 = vmatpush3.msra.mxu1 %v74_v28 }
 0x1c2   :  { %7791 = vmatpush3.msra.mxu0 %v73_v29  ;;  %7779 = vmatprep.subr.mxu1 %v73_v29 }
 0x1c3   :  { %7792 = vmatprep.subr.mxu0 %v72_v30  ;;  %7780 = vmatpush3.msra.mxu1 %v73_v29 }
 0x1c4   :  { %7793 = vmatpush3.msra.mxu0 %v72_v30  ;;  %7781 = vmatprep.subr.mxu1 %v72_v30 }
 0x1c5   :  { %7795 = vmatmul.mubr.msk.f32.vlgmr.msra.gmra.mxu0 %vm202_vm1, %v680_v55  ;;  %7782 = vmatpush3.msra.mxu1 %v72_v30 }
 0x1c6   :  { %7784 = vmatmul.mubr.msk.f32.vlgmr.msra.gmra.mxu1 %vm202_vm1, %v597_v56  ;;  %7797 = vmatprep.subr.bf16.mxu1 %v7900_v57 }
 0x1c7   :  { %7798 = vmatpush3.bf16.msra.mxu1 %v7900_v57 }
 0x1c8   :  { %7799 = vmatprep.subr.bf16.mxu1 %v7901_v58 }
 0x1cb   :  { %7800 = vmatpush3.bf16.msra.mxu1 %v7901_v58 }
 0x27c   :  { %v7774_v63 = vpop.f32.mrf.mxu0 }
 0x27e   :  { %v7763_v0 = vpop.f32.mrf.mxu1  ;;  %v559_v2 = vpop.f32.mrf.mxu0 }
 0x27f   :  { %v569_v1 = vmax.f32 %v7763_v0, %v7774_v63 }
 0x280   :  { %v476_v3 = vpop.f32.mrf.mxu1 }
 0x281   :  { %v571_v4 = vsub.f32 %v7763_v0, %v569_v1  ;;  %v577_v5 = vsub.f32 %v7774_v63, %v569_v1  ;;  %v568_v6 = vmax.f32 %v476_v3, %v559_v2 }
 0x283   :  { %v574_v7 = vmul.f32 1.442695, %v571_v4  ;;  %v580_v8 = vmul.f32 1.442695, %v577_v5  ;;  %v570_v9 = vsub.f32 %v476_v3, %v568_v6  ;;  %v576_v10 = vsub.f32 %v559_v2, %v568_v6 }
 0x285   :  { %8168 = vpow2.f32 %v574_v7  ;;  %v572_v11 = vmul.f32 1.442695, %v570_v9  ;;  %v578_v12 = vmul.f32 1.442695, %v576_v10  ;;  %v7796_v13 = vpop.f32.mrf.mxu0  ;;  %v6464_v10 = vld [vmem:[%s10159_s13] ss:$0 sm:$0xff] }
 0x286   :  { %8170 = vpow2.f32 %v580_v8  ;;  %v7785_v14 = vpop.f32.mrf.mxu1 }
 0x287   :  { %8172 = vpow2.f32 %v572_v11  ;;  %v763_v15 = vmax.f32 %v7785_v14, %v7796_v13  ;;  %v753_v16 = vpop.f32.mrf.mxu0 }
 0x288   :  { %8174 = vpow2.f32 %v578_v12  ;;  %v670_v17 = vpop.f32.mrf.mxu1 }
 0x289   :  { %v765_v18 = vsub.f32 %v7785_v14, %v763_v15  ;;  %v771_v20 = vsub.f32 %v7796_v13, %v763_v15  ;;  %v762_v24 = vmax.f32 %v670_v17, %v753_v16 }
 0x28b   :  { %v768_v25 = vmul.f32 1.442695, %v765_v18  ;;  %v774_v26 = vmul.f32 1.442695, %v771_v20  ;;  %v764_v27 = vsub.f32 %v670_v17, %v762_v24  ;;  %v770_v28 = vsub.f32 %v753_v16, %v762_v24 }
 0x28d   :  { %8176 = vpow2.f32 %v768_v25  ;;  %v766_v29 = vmul.f32 1.442695, %v764_v27  ;;  %v772_v30 = vmul.f32 1.442695, %v770_v28 }
 0x28e   :  { %8178 = vpow2.f32 %v774_v26 }
 0x28f   :  { %8180 = vpow2.f32 %v766_v29 }
 0x290   :  { %8182 = vpow2.f32 %v772_v30 }
 0x292   :  { %v8169_v31 = vpop.eup %8168 }
 0x293   :  { %v8171_v32 = vpop.eup %8170 }
 0x294   :  { %v8173_v33 = vpop.eup %8172  ;;  %v583_v34 = vadd.f32 %v8171_v32, %v8169_v31 }
 0x295   :  { %v8175_v35 = vpop.eup %8174 }
 0x296   :  { %8184 = vrcp.f32 %v583_v34  ;;  %v582_v36 = vadd.f32 %v8175_v35, %v8173_v33 }
 0x298   :  { %8186 = vrcp.f32 %v582_v36 }
 0x29a   :  { %v8177_v37 = vpop.eup %8176 }
 0x29b   :  { %v8179_v38 = vpop.eup %8178 }
 0x29c   :  { %v8181_v39 = vpop.eup %8180  ;;  %v777_v40 = vadd.f32 %v8179_v38, %v8177_v37 }
 0x29d   :  { %v8183_v41 = vpop.eup %8182 }
 0x29e   :  { %8188 = vrcp.f32 %v777_v40  ;;  %v776_v42 = vadd.f32 %v8183_v41, %v8181_v39 }
 0x2a0   :  { %8190 = vrcp.f32 %v776_v42 }
 0x2a3   :  { %v8185_v44 = vpop.eup %8184 }
 0x2a4   :  { %v587_v47 = vmul.f32 %v8185_v44, %v8169_v31  ;;  %v591_v48 = vmul.f32 %v8185_v44, %v8171_v32 }
 0x2a5   :  { %v8187_v49 = vpop.eup %8186 }
 0x2a6   :  { %v586_v52 = vmul.f32 %v8187_v49, %v8173_v33  ;;  %v589_v53 = vmul.f32 %v587_v47, %v391_v46  ;;  %v590_v54 = vmul.f32 %v8187_v49, %v8175_v35  ;;  %v593_v55 = vmul.f32 %v591_v48, %v399_v45  ;;  %v965_v47 = vld [vmem:[%s10160_s8 + $0x80] sm:$0xff]  ;;  %v966_v49 = vld [vmem:[%s10160_s8 + $0x88] sm:$0xff] }
 0x2a7   :  { %v973_v48 = vld [vmem:[%s10160_s8 + $0xc0] sm:$0xff] }
 0x2a8   :  { %v588_v56 = vmul.f32 %v586_v52, %v388_v51  ;;  %v592_v57 = vmul.f32 %v590_v54, %v396_v50  ;;  %v595_v63 = vadd.f32 %v593_v55, %v589_v53  ;;  %v6487_v52 = vcombine.low %v965_v47, %v973_v48  ;;  %v949_v55 = vld [vmem:[%s10160_s8] sm:$0xff] }
 0x2aa   :  { %v594_v58 = vadd.f32 %v592_v57, %v588_v56  ;;  %v957_v56 = vld [vmem:[%s10160_s8 + $0x40] sm:$0xff]  ;;  %v950_v57 = vld [vmem:[%s10160_s8 + $0x8] sm:$0xff] }
 0x2ab   :  { %v8189_v0 = vpop.eup %8188 }
 0x2ac   :  { %v781_v1 = vmul.f32 %v8189_v0, %v8177_v37  ;;  %v794_v2 = vpack.c.bf16 %v595_v63, %v594_v58  ;;  %v785_v61 = vmul.f32 %v8189_v0, %v8179_v38  ;;  %v6472_v58 = vcombine.high %v949_v55, %v957_v56  ;;  %v958_v63 = vld [vmem:[%s10160_s8 + $0x48] sm:$0xff] }
 0x2ad   :  { %v8191_v62 = vpop.eup %8190  ;;  %v6471_v0 = vcombine.low %v949_v55, %v957_v56  ;;  %v961_v55 = vld [vmem:[%s10160_s8 + $0x60] sm:$0xff]  ;;  %v954_v56 = vld [vmem:[%s10160_s8 + $0x28] sm:$0xff] }
 0x2ae   :  { %7801 = vmatprep.mubr.msk.bf16.mxu1 %vm202_vm1, %v794_v2  ;;  %v780_v3 = vmul.f32 %v8191_v62, %v8181_v39  ;;  %v783_v4 = vmul.f32 %v781_v1, %v391_v46  ;;  %v784_v59 = vmul.f32 %v8191_v62, %v8183_v41  ;;  %v787_v5 = vmul.f32 %v785_v61, %v399_v45  ;;  %v967_v62 = vld [vmem:[%s10160_s8 + $0x90] sm:$0xff] }
 0x2af   :  { %v6473_v1 = vcombine.low %v950_v57, %v958_v63  ;;  %v6474_v2 = vcombine.high %v950_v57, %v958_v63  ;;  %v10177_v61 = vmov 0   ;;  %v962_v57 = vld [vmem:[%s10160_s8 + $0x68] sm:$0xff] }
 0x2b0   :  { %v782_v60 = vmul.f32 %v780_v3, %v388_v51  ;;  %v786_v6 = vmul.f32 %v784_v59, %v396_v50  ;;  %v789_v8 = vadd.f32 %v787_v5, %v783_v4  ;;  %v6488_v50 = vcombine.high %v965_v47, %v973_v48  ;;  %v974_v51 = vld [vmem:[%s10160_s8 + $0xc8] sm:$0xff]  ;;  %1265 = vmatprep.mubr.bf16.mxu0 %v10177_v61  ;;  %v975_v3 = vld [vmem:[%s10160_s8 + $0xd0] sm:$0xff]  ;;  %v968_v4 = vld [vmem:[%s10160_s8 + $0x98] sm:$0xff] }
 0x2b1   :  { %v6489_v53 = vcombine.low %v966_v49, %v974_v51  ;;  %v6490_v54 = vcombine.high %v966_v49, %v974_v51  ;;  %v6492_v59 = vcombine.high %v967_v62, %v975_v3  ;;  %v976_v5 = vld [vmem:[%s10160_s8 + $0xd8] sm:$0xff] }
 0x2b2   :  { %v788_v7 = vadd.f32 %v786_v6, %v782_v60  ;;  %1245 = vmatprep.subr.bf16.mxu0 %v6488_v50  ;;  %v6491_v60 = vcombine.low %v967_v62, %v975_v3  ;;  %v6493_v6 = vcombine.low %v968_v4, %v976_v5  ;;  %v980_v62 = vld [vmem:[%s10160_s8 + $0xf8] sm:$0xff] }
 0x2b3   :  { %1298 = vmatprep.subr.bf16.mxu1 %v6490_v54  ;;  %1246 = vmatpush1.bf16.msra.mxu0 %v6487_v52  ;;  %v953_v54 = vld [vmem:[%s10160_s8 + $0x20] sm:$0xff] }
 0x2b4   :  { %v795_v9 = vpack.c.bf16 %v789_v8, %v788_v7  ;;  %1247 = vmatprep.subr.bf16.mxu0 %v6472_v58  ;;  %v6494_v7 = vcombine.high %v968_v4, %v976_v5  ;;  %v6480_v3 = vcombine.high %v953_v54, %v961_v55  ;;  %v6482_v4 = vcombine.high %v954_v56, %v962_v57 }
 0x2b5   :  { %v6481_v5 = vcombine.low %v954_v56, %v962_v57 }
 0x2b6   :  { %7802 = vmatmul.mubr.msk.bf16.vlgmr.msra.gmra.mxu1 %vm202_vm1, %v795_v9 }
 0x2b7   :  { %1299 = vmatpush1.bf16.msra.mxu1 %v6489_v53  ;;  %1248 = vmatpush1.bf16.msra.mxu0 %v6471_v0  ;;  %v971_v0 = vld [vmem:[%s10160_s8 + $0xb0] sm:$0xff] }
 0x2b8   :  { %1300 = vmatprep.subr.bf16.mxu1 %v6474_v2  ;;  %1318 = vmatprep.mubr.bf16.mxu1 %v10177_v61  ;;  %v972_v2 = vld [vmem:[%s10160_s8 + $0xb8] sm:$0xff] }
 0x2b9   :  { %1351 = vmatprep.subr.bf16.mxu0 %v6492_v59  ;;  %v6479_v59 = vcombine.low %v953_v54, %v961_v55  ;;  %v7935_v54 = vld [vmem:[%s10161_s9 + $0x1f8] sm:$0xff]   ;;  %v987_v55 = vlaneseq }
 0x2bb   :  { %1301 = vmatpush1.bf16.msra.mxu1 %v6473_v1  ;;  %v979_v1 = vld [vmem:[%s10160_s8 + $0xf0] sm:$0xff]  ;;  %v8777_v56 = vshrl.u32 %v987_v55, 7 }
 0x2bc   :  { %1404 = vmatprep.subr.bf16.mxu1 %v6494_v7  ;;  %v955_v7 = vld [vmem:[%s10160_s8 + $0x30] sm:$0xff] }
 0x2bd   :  { %v8780_v57 = vsub.s32 1, %v8777_v56 }
 0x2bf   :  { %10212 = vst [vmem:[#allocation3_spill] sm:$0xff] %v8780_v57 }
 0x376   :  { %v7803_v11 = vpop.f32.mrf.mxu1 }
 0x377   :  { %v864_v12 = vadd.f32 %v7803_v11, %v6464_v10 }
 0x378   :  { %v855_v13 = vpop.f32.mrf.mxu1 }
 0x379   :  { %v856_v14 = vadd.f32 %v6464_v10, %v855_v13  ;;  %v872_v15 = vadd.f32 %v864_v12, %v8416_v23 }
 0x37a   :  { %v7804_v16 = vpop.f32.mrf.mxu1 }
 0x37b   :  { %v867_v17 = vadd.f32 %v7804_v16, %v6464_v10  ;;  %v882_v18 = vsel %vm202_vm1, %v872_v15, 0.0  ;;  %v870_v20 = vadd.f32 %v856_v14, %v8412_v21 }
 0x37c   :  { %883 = vadd.xlane.f32.xlu1 %v882_v18  ;;  %v858_v24 = vpop.f32.mrf.mxu1 }
 0x37d   :  { %v859_v25 = vadd.f32 %v6464_v10, %v858_v24  ;;  %v876_v26 = vsel %vm202_vm1, %v870_v20, 0.0  ;;  %v873_v27 = vadd.f32 %v867_v17, %v8410_v19 }
 0x37e   :  { %877 = vadd.xlane.f32.xlu0 %v876_v26 }
 0x37f   :  { %v885_v28 = vsel %vm202_vm1, %v873_v27, 0.0  ;;  %v871_v29 = vadd.f32 %v859_v25, %v8414_v22  ;;  %v6469_v25 = vld [vmem:[%s10162_s16] ss:$0 sm:$0xff] }
 0x380   :  { %886 = vadd.xlane.f32.xlu1 %v885_v28  ;;  %v6470_v28 = vld [vmem:[%s10163_s17] ss:$0 sm:$0xff] }
 0x381   :  { %v879_v23 = vsel %vm202_vm1, %v871_v29, 0.0 }
 0x382   :  { %880 = vadd.xlane.f32.xlu0 %v879_v23 }
 0x405   :  { %v884_v30 = vpop.xlane.xlu1 %883 }
 0x406   :  { %v891_v31 = vmul.f32 0.03125, %v884_v30 }
 0x407   :  { %v878_v32 = vpop.xlane.xlu0 %877 }
 0x408   :  { %v889_v21 = vmul.f32 0.03125, %v878_v32  ;;  %v8485_v34 = vsub.f32 %v872_v15, %v891_v31  ;;  %v951_v32 = vld [vmem:[%s10160_s8 + $0x10] sm:$0xff] }
 0x409   :  { %v887_v33 = vpop.xlane.xlu1 %886 }
 0x40a   :  { %v8487_v35 = vsub.f32 %v870_v20, %v889_v21  ;;  %v892_v36 = vmul.f32 0.03125, %v887_v33  ;;  %v899_v41 = vmul.f32 %v8485_v34, %v8485_v34  ;;  %v959_v21 = vld [vmem:[%s10160_s8 + $0x50] sm:$0xff]  ;;  %v952_v33 = vld [vmem:[%s10160_s8 + $0x18] sm:$0xff] }
 0x40b   :  { %v881_v19 = vpop.xlane.xlu0 %880  ;;  %v6475_v48 = vcombine.low %v951_v32, %v959_v21 }
 0x40c   :  { %v890_v37 = vmul.f32 0.03125, %v881_v19  ;;  %v897_v38 = vmul.f32 %v8487_v35, %v8487_v35  ;;  %v8491_v22 = vsub.f32 %v873_v27, %v892_v36  ;;  %v907_v43 = vsel %vm202_vm1, %v899_v41, 0.0 }
 0x40e   :  { %v8493_v39 = vsub.f32 %v871_v29, %v890_v37  ;;  %v901_v40 = vsel %vm202_vm1, %v897_v38, 0.0  ;;  %v900_v45 = vmul.f32 %v8491_v22, %v8491_v22 }
 0x40f   :  { %902 = vadd.xlane.f32.xlu0 %v901_v40 }
 0x410   :  { %v898_v42 = vmul.f32 %v8493_v39, %v8493_v39  ;;  %v910_v46 = vsel %vm202_vm1, %v900_v45, 0.0 }
 0x412   :  { %v904_v44 = vsel %vm202_vm1, %v898_v42, 0.0  ;;  %v969_v42 = vld [vmem:[%s10160_s8 + $0xa0] sm:$0xff] }
 0x413   :  { %908 = vadd.xlane.f32.xlu0 %v907_v43  ;;  %905 = vadd.xlane.f32.xlu1 %v904_v44  ;;  %v977_v43 = vld [vmem:[%s10160_s8 + $0xe0] sm:$0xff]  ;;  %v970_v44 = vld [vmem:[%s10160_s8 + $0xa8] sm:$0xff] }
 0x414   :  { %v6496_v50 = vcombine.high %v969_v42, %v977_v43  ;;  %v6495_v58 = vcombine.low %v969_v42, %v977_v43  ;;  %v7923_v42 = vld [vmem:[%s10161_s9 + $0xd0] sm:$0xff]  }
 0x415   :  { %v7924_v43 = vld [vmem:[%s10161_s9 + $0x10] sm:$0xff]  }
 0x417   :  { %911 = vadd.xlane.f32.xlu1 %v910_v46 }
 0x498   :  { %v903_v8 = vpop.xlane.xlu0 %902 }
 0x499   :  { %v913_v9 = vmul.f32 0.03125, %v903_v8  ;;  %v963_v8 = vld [vmem:[%s10160_s8 + $0x70] sm:$0xff] }
 0x49b   :  { %v917_v10 = vadd.f32 1e-05, %v913_v9  ;;  %v956_v9 = vld [vmem:[%s10160_s8 + $0x38] sm:$0xff] }
 0x49c   :  { %v906_v11 = vpop.xlane.xlu1 %905  ;;  %v909_v12 = vpop.xlane.xlu0 %908 }
 0x49d   :  { %8192 = vrsqrt.f32 %v917_v10  ;;  %v914_v13 = vmul.f32 0.03125, %v906_v11  ;;  %v915_v14 = vmul.f32 0.03125, %v909_v12  ;;  %v964_v10 = vld [vmem:[%s10160_s8 + $0x78] sm:$0xff]  ;;  %v6499_v11 = vcombine.low %v971_v0, %v979_v1 }
 0x49e   :  { %v6501_v12 = vcombine.low %v972_v2, %v980_v62 }
 0x49f   :  { %v918_v15 = vadd.f32 1e-05, %v914_v13  ;;  %v919_v16 = vadd.f32 1e-05, %v915_v14  ;;  %v6484_v13 = vcombine.high %v955_v7, %v963_v8  ;;  %v6486_v14 = vcombine.high %v956_v9, %v964_v10 }
 0x4a0   :  { %v912_v17 = vpop.xlane.xlu1 %911 }
 0x4a1   :  { %8194 = vrsqrt.f32 %v918_v15  ;;  %v916_v18 = vmul.f32 0.03125, %v912_v17  ;;  %v7902_v15 = vld [vmem:[%s10161_s9 + $0x78] sm:$0xff]   ;;  %v6483_v17 = vcombine.low %v955_v7, %v963_v8 }
 0x4a2   :  { %8196 = vrsqrt.f32 %v919_v16  ;;  %v7903_v16 = vld [vmem:[%s10161_s9 + $0xf8] sm:$0xff]  }
 0x4a3   :  { %v920_v20 = vadd.f32 1e-05, %v916_v18  ;;  %v6485_v18 = vcombine.low %v956_v9, %v964_v10 }
 0x4a5   :  { %8198 = vrsqrt.f32 %v920_v20  ;;  %v7904_v20 = vld [vmem:[%s10161_s9 + $0x38] sm:$0xff]  }
 0x4aa   :  { %v8193_v24 = vpop.eup %8192 }
 0x4ab   :  { %v925_v26 = vmul.f32 %v8193_v24, %v8487_v35  ;;  %v960_v35 = vld [vmem:[%s10160_s8 + $0x58] sm:$0xff] }
 0x4ac   :  { %v6478_v45 = vcombine.high %v952_v33, %v960_v35  ;;  %v6477_v49 = vcombine.low %v952_v33, %v960_v35  ;;  %v7905_v24 = vld [vmem:[%s10161_s9 + $0xb8] sm:$0xff]   ;;  %v7916_v33 = vld [vmem:[%s10161_s9 + $0x20] sm:$0xff]  }
 0x4ad   :  { %v935_v29 = vmul.f32 %v6469_v25, %v925_v26  ;;  %v7907_v26 = vld [vmem:[%s10161_s9 + $0xf0] sm:$0xff]   ;;  %v7917_v35 = vld [vmem:[%s10161_s9 + $0xa0] sm:$0xff]  }
 0x4ae   :  { %v8195_v27 = vpop.eup %8194 }
 0x4af   :  { %v926_v23 = vmul.f32 %v8195_v27, %v8493_v39  ;;  %v8197_v30 = vpop.eup %8196  ;;  %v8563_v19 = vadd.f32 %v6470_v28, %v935_v29  ;;  %v7908_v27 = vld [vmem:[%s10161_s9 + $0x30] sm:$0xff]   ;;  %v7910_v29 = vld [vmem:[%s10161_s9 + $0x68] sm:$0xff]  }
 0x4b0   :  { %v927_v38 = vmul.f32 %v8197_v30, %v8485_v34  ;;  %v978_v34 = vld [vmem:[%s10160_s8 + $0xe8] sm:$0xff] }
 0x4b1   :  { %v936_v31 = vmul.f32 %v6469_v25, %v926_v23  ;;  %v6498_v51 = vcombine.high %v970_v44, %v978_v34  ;;  %v6497_v63 = vcombine.low %v970_v44, %v978_v34  ;;  %v7911_v23 = vld [vmem:[%s10161_s9 + $0xe8] sm:$0xff]   ;;  %v7925_v44 = vld [vmem:[%s10161_s9 + $0x90] sm:$0xff]  }
 0x4b2   :  { %v8199_v36 = vpop.eup %8198  ;;  %v937_v46 = vmul.f32 %v6469_v25, %v927_v38  ;;  %v7912_v30 = vld [vmem:[%s10161_s9 + $0x28] sm:$0xff]   ;;  %v7919_v38 = vld [vmem:[%s10161_s9 + $0xd8] sm:$0xff]  }
 0x4b3   :  { %v8565_v37 = vadd.f32 %v6470_v28, %v936_v31  ;;  %v928_v39 = vmul.f32 %v8199_v36, %v8491_v22  ;;  %v6476_v22 = vcombine.high %v951_v32, %v959_v21  ;;  %v7913_v31 = vld [vmem:[%s10161_s9 + $0xa8] sm:$0xff]   ;;  %v7914_v32 = vld [vmem:[%s10161_s9 + $0x60] sm:$0xff]   ;;  %v7918_v36 = vld [vmem:[%s10161_s9 + $0x58] sm:$0xff]  }
 0x4b4   :  { %v8593_v52 = vadd.f32 %v6470_v28, %v937_v46  ;;  %v7915_v21 = vld [vmem:[%s10161_s9 + $0xe0] sm:$0xff]   ;;  %v7926_v34 = vld [vmem:[%s10161_s9 + $0x48] sm:$0xff]  }
 0x4b5   :  { %v8571_v40 = vpack.c.bf16 %v8565_v37, %v8563_v19  ;;  %v938_v41 = vmul.f32 %v6469_v25, %v928_v39  ;;  %v7906_v25 = vld [vmem:[%s10161_s9 + $0x70] sm:$0xff]   ;;  %v7920_v39 = vld [vmem:[%s10161_s9 + $0x18] sm:$0xff]   ;;  %v7929_v46 = vld [vmem:[%s10161_s9 + $0x88] sm:$0xff]  }
 0x4b7   :  { %6503 = vmatmul.mubr.msk.bf16.vlgmr.msra.gmra.mxu0 %vm202_vm1, %v8571_v40  ;;  %6505 = vmatmul.mubr.msk.bf16.vlgmr.msra.gmra.mxu1 %vm202_vm1, %v8571_v40  ;;  %v8591_v47 = vadd.f32 %v6470_v28, %v938_v41  ;;  %v7909_v28 = vld [vmem:[%s10161_s9 + $0xb0] sm:$0xff]  }
 0x4b8   :  { %1275 = vmatprep.mubr.bf16.mxu0 %v10177_v61  ;;  %1328 = vmatprep.mubr.bf16.mxu1 %v10177_v61  ;;  %v7922_v41 = vld [vmem:[%s10161_s9 + $0x50] sm:$0xff]  }
 0x4b9   :  { %10211 = vst [vmem:[#allocation2_spill] sm:$0xff] %v8591_v47  ;;  %1352 = vmatpush1.bf16.msra.mxu0 %v6491_v60  ;;  %1405 = vmatpush1.bf16.msra.mxu1 %v6493_v6  ;;  %v8597_v53 = vpack.c.bf16 %v8591_v47, %v8593_v52  ;;  %v6500_v60 = vcombine.high %v971_v0, %v979_v1  ;;  %v8789_v0 = vsub.s32 2, %v8777_v56  ;;  %v8794_v1 = vld [vmem:[%s10164_s14] sm:$0xff] }
 0x4ba   :  { %1353 = vmatprep.subr.bf16.mxu0 %v6476_v22  ;;  %1406 = vmatprep.subr.bf16.mxu1 %v6478_v45  ;;  %v6502_v6 = vcombine.high %v972_v2, %v980_v62  ;;  %v7927_v22 = vld [vmem:[%s10161_s9 + $0xc8] sm:$0xff]  }
 0x4bb   :  { %v7928_v45 = vld [vmem:[%s10161_s9 + $0x8] sm:$0xff]   ;;  %10215 = vst [vmem:[#allocation6_spill] sm:$0xff] %v8789_v0 }
 0x4bd   :  { %1354 = vmatpush1.bf16.msra.mxu0 %v6475_v48  ;;  %1407 = vmatpush1.bf16.msra.mxu1 %v6477_v49  ;;  %v7930_v48 = vld [vmem:[%s10161_s9 + $0x40] sm:$0xff]  }
 0x4be   :  { %1457 = vmatprep.subr.bf16.mxu0 %v6496_v50  ;;  %1510 = vmatprep.subr.bf16.mxu1 %v6498_v51  ;;  %v7931_v49 = vld [vmem:[%s10161_s9 + $0xc0] sm:$0xff]  }
 0x4bf   :  { %6504 = vmatmul.mubr.msk.bf16.gmra.mxu0 %vm202_vm1, %v8597_v53  ;;  %6506 = vmatmul.mubr.msk.bf16.gmra.mxu1 %vm202_vm1, %v8597_v53  ;;  %v7932_v50 = vld [vmem:[%s10161_s9] sm:$0xff]  }
 0x4c0   :  { %1371 = vmatprep.mubr.bf16.mxu0 %v10177_v61  ;;  %1424 = vmatprep.mubr.bf16.mxu1 %v10177_v61  ;;  %v7933_v51 = vld [vmem:[%s10161_s9 + $0x80] sm:$0xff]  }
 0x4c7   :  { %6507 = vmatmul.mubr.msk.bf16.vlgmr.msra.gmra.mxu0 %vm202_vm1, %v8571_v40  ;;  %6509 = vmatmul.mubr.msk.bf16.vlgmr.msra.gmra.mxu1 %vm202_vm1, %v8571_v40 }
 0x4c8   :  { %1381 = vmatprep.mubr.bf16.mxu0 %v10177_v61  ;;  %1434 = vmatprep.mubr.bf16.mxu1 %v10177_v61 }
 0x4c9   :  { %1458 = vmatpush1.bf16.msra.mxu0 %v6495_v58  ;;  %1511 = vmatpush1.bf16.msra.mxu1 %v6497_v63  ;;  %v8783_v58 = vsub.s32 3, %v8777_v56  ;;  %v8786_v63 = vsub.s32 0, %v8777_v56 }
 0x4ca   :  { %1459 = vmatprep.subr.bf16.mxu0 %v6480_v3  ;;  %1512 = vmatprep.subr.bf16.mxu1 %v6482_v4  ;;  %v994_v3 = vrot.slane %v8794_v1, %v8780_v57 }
 0x4cb   :  { %10213 = vst [vmem:[#allocation4_spill] sm:$0xff] %v8783_v58  ;;  %10214 = vst [vmem:[#allocation5_spill] sm:$0xff] %v8786_v63  ;;  %v1002_v4 = vrot.slane %v8794_v1, %v8783_v58 }
 0x4cd   :  { %1460 = vmatpush1.bf16.msra.mxu0 %v6479_v59  ;;  %1513 = vmatpush1.bf16.msra.mxu1 %v6481_v5  ;;  %v990_v59 = vrot.slane %v8794_v1, %v8786_v63  ;;  %v998_v5 = vrot.slane %v8794_v1, %v8789_v0 }
 0x4ce   :  { %1563 = vmatprep.subr.bf16.mxu0 %v6500_v60  ;;  %1616 = vmatprep.subr.bf16.mxu1 %v6502_v6 }
 0x4cf   :  { %6508 = vmatmul.mubr.msk.bf16.gmra.mxu0 %vm202_vm1, %v8597_v53  ;;  %6510 = vmatmul.mubr.msk.bf16.gmra.mxu1 %vm202_vm1, %v8597_v53 }
 0x4d0   :  { %1477 = vmatprep.mubr.bf16.mxu0 %v10177_v61  ;;  %1530 = vmatprep.mubr.bf16.mxu1 %v10177_v61 }
 0x4d7   :  { %6511 = vmatmul.mubr.msk.bf16.vlgmr.msra.gmra.mxu0 %vm202_vm1, %v8571_v40  ;;  %6513 = vmatmul.mubr.msk.bf16.vlgmr.msra.gmra.mxu1 %vm202_vm1, %v8571_v40 }
 0x4d8   :  { %1487 = vmatprep.mubr.bf16.mxu0 %v10177_v61  ;;  %1540 = vmatprep.mubr.bf16.mxu1 %v10177_v61 }
 0x4d9   :  { %1564 = vmatpush1.bf16.msra.mxu0 %v6499_v11  ;;  %1617 = vmatpush1.bf16.msra.mxu1 %v6501_v12 }
 0x4da   :  { %1565 = vmatprep.subr.bf16.mxu0 %v6484_v13  ;;  %1618 = vmatprep.subr.bf16.mxu1 %v6486_v14 }
 0x4dd   :  { %1566 = vmatpush1.bf16.msra.mxu0 %v6483_v17  ;;  %1619 = vmatpush1.bf16.msra.mxu1 %v6485_v18 }
 0x4de   :  { %7225 = vmatprep.subr.bf16.mxu0 %v7902_v15  ;;  %7253 = vmatprep.subr.bf16.mxu1 %v7903_v16 }
 0x4df   :  { %6512 = vmatmul.mubr.msk.bf16.gmra.mxu0 %vm202_vm1, %v8597_v53  ;;  %6514 = vmatmul.mubr.msk.bf16.gmra.mxu1 %vm202_vm1, %v8597_v53 }
 0x4e0   :  { %1583 = vmatprep.mubr.bf16.mxu0 %v10177_v61  ;;  %1636 = vmatprep.mubr.bf16.mxu1 %v10177_v61 }
 0x4e7   :  { %6515 = vmatmul.mubr.msk.bf16.vlgmr.msra.gmra.mxu0 %vm202_vm1, %v8571_v40  ;;  %6517 = vmatmul.mubr.msk.bf16.vlgmr.msra.gmra.mxu1 %vm202_vm1, %v8571_v40  ;;  %v7921_v40 = vld [vmem:[%s10161_s9 + $0x98] sm:$0xff]  }
 0x4e8   :  { %1593 = vmatprep.mubr.bf16.mxu0 %v10177_v61  ;;  %1646 = vmatprep.mubr.bf16.mxu1 %v10177_v61 }
 0x4e9   :  { %7226 = vmatpush3.bf16.msra.mxu0 %v7904_v20  ;;  %7254 = vmatpush3.bf16.msra.mxu1 %v7905_v24 }
 0x4ea   :  { %7227 = vmatprep.subr.bf16.mxu0 %v7906_v25  ;;  %7255 = vmatprep.subr.bf16.mxu1 %v7907_v26 }
 0x4ed   :  { %7228 = vmatpush3.bf16.msra.mxu0 %v7908_v27  ;;  %7256 = vmatpush3.bf16.msra.mxu1 %v7909_v28 }
 0x4ee   :  { %7229 = vmatprep.subr.bf16.mxu0 %v7910_v29  ;;  %7257 = vmatprep.subr.bf16.mxu1 %v7911_v23 }
 0x4ef   :  { %6516 = vmatmul.mubr.msk.bf16.gmra.mxu0 %vm202_vm1, %v8597_v53  ;;  %6518 = vmatmul.mubr.msk.bf16.gmra.mxu1 %vm202_vm1, %v8597_v53  ;;  %v7934_v53 = vld [vmem:[%s10161_s9 + $0x178] sm:$0xff]  }
 0x4f1   :  { %7230 = vmatpush3.bf16.msra.mxu0 %v7912_v30  ;;  %7258 = vmatpush3.bf16.msra.mxu1 %v7913_v31 }
 0x4f2   :  { %7231 = vmatprep.subr.bf16.mxu0 %v7914_v32  ;;  %7259 = vmatprep.subr.bf16.mxu1 %v7915_v21 }
 0x4f5   :  { %7232 = vmatpush3.bf16.msra.mxu0 %v7916_v33  ;;  %7260 = vmatpush3.bf16.msra.mxu1 %v7917_v35 }
 0x4f6   :  { %7233 = vmatprep.subr.bf16.mxu0 %v7918_v36  ;;  %7261 = vmatprep.subr.bf16.mxu1 %v7919_v38  ;;  %v7936_v36 = vld [vmem:[%s10161_s9 + $0x138] sm:$0xff]  }
 0x4f7   :  { %v7937_v38 = vld [vmem:[%s10161_s9 + $0x1b8] sm:$0xff]  }
 0x4f9   :  { %7234 = vmatpush3.bf16.msra.mxu0 %v7920_v39  ;;  %7262 = vmatpush3.bf16.msra.mxu1 %v7921_v40 }
 0x4fa   :  { %7235 = vmatprep.subr.bf16.mxu0 %v7922_v41  ;;  %7263 = vmatprep.subr.bf16.mxu1 %v7923_v42 }
 0x4fd   :  { %7236 = vmatpush3.bf16.msra.mxu0 %v7924_v43  ;;  %7264 = vmatpush3.bf16.msra.mxu1 %v7925_v44  ;;  %v7938_v43 = vld [vmem:[%s10161_s9 + $0x170] sm:$0xff]  }
 0x4fe   :  { %7237 = vmatprep.subr.bf16.mxu0 %v7926_v34  ;;  %7265 = vmatprep.subr.bf16.mxu1 %v7927_v22  ;;  %v7939_v44 = vld [vmem:[%s10161_s9 + $0x1f0] sm:$0xff]   ;;  %v8817_v34 = vsub.s32 5, %v8777_v56  ;;  %v8820_v22 = vsub.s32 7, %v8777_v56 }
 0x500   :  { %10216 = vst [vmem:[#allocation7_spill] sm:$0xff] %v8817_v34  ;;  %10217 = vst [vmem:[#allocation8_spill] sm:$0xff] %v8820_v22 }
 0x501   :  { %7238 = vmatpush3.bf16.msra.mxu0 %v7928_v45  ;;  %7266 = vmatpush3.bf16.msra.mxu1 %v7929_v46 }
 0x502   :  { %7239 = vmatprep.subr.bf16.mxu0 %v7930_v48  ;;  %7267 = vmatprep.subr.bf16.mxu1 %v7931_v49 }
 0x505   :  { %7240 = vmatpush3.bf16.msra.mxu0 %v7932_v50  ;;  %7268 = vmatpush3.bf16.msra.mxu1 %v7933_v51 }
 0x506   :  { %7281 = vmatprep.subr.bf16.mxu0 %v7934_v53  ;;  %7309 = vmatprep.subr.bf16.mxu1 %v7935_v54 }
 0x577   :  { %v1267_v2 = vpop.f32.mrf.mxu0  ;;  %v1320_v62 = vpop.f32.mrf.mxu1 }
 0x578   :  { %v1268_v13 = vadd.f32 %v1267_v2, %v990_v59  ;;  %v1321_v14 = vadd.f32 %v1320_v62, %v998_v5  ;;  %v7940_v62 = vld [vmem:[%s10161_s9 + $0x130] sm:$0xff]  }
 0x579   :  { %v1269_v60 = vpop.f32.mrf.mxu0  ;;  %v1322_v6 = vpop.f32.mrf.mxu1 }
 0x57a   :  { %v1270_v9 = vadd.f32 %v1269_v60, %v994_v3  ;;  %v1323_v10 = vadd.f32 %v1322_v6, %v1002_v4  ;;  %v1657_v30 = vmax.f32 %v1268_v13, 0.0  ;;  %v1659_v31 = vmax.f32 %v1321_v14, 0.0  ;;  %v7941_v60 = vld [vmem:[%s10161_s9 + $0x1b0] sm:$0xff]  }
 0x57b   :  { %v1271_v7 = vpop.f32.mrf.mxu0  ;;  %v1324_v8 = vpop.f32.mrf.mxu1 }
 0x57c   :  { %v1272_v11 = vadd.f32 %v1271_v7, %v990_v59  ;;  %v1325_v12 = vadd.f32 %v1324_v8, %v998_v5  ;;  %v1658_v27 = vmax.f32 %v1270_v9, 0.0  ;;  %v1660_v28 = vmax.f32 %v1323_v10, 0.0  ;;  %v7943_v8 = vld [vmem:[%s10161_s9 + $0x1e8] sm:$0xff]  }
 0x57d   :  { %v1273_v15 = vpop.f32.mrf.mxu0  ;;  %v1326_v16 = vpop.f32.mrf.mxu1 }
 0x57e   :  { %v1274_v17 = vadd.f32 %v1273_v15, %v994_v3  ;;  %v1327_v18 = vadd.f32 %v1326_v16, %v1002_v4  ;;  %v1673_v20 = vmax.f32 %v1272_v11, 0.0  ;;  %v1675_v24 = vmax.f32 %v1325_v12, 0.0 }
 0x57f   :  { %v1277_v25 = vpop.f32.mrf.mxu0  ;;  %v1330_v26 = vpop.f32.mrf.mxu1 }
 0x580   :  { %v1674_v29 = vmax.f32 %v1274_v17, 0.0  ;;  %v1676_v23 = vmax.f32 %v1327_v18, 0.0  ;;  %v1977_v39 = vpack.c.bf16 %v1673_v20, %v1657_v30  ;;  %v1979_v40 = vpack.c.bf16 %v1675_v24, %v1659_v31  ;;  %v7944_v20 = vld [vmem:[%s10161_s9 + $0x128] sm:$0xff]  }
 0x581   :  { %v1279_v32 = vpop.f32.mrf.mxu0  ;;  %v1332_v21 = vpop.f32.mrf.mxu1  ;;  %v1278_v49 = vadd.f32 %v1277_v25, %v990_v59  ;;  %v1331_v54 = vadd.f32 %v1330_v26, %v998_v5 }
 0x582   :  { %v1978_v33 = vpack.c.bf16 %v1674_v29, %v1658_v27  ;;  %v1980_v35 = vpack.c.bf16 %v1676_v23, %v1660_v28  ;;  %v1280_v45 = vadd.f32 %v1279_v32, %v994_v3  ;;  %v1333_v50 = vadd.f32 %v1332_v21, %v1002_v4  ;;  %v7945_v28 = vld [vmem:[%s10161_s9 + $0x1a8] sm:$0xff]   ;;  %v7946_v29 = vld [vmem:[%s10161_s9 + $0x160] sm:$0xff]  }
 0x583   :  { %v1281_v41 = vpop.f32.mrf.mxu0  ;;  %v1334_v42 = vpop.f32.mrf.mxu1  ;;  %v1689_v13 = vmax.f32 %v1278_v49, 0.0  ;;  %v1691_v17 = vmax.f32 %v1331_v54, 0.0  ;;  %v7947_v32 = vld [vmem:[%s10161_s9 + $0x1e0] sm:$0xff]   ;;  %v7952_v54 = vld [vmem:[%s10161_s9 + $0x118] sm:$0xff]  }
 0x584   :  { %v1282_v46 = vadd.f32 %v1281_v41, %v990_v59  ;;  %v1335_v48 = vadd.f32 %v1334_v42, %v998_v5  ;;  %2816 = vmatprep.mubr.bf16.mxu0 %v1978_v33  ;;  %2865 = vmatprep.mubr.bf16.mxu1 %v1980_v35  ;;  %v7942_v5 = vld [vmem:[%s10161_s9 + $0x168] sm:$0xff]   ;;  %v1690_v9 = vmax.f32 %v1280_v45, 0.0  ;;  %v1692_v14 = vmax.f32 %v1333_v50, 0.0  ;;  %v7949_v41 = vld [vmem:[%s10161_s9 + $0x1a0] sm:$0xff]   ;;  %v7950_v42 = vld [vmem:[%s10161_s9 + $0x158] sm:$0xff]  }
 0x585   :  { %v1283_v51 = vpop.f32.mrf.mxu0  ;;  %v1336_v53 = vpop.f32.mrf.mxu1  ;;  %2817 = vmatmul.mubr.bf16.vlgmr.msra.gmra.mxu0 %v1977_v39  ;;  %2866 = vmatmul.mubr.bf16.vlgmr.msra.gmra.mxu1 %v1979_v40 }
 0x586   :  { %v1284_v55 = vadd.f32 %v1283_v51, %v994_v3  ;;  %v1337_v2 = vadd.f32 %v1336_v53, %v1002_v4  ;;  %7282 = vmatpush3.bf16.msra.mxu0 %v7936_v36  ;;  %7310 = vmatpush3.bf16.msra.mxu1 %v7937_v38  ;;  %v1705_v6 = vmax.f32 %v1282_v46, 0.0  ;;  %v8834_v3 = vrot.slane %v8794_v1, %v8817_v34  ;;  %v7948_v38 = vld [vmem:[%s10161_s9 + $0x120] sm:$0xff]  }
 0x587   :  { %v8828_v59 = vpop.f32.mrf.mxu0  ;;  %v8830_v7 = vpop.f32.mrf.mxu1  ;;  %7283 = vmatprep.subr.bf16.mxu0 %v7938_v43  ;;  %7311 = vmatprep.subr.bf16.mxu1 %v7939_v44  ;;  %v8838_v4 = vrot.slane %v8794_v1, %v8820_v22  ;;  %v1707_v10 = vmax.f32 %v1335_v48, 0.0  ;;  %v7951_v48 = vld [vmem:[%s10161_s9 + $0x1d8] sm:$0xff]  }
 0x588   :  { %v1706_v11 = vmax.f32 %v1284_v55, 0.0  ;;  %v1708_v12 = vmax.f32 %v1337_v2, 0.0  ;;  %v1993_v24 = vpack.c.bf16 %v1705_v6, %v1689_v13  ;;  %v7955_v6 = vld [vmem:[%s10161_s9 + $0x1d0] sm:$0xff]  }
 0x589   :  { %v1375_v15 = vpop.f32.mrf.mxu0  ;;  %v1428_v16 = vpop.f32.mrf.mxu1  ;;  %v1995_v23 = vpack.c.bf16 %v1707_v10, %v1691_v17  ;;  %v8902_v10 = vsub.s32 6, %v8777_v56 }
 0x58a   :  { %7284 = vmatpush3.bf16.msra.mxu0 %v7940_v62  ;;  %7312 = vmatpush3.bf16.msra.mxu1 %v7941_v60  ;;  %v1994_v18 = vpack.c.bf16 %v1706_v11, %v1690_v9  ;;  %v1996_v27 = vpack.c.bf16 %v1708_v12, %v1692_v14  ;;  %v1376_v30 = vadd.f32 %v1375_v15, %v8834_v3  ;;  %v7953_v62 = vld [vmem:[%s10161_s9 + $0x198] sm:$0xff]   ;;  %v7954_v60 = vld [vmem:[%s10161_s9 + $0x150] sm:$0xff]   ;;  %v7959_v15 = vld [vmem:[%s10161_s9 + $0x1c8] sm:$0xff]  }
 0x58b   :  { %v8849_v25 = vpop.f32.mrf.mxu0  ;;  %v8851_v26 = vpop.f32.mrf.mxu1  ;;  %7285 = vmatprep.subr.bf16.mxu0 %v7942_v5  ;;  %7313 = vmatprep.subr.bf16.mxu1 %v7943_v8  ;;  %v1429_v31 = vadd.f32 %v1428_v16, %v8838_v4  ;;  %v8899_v5 = vsub.s32 4, %v8777_v56  ;;  %10219 = vst [vmem:[#allocation10_spill] sm:$0xff] %v8902_v10  ;;  %v7956_v11 = vld [vmem:[%s10161_s9 + $0x110] sm:$0xff]   ;;  %v7958_v56 = vld [vmem:[%s10161_s9 + $0x148] sm:$0xff]  }
 0x58c   :  { %2824 = vmatprep.mubr.bf16.mxu0 %v1994_v18  ;;  %2873 = vmatprep.mubr.bf16.mxu1 %v1996_v27  ;;  %v1662_v43 = vmax.f32 %v1376_v30, 0.0  ;;  %v7957_v14 = vld [vmem:[%s10161_s9 + $0x190] sm:$0xff]   ;;  %v1014_v18 = vrot.slane %v8794_v1, %v8902_v10  ;;  %v7963_v30 = vld [vmem:[%s10161_s9 + $0x1c0] sm:$0xff]  }
 0x58d   :  { %v1379_v21 = vpop.f32.mrf.mxu0  ;;  %v1432_v33 = vpop.f32.mrf.mxu1  ;;  %2825 = vmatmul.mubr.bf16.gmra.mxu0 %v1993_v24  ;;  %2874 = vmatmul.mubr.bf16.gmra.mxu1 %v1995_v23  ;;  %v1664_v44 = vmax.f32 %v1429_v31, 0.0  ;;  %10218 = vst [vmem:[#allocation9_spill] sm:$0xff] %v8899_v5  ;;  %v1006_v16 = vrot.slane %v8794_v1, %v8899_v5  ;;  %v7960_v24 = vld [vmem:[%s10161_s9 + $0x108] sm:$0xff]  }
 0x58e   :  { %v1380_v35 = vadd.f32 %v1379_v21, %v8834_v3  ;;  %v1433_v36 = vadd.f32 %v1432_v33, %v8838_v4  ;;  %7286 = vmatpush3.bf16.msra.mxu0 %v7944_v20  ;;  %7314 = vmatpush3.bf16.msra.mxu1 %v7945_v28  ;;  %v7961_v28 = vld [vmem:[%s10161_s9 + $0x188] sm:$0xff]   ;;  %v1431_v1 = vadd.f32 %v8851_v26, %v1014_v18  ;;  %v7964_v26 = vld [vmem:[%s10161_s9 + $0x100] sm:$0xff]  }
 0x58f   :  { %v8869_v39 = vpop.f32.mrf.mxu0  ;;  %v8871_v40 = vpop.f32.mrf.mxu1  ;;  %7287 = vmatprep.subr.bf16.mxu0 %v7946_v29  ;;  %7315 = vmatprep.subr.bf16.mxu1 %v7947_v32  ;;  %v1378_v27 = vadd.f32 %v8849_v25, %v1006_v16  ;;  %v7962_v29 = vld [vmem:[%s10161_s9 + $0x140] sm:$0xff]   ;;  %v1374_v25 = vadd.f32 %v8828_v59, %v1006_v16  ;;  %v1427_v21 = vadd.f32 %v8830_v7, %v1014_v18  ;;  %v7966_v7 = vld [vmem:[%s10161_s9 + $0x278] sm:$0xff]  }
 0x590   :  { %v1678_v45 = vmax.f32 %v1380_v35, 0.0  ;;  %v1680_v46 = vmax.f32 %v1433_v36, 0.0  ;;  %v7965_v59 = vld [vmem:[%s10161_s9 + $0x180] sm:$0xff]  }
 0x591   :  { %v1385_v49 = vpop.f32.mrf.mxu0  ;;  %v1438_v50 = vpop.f32.mrf.mxu1  ;;  %v1677_v36 = vmax.f32 %v1378_v27, 0.0  ;;  %v1437_v27 = vadd.f32 %v8871_v40, %v1014_v18 }
 0x592   :  { %7288 = vmatpush3.bf16.msra.mxu0 %v7948_v38  ;;  %v1982_v51 = vpack.c.bf16 %v1678_v45, %v1662_v43  ;;  %v1984_v53 = vpack.c.bf16 %v1680_v46, %v1664_v44  ;;  %7316 = vmatpush3.bf16.msra.mxu1 %v7949_v41  ;;  %v1386_v33 = vadd.f32 %v1385_v49, %v8834_v3  ;;  %v1661_v43 = vmax.f32 %v1374_v25, 0.0 }
 0x593   :  { %v8885_v55 = vpop.f32.mrf.mxu0  ;;  %v8887_v2 = vpop.f32.mrf.mxu1  ;;  %7289 = vmatprep.subr.bf16.mxu0 %v7950_v42  ;;  %7317 = vmatprep.subr.bf16.mxu1 %v7951_v48  ;;  %v1439_v38 = vadd.f32 %v1438_v50, %v8838_v4  ;;  %v7967_v42 = vld [vmem:[%s10161_s9 + $0x2f8] sm:$0xff]   ;;  %v1663_v46 = vmax.f32 %v1427_v21, 0.0  ;;  %v1695_v21 = vmax.f32 %v1437_v27, 0.0  ;;  %v7991_v27 = vld [vmem:[%s10161_s9 + $0x2c8] sm:$0xff]  }
 0x594   :  { %2914 = vmatprep.mubr.bf16.mxu0 %v1982_v51  ;;  %2963 = vmatprep.mubr.bf16.mxu1 %v1984_v53  ;;  %v1694_v48 = vmax.f32 %v1386_v33, 0.0  ;;  %v1981_v51 = vpack.c.bf16 %v1677_v36, %v1661_v43  ;;  %v7978_v43 = vld [vmem:[%s10161_s9 + $0x260] sm:$0xff]  }
 0x595   :  { %v1389_v8 = vpop.f32.mrf.mxu0  ;;  %v1442_v9 = vpop.f32.mrf.mxu1  ;;  %v1696_v53 = vmax.f32 %v1439_v38, 0.0 }
 0x596   :  { %7290 = vmatpush3.bf16.msra.mxu0 %v7952_v54  ;;  %7318 = vmatpush3.bf16.msra.mxu1 %v7953_v62  ;;  %v1390_v23 = vadd.f32 %v1389_v8, %v8834_v3  ;;  %v1443_v31 = vadd.f32 %v1442_v9, %v8838_v4  ;;  %v1679_v3 = vmax.f32 %v1431_v1, 0.0  ;;  %v8965_v4 = vld [vmem:[%s10164_s14 + $0x8] sm:$0xff]  ;;  %v1388_v54 = vadd.f32 %v8885_v55, %v1006_v16  ;;  %v7969_v55 = vld [vmem:[%s10161_s9 + $0x2b8] sm:$0xff]  }
 0x597   :  { %v8907_v12 = vpop.f32.mrf.mxu0  ;;  %v8909_v13 = vpop.f32.mrf.mxu1  ;;  %7291 = vmatprep.subr.bf16.mxu0 %v7954_v60  ;;  %7319 = vmatprep.subr.bf16.mxu1 %v7955_v6  ;;  %v8969_v49 = vrot.slane %v8965_v4, %v8780_v57  ;;  %v8974_v62 = vrot.slane %v8965_v4, %v8783_v58  ;;  %v7968_v60 = vld [vmem:[%s10161_s9 + $0x238] sm:$0xff]   ;;  %v1441_v8 = vadd.f32 %v8887_v2, %v1014_v18  ;;  %v7971_v2 = vld [vmem:[%s10161_s9 + $0x2f0] sm:$0xff]   ;;  %v7974_v18 = vld [vmem:[%s10161_s9 + $0x268] sm:$0xff]  }
 0x598   :  { %v1710_v41 = vmax.f32 %v1390_v23, 0.0  ;;  %v1712_v44 = vmax.f32 %v1443_v31, 0.0  ;;  %v1983_v6 = vpack.c.bf16 %v1679_v3, %v1663_v46  ;;  %v1709_v1 = vmax.f32 %v1388_v54, 0.0  ;;  %v7972_v23 = vld [vmem:[%s10161_s9 + $0x230] sm:$0xff]   ;;  %v7975_v31 = vld [vmem:[%s10161_s9 + $0x2e8] sm:$0xff]   ;;  %v7983_v54 = vld [vmem:[%s10161_s9 + $0x2d8] sm:$0xff]  }
 0x599   :  { %v1481_v17 = vpop.f32.mrf.mxu0  ;;  %v8924_v20 = vpop.f32.mrf.mxu1 }
 0x59a   :  { %7292 = vmatpush3.bf16.msra.mxu0 %v7956_v11  ;;  %7320 = vmatpush3.bf16.msra.mxu1 %v7957_v14  ;;  %v1998_v11 = vpack.c.bf16 %v1710_v41, %v1694_v48  ;;  %v7970_v14 = vld [vmem:[%s10161_s9 + $0x270] sm:$0xff]  }
 0x59b   :  { %7293 = vmatprep.subr.bf16.mxu0 %v7958_v56  ;;  %7321 = vmatprep.subr.bf16.mxu1 %v7959_v15  ;;  %v8943_v32 = vpop.f32.mrf.mxu0  ;;  %v8947_v35 = vpop.f32.mrf.mxu1  ;;  %v1384_v56 = vadd.f32 %v8869_v39, %v1006_v16  ;;  %v1535_v39 = vadd.f32 %v8924_v20, %v8974_v62 }
 0x59d   :  { %v1485_v45 = vpop.f32.mrf.mxu0  ;;  %v1538_v50 = vpop.f32.mrf.mxu1  ;;  %v1693_v20 = vmax.f32 %v1384_v56, 0.0  ;;  %v1668_v38 = vmax.f32 %v1535_v39, 0.0  ;;  %v1030_v39 = vrot.slane %v8965_v4, %v8789_v0 }
 0x59e   :  { %7294 = vmatpush3.bf16.msra.mxu0 %v7960_v24  ;;  %7322 = vmatpush3.bf16.msra.mxu1 %v7961_v28  ;;  %v1486_v9 = vadd.f32 %v1485_v45, %v8969_v49  ;;  %v1539_v15 = vadd.f32 %v1538_v50, %v8974_v62  ;;  %v2000_v24 = vpack.c.bf16 %v1712_v44, %v1696_v53  ;;  %v7979_v45 = vld [vmem:[%s10161_s9 + $0x2e0] sm:$0xff]   ;;  %v7982_v53 = vld [vmem:[%s10161_s9 + $0x258] sm:$0xff]  }
 0x59f   :  { %7295 = vmatprep.subr.bf16.mxu0 %v7962_v29  ;;  %7323 = vmatprep.subr.bf16.mxu1 %v7963_v30  ;;  %v1482_v28 = vadd.f32 %v1481_v17, %v8969_v49  ;;  %v8994_v29 = vpop.f32.mrf.mxu0  ;;  %v8998_v16 = vpop.f32.mrf.mxu1  ;;  %v1711_v30 = vmax.f32 %v1441_v8, 0.0  ;;  %v7973_v17 = vld [vmem:[%s10161_s9 + $0x2b0] sm:$0xff]   ;;  %v1997_v36 = vpack.c.bf16 %v1709_v1, %v1693_v20  ;;  %v7980_v50 = vld [vmem:[%s10161_s9 + $0x220] sm:$0xff]   ;;  %v7984_v8 = vld [vmem:[%s10161_s9 + $0x218] sm:$0xff]   ;;  %v1537_v20 = vadd.f32 %v8947_v35, %v1030_v39 }
 0x5a0   :  { %v1682_v40 = vmax.f32 %v1486_v9, 0.0  ;;  %v1684_v25 = vmax.f32 %v1539_v15, 0.0  ;;  %v7985_v9 = vld [vmem:[%s10161_s9 + $0x298] sm:$0xff]   ;;  %v7988_v15 = vld [vmem:[%s10161_s9 + $0x210] sm:$0xff]   ;;  %v7996_v35 = vld [vmem:[%s10161_s9 + $0x200] sm:$0xff]  }
 0x5a1   :  { %v1666_v33 = vmax.f32 %v1482_v28, 0.0  ;;  %v1999_v3 = vpack.c.bf16 %v1711_v30, %v1695_v21  ;;  %v1022_v28 = vrot.slane %v8965_v4, %v8786_v63  ;;  %v7992_v30 = vld [vmem:[%s10161_s9 + $0x208] sm:$0xff]  }
 0x5a2   :  { %7296 = vmatpush3.bf16.msra.mxu0 %v7964_v26  ;;  %7324 = vmatpush3.bf16.msra.mxu1 %v7965_v59  ;;  %v9012_v26 = vpop.f32.mrf.mxu0  ;;  %v9014_v59 = vpop.f32.mrf.mxu1  ;;  %v1988_v44 = vpack.c.bf16 %v1684_v25, %v1668_v38 }
 0x5a3   :  { %7337 = vmatprep.subr.bf16.mxu0 %v7966_v7  ;;  %7365 = vmatprep.subr.bf16.mxu1 %v7967_v42  ;;  %v7976_v7 = vld [vmem:[%s10161_s9 + $0x228] sm:$0xff]   ;;  %v1986_v41 = vpack.c.bf16 %v1682_v40, %v1666_v33  ;;  %v1484_v40 = vadd.f32 %v8943_v32, %v1022_v28  ;;  %v1480_v32 = vadd.f32 %v8907_v12, %v1022_v28 }
 0x5a4   :  { %v7977_v42 = vld [vmem:[%s10161_s9 + $0x2a8] sm:$0xff]   ;;  %v9028_v46 = vpop.f32.mrf.mxu0  ;;  %v9030_v48 = vpop.f32.mrf.mxu1  ;;  %v1492_v38 = vadd.f32 %v9012_v26, %v8969_v49  ;;  %v1545_v12 = vadd.f32 %v9014_v59, %v8974_v62  ;;  %v1683_v26 = vmax.f32 %v1537_v20, 0.0 }
 0x5a5   :  { %2915 = vmatmul.mubr.bf16.vlgmr.msra.gmra.mxu0 %v1981_v51  ;;  %2964 = vmatmul.mubr.bf16.vlgmr.msra.gmra.mxu1 %v1983_v6  ;;  %v7981_v51 = vld [vmem:[%s10161_s9 + $0x2a0] sm:$0xff]  }
 0x5a6   :  { %2922 = vmatprep.mubr.bf16.mxu0 %v1998_v11  ;;  %2971 = vmatprep.mubr.bf16.mxu1 %v2000_v24  ;;  %v1548_v6 = vpop.f32.mrf.mxu1  ;;  %v7986_v11 = vld [vmem:[%s10161_s9 + $0x250] sm:$0xff]  }
 0x5a7   :  { %7338 = vmatpush3.bf16.msra.mxu0 %v7968_v60  ;;  %7366 = vmatpush3.bf16.msra.mxu1 %v7969_v55  ;;  %v1495_v60 = vpop.f32.mrf.mxu0  ;;  %v7987_v55 = vld [vmem:[%s10161_s9 + $0x2d0] sm:$0xff]   ;;  %v1549_v21 = vadd.f32 %v1548_v6, %v8974_v62  ;;  %v9121_v6 = vrot.slane %v8965_v4, %v8820_v22 }
 0x5a8   :  { %7339 = vmatprep.subr.bf16.mxu0 %v7970_v14  ;;  %7367 = vmatprep.subr.bf16.mxu1 %v7971_v2  ;;  %v9058_v56 = vpop.f32.mrf.mxu1  ;;  %v7989_v24 = vld [vmem:[%s10161_s9 + $0x290] sm:$0xff]   ;;  %v7990_v2 = vld [vmem:[%s10161_s9 + $0x248] sm:$0xff]   ;;  %v1496_v25 = vadd.f32 %v1495_v60, %v8969_v49  ;;  %v7998_v49 = vld [vmem:[%s10161_s9 + $0x378] sm:$0xff]   ;;  %v1494_v60 = vadd.f32 %v9028_v46, %v1022_v28 }
 0x5a9   :  { %v9056_v14 = vpop.f32.mrf.mxu0  ;;  %v8001_v46 = vld [vmem:[%s10161_s9 + $0x3b8] sm:$0xff]  }
 0x5ab   :  { %7340 = vmatpush3.bf16.msra.mxu0 %v7972_v23  ;;  %7368 = vmatpush3.bf16.msra.mxu1 %v7973_v17  ;;  %v1587_v1 = vpop.f32.mrf.mxu0  ;;  %v1640_v23 = vpop.f32.mrf.mxu1  ;;  %v7993_v17 = vld [vmem:[%s10161_s9 + $0x288] sm:$0xff]  }
 0x5ac   :  { %7341 = vmatprep.subr.bf16.mxu0 %v7974_v18  ;;  %7369 = vmatprep.subr.bf16.mxu1 %v7975_v31  ;;  %v7994_v18 = vld [vmem:[%s10161_s9 + $0x240] sm:$0xff]   ;;  %v1641_v20 = vadd.f32 %v1640_v23, %v9121_v6 }
 0x5ad   :  { %2923 = vmatmul.mubr.bf16.gmra.mxu0 %v1997_v36  ;;  %2972 = vmatmul.mubr.bf16.gmra.mxu1 %v1999_v3  ;;  %v7995_v31 = vld [vmem:[%s10161_s9 + $0x2c0] sm:$0xff]   ;;  %v9093_v33 = vpop.f32.mrf.mxu0  ;;  %v1533_v36 = vadd.f32 %v8909_v13, %v1030_v39  ;;  %v1681_v3 = vmax.f32 %v1484_v40, 0.0  ;;  %v1543_v40 = vadd.f32 %v8998_v16, %v1030_v39  ;;  %v8005_v16 = vld [vmem:[%s10161_s9 + $0x3b0] sm:$0xff]  }
 0x5ae   :  { %3012 = vmatprep.mubr.bf16.mxu0 %v1986_v41  ;;  %3061 = vmatprep.mubr.bf16.mxu1 %v1988_v44  ;;  %v7997_v13 = vld [vmem:[%s10161_s9 + $0x280] sm:$0xff]   ;;  %v1714_v41 = vmax.f32 %v1496_v25, 0.0  ;;  %v1716_v44 = vmax.f32 %v1549_v21, 0.0 }
 0x5af   :  { %7342 = vmatpush3.bf16.msra.mxu0 %v7976_v7  ;;  %7370 = vmatpush3.bf16.msra.mxu1 %v7977_v42  ;;  %v9098_v7 = vpop.f32.mrf.mxu1  ;;  %v7999_v42 = vld [vmem:[%s10161_s9 + $0x3f8] sm:$0xff]   ;;  %v1591_v62 = vpop.f32.mrf.mxu0  ;;  %v1667_v59 = vmax.f32 %v1533_v36, 0.0 }
 0x5b0   :  { %7343 = vmatprep.subr.bf16.mxu0 %v7978_v43  ;;  %7371 = vmatprep.subr.bf16.mxu1 %v7979_v45  ;;  %v1665_v43 = vmax.f32 %v1480_v32, 0.0  ;;  %v1698_v45 = vmax.f32 %v1492_v38, 0.0  ;;  %v1699_v32 = vmax.f32 %v1543_v40, 0.0  ;;  %v1672_v38 = vmax.f32 %v1641_v20, 0.0  ;;  %v8025_v20 = vld [vmem:[%s10161_s9 + $0x388] sm:$0xff]  }
 0x5b3   :  { %7344 = vmatpush3.bf16.msra.mxu0 %v7980_v50  ;;  %7372 = vmatpush3.bf16.msra.mxu1 %v7981_v51  ;;  %v9116_v50 = vrot.slane %v8965_v4, %v8817_v34  ;;  %v1644_v51 = vpop.f32.mrf.mxu1 }
 0x5b4   :  { %7345 = vmatprep.subr.bf16.mxu0 %v7982_v53  ;;  %7373 = vmatprep.subr.bf16.mxu1 %v7983_v54  ;;  %v1985_v53 = vpack.c.bf16 %v1681_v3, %v1665_v43  ;;  %v1700_v54 = vmax.f32 %v1545_v12, 0.0 }
 0x5b5   :  { %v9168_v43 = vpop.f32.mrf.mxu1 }
 0x5b7   :  { %7346 = vmatpush3.bf16.msra.mxu0 %v7984_v8  ;;  %7374 = vmatpush3.bf16.msra.mxu1 %v7985_v9  ;;  %v8000_v8 = vld [vmem:[%s10161_s9 + $0x338] sm:$0xff]   ;;  %v1987_v9 = vpack.c.bf16 %v1683_v26, %v1667_v59 }
 0x5b8   :  { %7347 = vmatprep.subr.bf16.mxu0 %v7986_v11  ;;  %7375 = vmatprep.subr.bf16.mxu1 %v7987_v55  ;;  %v1547_v11 = vadd.f32 %v9030_v48, %v1030_v39  ;;  %v1592_v55 = vadd.f32 %v1591_v62, %v9116_v50  ;;  %v8003_v48 = vld [vmem:[%s10161_s9 + $0x3f0] sm:$0xff]   ;;  %v8013_v62 = vld [vmem:[%s10161_s9 + $0x3a0] sm:$0xff]   ;;  %v8014_v59 = vld [vmem:[%s10161_s9 + $0x358] sm:$0xff]  }
 0x5ba   :  { %v1686_v25 = vmax.f32 %v1592_v55, 0.0 }
 0x5bb   :  { %7348 = vmatpush3.bf16.msra.mxu0 %v7988_v15  ;;  %7376 = vmatpush3.bf16.msra.mxu1 %v7989_v24  ;;  %v2002_v15 = vpack.c.bf16 %v1714_v41, %v1698_v45  ;;  %v8002_v24 = vld [vmem:[%s10161_s9 + $0x370] sm:$0xff]   ;;  %v8011_v41 = vld [vmem:[%s10161_s9 + $0x3e0] sm:$0xff]   ;;  %v8015_v45 = vld [vmem:[%s10161_s9 + $0x3d8] sm:$0xff]  }
 0x5bc   :  { %7349 = vmatprep.subr.bf16.mxu0 %v7990_v2  ;;  %7377 = vmatprep.subr.bf16.mxu1 %v7991_v27  ;;  %v1490_v2 = vadd.f32 %v8994_v29, %v1022_v28  ;;  %v1645_v27 = vadd.f32 %v1644_v51, %v9121_v6  ;;  %v8004_v29 = vld [vmem:[%s10161_s9 + $0x330] sm:$0xff]   ;;  %v1715_v28 = vmax.f32 %v1547_v11, 0.0 }
 0x5be   :  { %v1697_v39 = vmax.f32 %v1490_v2, 0.0  ;;  %v1688_v23 = vmax.f32 %v1645_v27, 0.0  ;;  %v2003_v3 = vpack.c.bf16 %v1715_v28, %v1699_v32  ;;  %v8023_v2 = vld [vmem:[%s10161_s9 + $0x3c8] sm:$0xff]   ;;  %v1038_v27 = vrot.slane %v8965_v4, %v8899_v5 }
 0x5bf   :  { %7350 = vmatpush3.bf16.msra.mxu0 %v7992_v30  ;;  %7378 = vmatpush3.bf16.msra.mxu1 %v7993_v17  ;;  %v2004_v30 = vpack.c.bf16 %v1716_v44, %v1700_v54  ;;  %v1588_v17 = vadd.f32 %v1587_v1, %v9116_v50  ;;  %v8006_v1 = vld [vmem:[%s10161_s9 + $0x368] sm:$0xff]   ;;  %v8012_v44 = vld [vmem:[%s10161_s9 + $0x320] sm:$0xff]   ;;  %v8016_v54 = vld [vmem:[%s10161_s9 + $0x318] sm:$0xff]  }
 0x5c0   :  { %7351 = vmatprep.subr.bf16.mxu0 %v7994_v18  ;;  %7379 = vmatprep.subr.bf16.mxu1 %v7995_v31  ;;  %v1713_v18 = vmax.f32 %v1494_v60, 0.0  ;;  %v8007_v31 = vld [vmem:[%s10161_s9 + $0x3e8] sm:$0xff]   ;;  %v1992_v26 = vpack.c.bf16 %v1688_v23, %v1672_v38  ;;  %v8017_v60 = vld [vmem:[%s10161_s9 + $0x398] sm:$0xff]  }
 0x5c1   :  { %v1670_v21 = vmax.f32 %v1588_v17, 0.0  ;;  %v8024_v17 = vld [vmem:[%s10161_s9 + $0x308] sm:$0xff]  }
 0x5c2   :  { %v2001_v36 = vpack.c.bf16 %v1713_v18, %v1697_v39  ;;  %v1590_v18 = vadd.f32 %v9093_v33, %v1038_v27  ;;  %v1586_v33 = vadd.f32 %v9056_v14, %v1038_v27  ;;  %v8029_v14 = vld [vmem:[%s10161_s9 + $0x380] sm:$0xff]  }
 0x5c3   :  { %7352 = vmatpush3.bf16.msra.mxu0 %v7996_v35  ;;  %7380 = vmatpush3.bf16.msra.mxu1 %v7997_v13  ;;  %v8008_v35 = vld [vmem:[%s10161_s9 + $0x328] sm:$0xff]   ;;  %v1990_v12 = vpack.c.bf16 %v1686_v25, %v1670_v21  ;;  %v8027_v25 = vld [vmem:[%s10161_s9 + $0x3c0] sm:$0xff]  }
 0x5c4   :  { %7393 = vmatprep.subr.bf16.mxu0 %v7998_v49  ;;  %7421 = vmatprep.subr.bf16.mxu1 %v7999_v42  ;;  %v8009_v13 = vld [vmem:[%s10161_s9 + $0x3a8] sm:$0xff]   ;;  %v8010_v49 = vld [vmem:[%s10161_s9 + $0x360] sm:$0xff]   ;;  %v9166_v42 = vpop.f32.mrf.mxu0  ;;  %v1685_v23 = vmax.f32 %v1590_v18, 0.0 }
 0x5c6   :  { %3013 = vmatmul.mubr.bf16.vlgmr.msra.gmra.mxu0 %v1985_v53  ;;  %3062 = vmatmul.mubr.bf16.vlgmr.msra.gmra.mxu1 %v1987_v9  ;;  %v1597_v51 = vpop.f32.mrf.mxu0  ;;  %v1650_v53 = vpop.f32.mrf.mxu1  ;;  %v8019_v9 = vld [vmem:[%s10161_s9 + $0x3d0] sm:$0xff]  }
 0x5c7   :  { %3020 = vmatprep.mubr.bf16.mxu0 %v2002_v15  ;;  %3069 = vmatprep.mubr.bf16.mxu1 %v2004_v30  ;;  %v8020_v15 = vld [vmem:[%s10161_s9 + $0x310] sm:$0xff]   ;;  %v1598_v39 = vadd.f32 %v1597_v51, %v9116_v50 }
 0x5c8   :  { %7394 = vmatpush3.bf16.msra.mxu0 %v8000_v8  ;;  %7422 = vmatpush3.bf16.msra.mxu1 %v8001_v46  ;;  %v8018_v8 = vld [vmem:[%s10161_s9 + $0x350] sm:$0xff]   ;;  %v1599_v11 = vpop.f32.mrf.mxu0  ;;  %v1652_v55 = vpop.f32.mrf.mxu1 }
 0x5c9   :  { %7395 = vmatprep.subr.bf16.mxu0 %v8002_v24  ;;  %7423 = vmatprep.subr.bf16.mxu1 %v8003_v48  ;;  %v8021_v46 = vld [vmem:[%s10161_s9 + $0x390] sm:$0xff]   ;;  %v8022_v24 = vld [vmem:[%s10161_s9 + $0x348] sm:$0xff]   ;;  %v1046_v48 = vrot.slane %v8965_v4, %v8902_v10  ;;  %v1702_v38 = vmax.f32 %v1598_v39, 0.0 }
 0x5ca   :  { %v1601_v30 = vpop.f32.mrf.mxu0  ;;  %v1654_v40 = vpop.f32.mrf.mxu1 }
 0x5cb   :  { %v1643_v4 = vadd.f32 %v9098_v7, %v1046_v48  ;;  %v1602_v28 = vadd.f32 %v1601_v30, %v9116_v50  ;;  %v8028_v7 = vld [vmem:[%s10161_s9 + $0x300] sm:$0xff]  }
 0x5cc   :  { %7396 = vmatpush3.bf16.msra.mxu0 %v8004_v29  ;;  %7424 = vmatpush3.bf16.msra.mxu1 %v8005_v16  ;;  %v8026_v29 = vld [vmem:[%s10161_s9 + $0x340] sm:$0xff]   ;;  %v1655_v16 = vadd.f32 %v1654_v40, %v9121_v6 }
 0x5cd   :  { %7397 = vmatprep.subr.bf16.mxu0 %v8006_v1  ;;  %7425 = vmatprep.subr.bf16.mxu1 %v8007_v31  ;;  %v1639_v1 = vadd.f32 %v9058_v56, %v1046_v48  ;;  %v1651_v31 = vadd.f32 %v1650_v53, %v9121_v6  ;;  %v1687_v32 = vmax.f32 %v1643_v4, 0.0  ;;  %v1718_v21 = vmax.f32 %v1602_v28, 0.0 }
 0x5ce   :  { %3021 = vmatmul.mubr.bf16.gmra.mxu0 %v2001_v36  ;;  %3070 = vmatmul.mubr.bf16.gmra.mxu1 %v2003_v3  ;;  %v1669_v56 = vmax.f32 %v1586_v33, 0.0  ;;  %v1720_v36 = vmax.f32 %v1655_v16, 0.0  ;;  %v1653_v6 = vadd.f32 %v1652_v55, %v1046_v48 }
 0x5cf   :  { %3110 = vmatprep.mubr.bf16.mxu0 %v1990_v12  ;;  %3159 = vmatprep.mubr.bf16.mxu1 %v1992_v26  ;;  %v1671_v50 = vmax.f32 %v1639_v1, 0.0  ;;  %v1704_v3 = vmax.f32 %v1651_v31, 0.0  ;;  %v1600_v12 = vadd.f32 %v1599_v11, %v1038_v27  ;;  %v1596_v26 = vadd.f32 %v9166_v42, %v1038_v27 }
 0x5d0   :  { %7398 = vmatpush3.bf16.msra.mxu0 %v8008_v35  ;;  %7426 = vmatpush3.bf16.msra.mxu1 %v8009_v13  ;;  %v1989_v35 = vpack.c.bf16 %v1685_v23, %v1669_v56 }
 0x5d1   :  { %7399 = vmatprep.subr.bf16.mxu0 %v8010_v49  ;;  %7427 = vmatprep.subr.bf16.mxu1 %v8011_v41  ;;  %v1991_v13 = vpack.c.bf16 %v1687_v32, %v1671_v50  ;;  %v2006_v49 = vpack.c.bf16 %v1718_v21, %v1702_v38  ;;  %v2008_v41 = vpack.c.bf16 %v1720_v36, %v1704_v3 }
 0x5d4   :  { %7400 = vmatpush3.bf16.msra.mxu0 %v8012_v44  ;;  %7428 = vmatpush3.bf16.msra.mxu1 %v8013_v62  ;;  %v1649_v44 = vadd.f32 %v9168_v43, %v1046_v48  ;;  %v1717_v62 = vmax.f32 %v1600_v12, 0.0 }
 0x5d5   :  { %7401 = vmatprep.subr.bf16.mxu0 %v8014_v59  ;;  %7429 = vmatprep.subr.bf16.mxu1 %v8015_v45  ;;  %v1719_v59 = vmax.f32 %v1653_v6, 0.0  ;;  %v1701_v45 = vmax.f32 %v1596_v26, 0.0 }
 0x5d6   :  { %v1703_v51 = vmax.f32 %v1649_v44, 0.0 }
 0x5d7   :  { %v2005_v53 = vpack.c.bf16 %v1717_v62, %v1701_v45 }
 0x5d8   :  { %7402 = vmatpush3.bf16.msra.mxu0 %v8016_v54  ;;  %7430 = vmatpush3.bf16.msra.mxu1 %v8017_v60  ;;  %v2007_v54 = vpack.c.bf16 %v1719_v59, %v1703_v51 }
 0x5d9   :  { %7403 = vmatprep.subr.bf16.mxu0 %v8018_v8  ;;  %7431 = vmatprep.subr.bf16.mxu1 %v8019_v9 }
 0x5dc   :  { %7404 = vmatpush3.bf16.msra.mxu0 %v8020_v15  ;;  %7432 = vmatpush3.bf16.msra.mxu1 %v8021_v46 }
 0x5dd   :  { %7405 = vmatprep.subr.bf16.mxu0 %v8022_v24  ;;  %7433 = vmatprep.subr.bf16.mxu1 %v8023_v2 }
 0x5e0   :  { %7406 = vmatpush3.bf16.msra.mxu0 %v8024_v17  ;;  %7434 = vmatpush3.bf16.msra.mxu1 %v8025_v20 }
 0x5e1   :  { %7407 = vmatprep.subr.bf16.mxu0 %v8026_v29  ;;  %7435 = vmatprep.subr.bf16.mxu1 %v8027_v25 }
 0x5e4   :  { %7408 = vmatpush3.bf16.msra.mxu0 %v8028_v7  ;;  %7436 = vmatpush3.bf16.msra.mxu1 %v8029_v14 }
 0x5e7   :  { %3111 = vmatmul.mubr.bf16.vlgmr.msra.gmra.mxu0 %v1989_v35  ;;  %3160 = vmatmul.mubr.bf16.vlgmr.msra.gmra.mxu1 %v1991_v13 }
 0x5e8   :  { %3118 = vmatprep.mubr.bf16.mxu0 %v2006_v49  ;;  %3167 = vmatprep.mubr.bf16.mxu1 %v2008_v41  ;;  %v6519_v49 = vld [vmem:[%s10165_s15] ss:$0 sm:$0xff] }
 0x5ef   :  { %3119 = vmatmul.mubr.bf16.gmra.mxu0 %v2005_v53  ;;  %3168 = vmatmul.mubr.bf16.gmra.mxu1 %v2007_v54 }
 0x645   :  { %v7241_v60 = vpop.f32.mrf.mxu0  ;;  %v7269_v8 = vpop.f32.mrf.mxu1 }
 0x647   :  { %v7242_v9 = vpop.f32.mrf.mxu0  ;;  %v7270_v11 = vpop.f32.mrf.mxu1 }
 0x648   :  { %v7243_v13 = vadd.f32 %v7242_v9, %v7241_v60  ;;  %v7271_v59 = vadd.f32 %v7270_v11, %v7269_v8 }
 0x649   :  { %v7244_v42 = vpop.f32.mrf.mxu0  ;;  %v7272_v55 = vpop.f32.mrf.mxu1 }
 0x64a   :  { %v2819_v41 = vadd.f32 %v7243_v13, %v6519_v49 }
 0x64b   :  { %v7245_v15 = vpop.f32.mrf.mxu0  ;;  %v7273_v46 = vpop.f32.mrf.mxu1 }
 0x64c   :  { %v7246_v44 = vadd.f32 %v7245_v15, %v7244_v42  ;;  %v2868_v54 = vadd.f32 %v7271_v59, %v2819_v41  ;;  %v7274_v5 = vadd.f32 %v7273_v46, %v7272_v55 }
 0x64d   :  { %v7247_v43 = vpop.f32.mrf.mxu0  ;;  %v7275_v24 = vpop.f32.mrf.mxu1 }
 0x64e   :  { %v2822_v61 = vadd.f32 %v7246_v44, %v6519_v49 }
 0x64f   :  { %v7248_v2 = vpop.f32.mrf.mxu0  ;;  %v7276_v27 = vpop.f32.mrf.mxu1 }
 0x650   :  { %v7249_v51 = vadd.f32 %v7248_v2, %v7247_v43  ;;  %v2871_v0 = vadd.f32 %v7274_v5, %v2822_v61  ;;  %v7277_v13 = vadd.f32 %v7276_v27, %v7275_v24 }
 0x651   :  { %v7250_v30 = vpop.f32.mrf.mxu0  ;;  %v9238_v48 = vpop.f32.mrf.mxu1 }
 0x652   :  { %v2827_v60 = vadd.f32 %v7249_v51, %v6519_v49 }
 0x653   :  { %v7251_v40 = vpop.f32.mrf.mxu0  ;;  %v7279_v17 = vpop.f32.mrf.mxu1 }
 0x654   :  { %v7252_v63 = vadd.f32 %v7251_v40, %v7250_v30  ;;  %v2876_v11 = vadd.f32 %v7277_v13, %v2827_v60 }
 0x656   :  { %v2830_v2 = vadd.f32 %v7252_v63, %v6519_v49 }
 0x665   :  { %v7297_v18 = vpop.f32.mrf.mxu0  ;;  %v7325_v20 = vpop.f32.mrf.mxu1 }
 0x667   :  { %v7298_v29 = vpop.f32.mrf.mxu0  ;;  %v7326_v4 = vpop.f32.mrf.mxu1 }
 0x668   :  { %v7299_v45 = vadd.f32 %v7298_v29, %v7297_v18  ;;  %v7327_v58 = vadd.f32 %v7326_v4, %v7325_v20 }
 0x669   :  { %v7300_v28 = vpop.f32.mrf.mxu0  ;;  %v7328_v25 = vpop.f32.mrf.mxu1 }
 0x66a   :  { %v2917_v22 = vadd.f32 %v7299_v45, %v2868_v54 }
 0x66b   :  { %v7301_v33 = vpop.f32.mrf.mxu0  ;;  %v7329_v16 = vpop.f32.mrf.mxu1 }
 0x66c   :  { %v7302_v34 = vadd.f32 %v7301_v33, %v7300_v28  ;;  %v2966_v15 = vadd.f32 %v7327_v58, %v2917_v22  ;;  %v7330_v18 = vadd.f32 %v7329_v16, %v7328_v25  ;;  %v7280_v33 = vadd.f32 %v7279_v17, %v9238_v48 }
 0x66d   :  { %v7303_v1 = vpop.f32.mrf.mxu0  ;;  %v7331_v39 = vpop.f32.mrf.mxu1 }
 0x66e   :  { %v2920_v8 = vadd.f32 %v7302_v34, %v2871_v0  ;;  %v2879_v58 = vadd.f32 %v7280_v33, %v2830_v2 }
 0x66f   :  { %v7304_v7 = vpop.f32.mrf.mxu0  ;;  %v7332_v23 = vpop.f32.mrf.mxu1 }
 0x670   :  { %v7305_v42 = vadd.f32 %v7304_v7, %v7303_v1  ;;  %v2969_v61 = vadd.f32 %v7330_v18, %v2920_v8  ;;  %v7333_v20 = vadd.f32 %v7332_v23, %v7331_v39 }
 0x671   :  { %v7306_v31 = vpop.f32.mrf.mxu0  ;;  %v9240_v14 = vpop.f32.mrf.mxu1 }
 0x672   :  { %v2925_v46 = vadd.f32 %v7305_v42, %v2876_v11 }
 0x673   :  { %v7307_v32 = vpop.f32.mrf.mxu0  ;;  %v9242_v21 = vpop.f32.mrf.mxu1 }
 0x674   :  { %v7308_v5 = vadd.f32 %v7307_v32, %v7306_v31  ;;  %v2974_v4 = vadd.f32 %v7333_v20, %v2925_v46  ;;  %v7336_v48 = vadd.f32 %v9242_v21, %v9240_v14 }
 0x676   :  { %v2928_v25 = vadd.f32 %v7308_v5, %v2879_v58 }
 0x686   :  { %v7353_v56 = vpop.f32.mrf.mxu0  ;;  %v7381_v36 = vpop.f32.mrf.mxu1 }
 0x688   :  { %v7354_v50 = vpop.f32.mrf.mxu0  ;;  %v7382_v38 = vpop.f32.mrf.mxu1 }
 0x689   :  { %v7355_v57 = vadd.f32 %v7354_v50, %v7353_v56  ;;  %v7383_v30 = vadd.f32 %v7382_v38, %v7381_v36 }
 0x68a   :  { %v7356_v35 = vpop.f32.mrf.mxu0  ;;  %v7384_v3 = vpop.f32.mrf.mxu1 }
 0x68b   :  { %v3015_v29 = vadd.f32 %v7355_v57, %v2966_v15 }
 0x68c   :  { %v7357_v12 = vpop.f32.mrf.mxu0  ;;  %v7385_v6 = vpop.f32.mrf.mxu1 }
 0x68d   :  { %v7358_v41 = vadd.f32 %v7357_v12, %v7356_v35  ;;  %v3064_v0 = vadd.f32 %v7383_v30, %v3015_v29  ;;  %v7386_v16 = vadd.f32 %v7385_v6, %v7384_v3  ;;  %v2977_v12 = vadd.f32 %v7336_v48, %v2928_v25  ;;  %v8032_v48 = vld [vmem:[%s10206_s23 + $0x10] sm:$0xff]  }
 0x68e   :  { %v7359_v26 = vpop.f32.mrf.mxu0  ;;  %v7387_v62 = vpop.f32.mrf.mxu1 }
 0x68f   :  { %v3018_v34 = vadd.f32 %v7358_v41, %v2969_v61 }
 0x690   :  { %v7360_v53 = vpop.f32.mrf.mxu0  ;;  %v7388_v10 = vpop.f32.mrf.mxu1 }
 0x691   :  { %v7361_v24 = vadd.f32 %v7360_v53, %v7359_v26  ;;  %v3067_v39 = vadd.f32 %v7386_v16, %v3018_v34  ;;  %v7389_v38 = vadd.f32 %v7388_v10, %v7387_v62 }
 0x692   :  { %v7362_v9 = vpop.f32.mrf.mxu0  ;;  %v7390_v47 = vpop.f32.mrf.mxu1 }
 0x693   :  { %v3023_v17 = vadd.f32 %v7361_v24, %v2974_v4 }
 0x694   :  { %v7363_v43 = vpop.f32.mrf.mxu0  ;;  %v7391_v55 = vpop.f32.mrf.mxu1 }
 0x695   :  { %v7364_v23 = vadd.f32 %v7363_v43, %v7362_v9  ;;  %v3072_v6 = vadd.f32 %v7389_v38, %v3023_v17  ;;  %v7392_v60 = vadd.f32 %v7391_v55, %v7390_v47  ;;  %v10220_v55 = vld [vmem:[#allocation2_spill] sm:$0xff]  ;;  %v8033_v17 = vld [vmem:[%s10208_s6 + $0x10] sm:$0xff]  }
 0x697   :  { %v3026_v45 = vadd.f32 %v7364_v23, %v2977_v12 }
 0x699   :  { %v3075_v15 = vadd.f32 %v7392_v60, %v3026_v45 }
 0x6a7   :  { %v7409_v28 = vpop.f32.mrf.mxu0  ;;  %v7437_v40 = vpop.f32.mrf.mxu1 }
 0x6a9   :  { %v7410_v27 = vpop.f32.mrf.mxu0  ;;  %v7438_v63 = vpop.f32.mrf.mxu1 }
 0x6aa   :  { %v7411_v22 = vadd.f32 %v7410_v27, %v7409_v28  ;;  %v7439_v7 = vadd.f32 %v7438_v63, %v7437_v40 }
 0x6ab   :  { %v7412_v57 = vpop.f32.mrf.mxu0  ;;  %v7440_v56 = vpop.f32.mrf.mxu1 }
 0x6ac   :  { %v3113_v1 = vadd.f32 %v7411_v22, %v3064_v0 }
 0x6ad   :  { %v7413_v31 = vpop.f32.mrf.mxu0  ;;  %v7441_v50 = vpop.f32.mrf.mxu1 }
 0x6ae   :  { %v3162_v32 = vadd.f32 %v7439_v7, %v3113_v1  ;;  %v7414_v36 = vadd.f32 %v7413_v31, %v7412_v57  ;;  %v7442_v26 = vadd.f32 %v7441_v50, %v7440_v56  ;;  %v8030_v7 = vld [vmem:[%s10206_s23 + $0x18] sm:$0xff]  }
 0x6af   :  { %v7415_v35 = vpop.f32.mrf.mxu0  ;;  %v7443_v44 = vpop.f32.mrf.mxu1  ;;  %v8031_v56 = vld [vmem:[%s10208_s6 + $0x18] sm:$0xff]   ;;  %7805 = vmatprep.subr.bf16.mxu0 %v8030_v7 }
 0x6b0   :  { %v3116_v49 = vadd.f32 %v7414_v36, %v3067_v39  ;;  %v3176_v3 = vadd.f32 %v3162_v32, %v8563_v19  ;;  %7813 = vmatprep.subr.bf16.mxu1 %v8031_v56  ;;  %7806 = vmatpush3.bf16.msra.mxu0 %v8030_v7  ;;  %v8034_v31 = vld [vmem:[%s10207_s29 + $0x18] sm:$0xff]  }
 0x6b1   :  { %v7416_v59 = vpop.f32.mrf.mxu0  ;;  %v7444_v21 = vpop.f32.mrf.mxu1  ;;  %7814 = vmatpush3.bf16.msra.mxu1 %v8031_v56  ;;  %7807 = vmatprep.subr.bf16.mxu0 %v8032_v48  ;;  %v9280_v39 = vld [vmem:[%s10210_s25 + $0x18] sm:$0xff] }
 0x6b2   :  { %v3165_v51 = vadd.f32 %v7442_v26, %v3116_v49  ;;  %v7417_v14 = vadd.f32 %v7416_v59, %v7415_v35  ;;  %v3182_v53 = vsel %vm202_vm1, %v3176_v3, 0.0  ;;  %v7445_v10 = vadd.f32 %v7444_v21, %v7443_v44  ;;  %7815 = vmatprep.subr.bf16.mxu1 %v8033_v17 }
 0x6b3   :  { %v7418_v54 = vpop.f32.mrf.mxu0  ;;  %3183 = vadd.xlane.f32.xlu0 %v3182_v53  ;;  %v7446_v62 = vpop.f32.mrf.mxu1 }
 0x6b4   :  { %v3121_v9 = vadd.f32 %v7417_v14, %v3072_v6  ;;  %v3177_v13 = vadd.f32 %v3165_v51, %v8565_v37  ;;  %7808 = vmatpush3.bf16.msra.mxu0 %v8032_v48  ;;  %v6648_v51 = vld [vmem:[%s10166_s18] ss:$0 sm:$0xff] }
 0x6b5   :  { %v7419_v42 = vpop.f32.mrf.mxu0  ;;  %v7447_v11 = vpop.f32.mrf.mxu1  ;;  %7816 = vmatpush3.bf16.msra.mxu1 %v8033_v17  ;;  %7821 = vmatprep.subr.bf16.mxu0 %v8034_v31 }
 0x6b6   :  { %v3170_v8 = vadd.f32 %v7445_v10, %v3121_v9  ;;  %v7420_v19 = vadd.f32 %v7419_v42, %v7418_v54  ;;  %v3185_v43 = vsel %vm202_vm1, %v3177_v13, 0.0  ;;  %v7448_v18 = vadd.f32 %v7447_v11, %v7446_v62  ;;  %7829 = vmatprep.subr.mxu1 %v9280_v39  ;;  %v6649_v54 = vld [vmem:[%s10167_s19] ss:$0 sm:$0xff] }
 0x6b7   :  { %3186 = vadd.xlane.f32.xlu1 %v3185_v43 }
 0x6b8   :  { %v3124_v2 = vadd.f32 %v7420_v19, %v3075_v15  ;;  %v3178_v29 = vadd.f32 %v3170_v8, %v8593_v52 }
 0x6ba   :  { %v3173_v41 = vadd.f32 %v7448_v18, %v3124_v2  ;;  %v3188_v47 = vsel %vm202_vm1, %v3178_v29, 0.0 }
 0x6bb   :  { %3189 = vadd.xlane.f32.xlu0 %v3188_v47  ;;  %v8250_v47 = vld [vmem:[%s10210_s25 + $0x8] sm:$0xff] }
 0x6bc   :  { %v3179_v46 = vadd.f32 %v3173_v41, %v10220_v55  ;;  %v8249_v41 = vld [vmem:[%s10210_s25 + $0x10] sm:$0xff]  ;;  %v8251_v55 = vld [vmem:[%s10210_s25] sm:$0xff] }
 0x6be   :  { %v3191_v37 = vsel %vm202_vm1, %v3179_v46, 0.0 }
 0x6bf   :  { %3192 = vadd.xlane.f32.xlu1 %v3191_v37 }
 0x73c   :  { %v3184_v28 = vpop.xlane.xlu0 %3183 }
 0x73d   :  { %v3194_v33 = vmul.f32 0.03125, %v3184_v28  ;;  %v6665_v28 = vld [vmem:[%s10155_s11 + $0x1] ss:$0 sm:$0xff] }
 0x73f   :  { %v3198_v61 = vsub.f32 %v3176_v3, %v3194_v33  ;;  %v6655_v33 = vld [vmem:[%s10156_s10 + $0x1] ss:$0 sm:$0xff] }
 0x740   :  { %v3187_v5 = vpop.xlane.xlu1 %3186 }
 0x741   :  { %v3195_v30 = vmul.f32 0.03125, %v3187_v5  ;;  %v3202_v40 = vmul.f32 %v3198_v61, %v3198_v61 }
 0x743   :  { %v3199_v20 = vsub.f32 %v3177_v13, %v3195_v30  ;;  %v3206_v24 = vsel %vm202_vm1, %v3202_v40, 0.0 }
 0x744   :  { %3207 = vadd.xlane.f32.xlu0 %v3206_v24  ;;  %v3190_v52 = vpop.xlane.xlu0 %3189 }
 0x745   :  { %v3196_v27 = vmul.f32 0.03125, %v3190_v52  ;;  %v3203_v58 = vmul.f32 %v3199_v20, %v3199_v20 }
 0x747   :  { %v3200_v0 = vsub.f32 %v3178_v29, %v3196_v27  ;;  %v3209_v34 = vsel %vm202_vm1, %v3203_v58, 0.0  ;;  %v8035_v29 = vld [vmem:[%s10207_s29 + $0x10] sm:$0xff]  }
 0x748   :  { %3210 = vadd.xlane.f32.xlu1 %v3209_v34  ;;  %v3193_v22 = vpop.xlane.xlu1 %3192 }
 0x749   :  { %v3197_v63 = vmul.f32 0.03125, %v3193_v22  ;;  %v3204_v4 = vmul.f32 %v3200_v0, %v3200_v0 }
 0x74b   :  { %v3201_v57 = vsub.f32 %v3179_v46, %v3197_v63  ;;  %v3212_v25 = vsel %vm202_vm1, %v3204_v4, 0.0 }
 0x74c   :  { %3213 = vadd.xlane.f32.xlu0 %v3212_v25 }
 0x74d   :  { %v3205_v16 = vmul.f32 %v3201_v57, %v3201_v57 }
 0x74f   :  { %v3215_v1 = vsel %vm202_vm1, %v3205_v16, 0.0 }
 0x750   :  { %3216 = vadd.xlane.f32.xlu1 %v3215_v1 }
 0x7cd   :  { %v3208_v23 = vpop.xlane.xlu0 %3207 }
 0x7ce   :  { %v3218_v32 = vmul.f32 0.03125, %v3208_v23  ;;  %v8037_v23 = vld [vmem:[%s10157_s7 + $0x10] sm:$0xff]  }
 0x7d0   :  { %v3222_v36 = vadd.f32 1e-05, %v3218_v32 }
 0x7d1   :  { %v3211_v50 = vpop.xlane.xlu1 %3210 }
 0x7d2   :  { %8200 = vrsqrt.f32 %v3222_v36  ;;  %v3219_v38 = vmul.f32 0.03125, %v3211_v50 }
 0x7d4   :  { %v3223_v35 = vadd.f32 1e-05, %v3219_v38 }
 0x7d5   :  { %v3214_v12 = vpop.xlane.xlu0 %3213 }
 0x7d6   :  { %8202 = vrsqrt.f32 %v3223_v35  ;;  %v3220_v49 = vmul.f32 0.03125, %v3214_v12 }
 0x7d8   :  { %v3224_v26 = vadd.f32 1e-05, %v3220_v49 }
 0x7d9   :  { %v3217_v44 = vpop.xlane.xlu1 %3216 }
 0x7da   :  { %8204 = vrsqrt.f32 %v3224_v26  ;;  %v3221_v3 = vmul.f32 0.03125, %v3217_v44 }
 0x7dc   :  { %v3225_v6 = vadd.f32 1e-05, %v3221_v3 }
 0x7de   :  { %8206 = vrsqrt.f32 %v3225_v6 }
 0x7df   :  { %v8201_v59 = vpop.eup %8200 }
 0x7e0   :  { %v3230_v45 = vmul.f32 %v8201_v59, %v3198_v61 }
 0x7e2   :  { %v3240_v53 = vmul.f32 %v6648_v51, %v3230_v45 }
 0x7e3   :  { %v8203_v14 = vpop.eup %8202 }
 0x7e4   :  { %v3231_v21 = vmul.f32 %v8203_v14, %v3199_v20  ;;  %v9289_v62 = vadd.f32 %v6649_v54, %v3240_v53 }
 0x7e6   :  { %v3241_v60 = vmul.f32 %v6648_v51, %v3231_v21 }
 0x7e7   :  { %v8205_v9 = vpop.eup %8204 }
 0x7e8   :  { %v3232_v10 = vmul.f32 %v8205_v9, %v3200_v0  ;;  %v9291_v13 = vadd.f32 %v6649_v54, %v3241_v60 }
 0x7ea   :  { %v3259_v42 = vpack.c.bf16 %v9291_v13, %v9289_v62  ;;  %v3242_v19 = vmul.f32 %v6648_v51, %v3232_v10 }
 0x7eb   :  { %v8207_v15 = vpop.eup %8206 }
 0x7ec   :  { %v3233_v8 = vmul.f32 %v8207_v15, %v3201_v57  ;;  %7809 = vmatprep.mubr.msk.bf16.mxu0 %vm202_vm1, %v3259_v42  ;;  %7817 = vmatprep.mubr.msk.bf16.mxu1 %vm202_vm1, %v3259_v42  ;;  %v9297_v43 = vadd.f32 %v6649_v54, %v3242_v19 }
 0x7ee   :  { %v3243_v11 = vmul.f32 %v6648_v51, %v3233_v8 }
 0x7f0   :  { %v9299_v2 = vadd.f32 %v6649_v54, %v3243_v11 }
 0x7f2   :  { %v3260_v18 = vpack.c.bf16 %v9299_v2, %v9297_v43 }
 0x7f4   :  { %7810 = vmatmul.mubr.msk.bf16.vlgmr.msra.gmra.mxu0 %vm202_vm1, %v3260_v18  ;;  %7818 = vmatmul.mubr.msk.bf16.vlgmr.msra.gmra.mxu1 %vm202_vm1, %v3260_v18 }
 0x7f5   :  { %7822 = vmatpush3.bf16.msra.mxu0 %v8034_v31  ;;  %7825 = vmatprep.mubr.msk.bf16.mxu0 %vm202_vm1, %v3259_v42  ;;  %v10221_v31 = vmov 0  }
 0x7f6   :  { %7823 = vmatprep.subr.bf16.mxu0 %v8035_v29  ;;  %7830 = vmatpush3.msra.mxu1 %v9280_v39 }
 0x7f7   :  { %7831 = vmatprep.subr.mxu1 %v8249_v41 }
 0x7f8   :  { %7832 = vmatpush3.msra.mxu1 %v8249_v41 }
 0x7f9   :  { %7824 = vmatpush3.bf16.msra.mxu0 %v8035_v29  ;;  %7833 = vmatprep.subr.mxu1 %v8250_v47 }
 0x7fa   :  { %7840 = vmatprep.subr.mxu0 %v9280_v39  ;;  %7834 = vmatpush3.msra.mxu1 %v8250_v47 }
 0x7fb   :  { %7835 = vmatprep.subr.mxu1 %v8251_v55 }
 0x7fc   :  { %7826 = vmatmul.mubr.msk.bf16.vlgmr.msra.gmra.mxu0 %vm202_vm1, %v3260_v18  ;;  %7836 = vmatpush3.msra.mxu1 %v8251_v55 }
 0x7fd   :  { %7841 = vmatpush3.msra.mxu0 %v9280_v39  ;;  %7851 = vmatprep.subr.mxu1 %v9280_v39 }
 0x7fe   :  { %7842 = vmatprep.subr.mxu0 %v8249_v41 }
 0x7ff   :  { %7843 = vmatpush3.msra.mxu0 %v8249_v41 }
 0x800   :  { %7844 = vmatprep.subr.mxu0 %v8250_v47 }
 0x801   :  { %7845 = vmatpush3.msra.mxu0 %v8250_v47 }
 0x802   :  { %7846 = vmatprep.subr.mxu0 %v8251_v55 }
 0x803   :  { %7847 = vmatpush3.msra.mxu0 %v8251_v55 }
 0x804   :  { %7862 = vmatprep.subr.mxu0 %v9280_v39 }
 0x8b4   :  { %v7811_v46 = vpop.f32.mrf.mxu0  ;;  %v7819_v37 = vpop.f32.mrf.mxu1 }
 0x8b5   :  { %v3404_v30 = vadd.f32 %v7819_v37, %v6665_v28  ;;  %v3330_v57 = vadd.f32 %v7811_v46, %v6655_v33 }
 0x8b6   :  { %v3321_v61 = vpop.f32.mrf.mxu0  ;;  %v3395_v5 = vpop.f32.mrf.mxu1 }
 0x8b7   :  { %v3322_v40 = vadd.f32 %v6655_v33, %v3321_v61  ;;  %v3396_v20 = vadd.f32 %v6665_v28, %v3395_v5  ;;  %v3761_v7 = vmul.f32 %v3404_v30, %v3330_v57 }
 0x8b8   :  { %v7812_v24 = vpop.f32.mrf.mxu0  ;;  %v7820_v52 = vpop.f32.mrf.mxu1 }
 0x8b9   :  { %v3567_v27 = vmul.f32 %v3404_v30, %v3322_v40  ;;  %v3484_v58 = vmul.f32 %v3396_v20, %v3322_v40  ;;  %v3407_v22 = vadd.f32 %v7820_v52, %v6665_v28  ;;  %v3678_v1 = vmul.f32 %v3396_v20, %v3330_v57 }
 0x8ba   :  { %v3324_v0 = vpop.f32.mrf.mxu0  ;;  %v3398_v34 = vpop.f32.mrf.mxu1  ;;  %v3333_v56 = vadd.f32 %v7812_v24, %v6655_v33 }
 0x8bb   :  { %v3325_v63 = vadd.f32 %v6655_v33, %v3324_v0  ;;  %v3399_v4 = vadd.f32 %v6665_v28, %v3398_v34  ;;  %7837 = vmatprep.mubr.msk.f32.mxu1 %vm202_vm1, %v3484_v58  ;;  %7848 = vmatprep.mubr.msk.f32.mxu0 %vm202_vm1, %v3567_v27  ;;  %v6675_v0 = vld [vmem:[%s10158_s12 + $0x1] ss:$0 sm:$0xff] }
 0x8bc   :  { %v3762_v48 = vmul.f32 %v3407_v22, %v3333_v56  ;;  %v9347_v32 = vpop.f32.mrf.mxu0 }
 0x8bd   :  { %v3568_v25 = vmul.f32 %v3407_v22, %v3325_v63  ;;  %v3485_v16 = vmul.f32 %v3399_v4, %v3325_v63  ;;  %v3679_v17 = vmul.f32 %v3399_v4, %v3333_v56 }
 0x8be   :  { %v9349_v36 = vpop.f32.mrf.mxu0 }
 0x8bf   :  { %7838 = vmatmul.mubr.msk.f32.vlgmr.msra.gmra.mxu1 %vm202_vm1, %v3485_v16  ;;  %7849 = vmatmul.mubr.msk.f32.vlgmr.msra.gmra.mxu0 %vm202_vm1, %v3568_v25  ;;  %v3478_v16 = vadd.f32 %v9347_v32, %v6675_v0 }
 0x8c0   :  { %7852 = vmatpush3.msra.mxu1 %v9280_v39  ;;  %7863 = vmatpush3.msra.mxu0 %v9280_v39  ;;  %v8036_v39 = vld [vmem:[%s10157_s7 + $0x18] sm:$0xff]   ;;  %v7828_v50 = vpop.f32.mrf.mxu0 }
 0x8c1   :  { %7853 = vmatprep.subr.mxu1 %v8249_v41  ;;  %7859 = vmatprep.mubr.msk.f32.mxu1 %vm202_vm1, %v3678_v1  ;;  %v3481_v22 = vadd.f32 %v7828_v50, %v6675_v0  ;;  %v3470_v1 = vadd.f32 %v6675_v0, %v9349_v36 }
 0x8c2   :  { %7864 = vmatprep.subr.mxu0 %v8249_v41  ;;  %7870 = vmatprep.mubr.msk.f32.mxu0 %vm202_vm1, %v3761_v7  ;;  %v3472_v38 = vpop.f32.mrf.mxu0 }
 0x8c3   :  { %7854 = vmatpush3.msra.mxu1 %v8249_v41  ;;  %7865 = vmatpush3.msra.mxu0 %v8249_v41  ;;  %v3473_v63 = vadd.f32 %v6675_v0, %v3472_v38 }
 0x8c4   :  { %7855 = vmatprep.subr.mxu1 %v8250_v47  ;;  %7866 = vmatprep.subr.mxu0 %v8250_v47 }
 0x8c5   :  { %7856 = vmatpush3.msra.mxu1 %v8250_v47  ;;  %7867 = vmatpush3.msra.mxu0 %v8250_v47 }
 0x8c6   :  { %7857 = vmatprep.subr.mxu1 %v8251_v55  ;;  %7868 = vmatprep.subr.mxu0 %v8251_v55 }
 0x8c7   :  { %7858 = vmatpush3.msra.mxu1 %v8251_v55  ;;  %7869 = vmatpush3.msra.mxu0 %v8251_v55 }
 0x8c8   :  { %7860 = vmatmul.mubr.msk.f32.vlgmr.msra.gmra.mxu1 %vm202_vm1, %v3679_v17  ;;  %7871 = vmatmul.mubr.msk.f32.vlgmr.msra.gmra.mxu0 %vm202_vm1, %v3762_v48 }
 0x8c9   :  { %4352 = vmatprep.mubr.bf16.mxu0 %v10221_v31  ;;  %7873 = vmatprep.subr.bf16.mxu1 %v8036_v39 }
 0x8ca   :  { %7874 = vmatpush3.bf16.msra.mxu1 %v8036_v39 }
 0x8cb   :  { %7875 = vmatprep.subr.bf16.mxu1 %v8037_v23 }
 0x8ce   :  { %7876 = vmatpush3.bf16.msra.mxu1 %v8037_v23 }
 0x97f   :  { %v7839_v35 = vpop.f32.mrf.mxu1  ;;  %v7850_v12 = vpop.f32.mrf.mxu0 }
 0x980   :  { %v3651_v49 = vmax.f32 %v7839_v35, %v7850_v12 }
 0x981   :  { %v3558_v26 = vpop.f32.mrf.mxu1  ;;  %v3641_v44 = vpop.f32.mrf.mxu0 }
 0x982   :  { %v3653_v3 = vsub.f32 %v7839_v35, %v3651_v49  ;;  %v3659_v6 = vsub.f32 %v7850_v12, %v3651_v49  ;;  %v3650_v59 = vmax.f32 %v3558_v26, %v3641_v44 }
 0x984   :  { %v3656_v45 = vmul.f32 1.442695, %v3653_v3  ;;  %v3662_v51 = vmul.f32 1.442695, %v3659_v6  ;;  %v3652_v14 = vsub.f32 %v3558_v26, %v3650_v59  ;;  %v3658_v21 = vsub.f32 %v3641_v44, %v3650_v59 }
 0x986   :  { %8208 = vpow2.f32 %v3656_v45  ;;  %v3654_v53 = vmul.f32 1.442695, %v3652_v14  ;;  %v3660_v54 = vmul.f32 1.442695, %v3658_v21 }
 0x987   :  { %8210 = vpow2.f32 %v3662_v51 }
 0x988   :  { %8212 = vpow2.f32 %v3654_v53  ;;  %v7861_v60 = vpop.f32.mrf.mxu1  ;;  %v7872_v9 = vpop.f32.mrf.mxu0 }
 0x989   :  { %8214 = vpow2.f32 %v3660_v54  ;;  %v3845_v10 = vmax.f32 %v7861_v60, %v7872_v9  ;;  %v6693_v54 = vld [vmem:[%s10159_s13 + $0x1] ss:$0 sm:$0xff] }
 0x98a   :  { %v3752_v42 = vpop.f32.mrf.mxu1  ;;  %v3835_v15 = vpop.f32.mrf.mxu0 }
 0x98b   :  { %v3847_v8 = vsub.f32 %v7861_v60, %v3845_v10  ;;  %v3853_v19 = vsub.f32 %v7872_v9, %v3845_v10  ;;  %v3844_v11 = vmax.f32 %v3752_v42, %v3835_v15 }
 0x98d   :  { %v3850_v18 = vmul.f32 1.442695, %v3847_v8  ;;  %v3856_v29 = vmul.f32 1.442695, %v3853_v19  ;;  %v3846_v41 = vsub.f32 %v3752_v42, %v3844_v11  ;;  %v3852_v47 = vsub.f32 %v3835_v15, %v3844_v11 }
 0x98f   :  { %8216 = vpow2.f32 %v3850_v18  ;;  %v3848_v55 = vmul.f32 1.442695, %v3846_v41  ;;  %v3854_v46 = vmul.f32 1.442695, %v3852_v47 }
 0x990   :  { %8218 = vpow2.f32 %v3856_v29 }
 0x991   :  { %8220 = vpow2.f32 %v3848_v55 }
 0x992   :  { %8222 = vpow2.f32 %v3854_v46 }
 0x993   :  { %v8209_v37 = vpop.eup %8208 }
 0x994   :  { %v8211_v28 = vpop.eup %8210 }
 0x995   :  { %v8213_v33 = vpop.eup %8212  ;;  %v3665_v61 = vadd.f32 %v8211_v28, %v8209_v37 }
 0x996   :  { %v8215_v5 = vpop.eup %8214 }
 0x997   :  { %8224 = vrcp.f32 %v3665_v61  ;;  %v3664_v30 = vadd.f32 %v8215_v5, %v8213_v33 }
 0x999   :  { %8226 = vrcp.f32 %v3664_v30 }
 0x99c   :  { %v8217_v40 = vpop.eup %8216 }
 0x99d   :  { %v8219_v20 = vpop.eup %8218 }
 0x99e   :  { %v8221_v24 = vpop.eup %8220  ;;  %v3859_v52 = vadd.f32 %v8219_v20, %v8217_v40 }
 0x99f   :  { %v8223_v27 = vpop.eup %8222 }
 0x9a0   :  { %8228 = vrcp.f32 %v3859_v52  ;;  %v3858_v58 = vadd.f32 %v8223_v27, %v8221_v24 }
 0x9a2   :  { %8230 = vrcp.f32 %v3858_v58 }
 0x9a4   :  { %v8225_v34 = vpop.eup %8224 }
 0x9a5   :  { %v3669_v4 = vmul.f32 %v8225_v34, %v8209_v37  ;;  %v3673_v57 = vmul.f32 %v8225_v34, %v8211_v28 }
 0x9a6   :  { %v8227_v25 = vpop.eup %8226 }
 0x9a7   :  { %v3668_v7 = vmul.f32 %v8227_v25, %v8213_v33  ;;  %v3671_v56 = vmul.f32 %v3669_v4, %v3473_v63  ;;  %v3672_v48 = vmul.f32 %v8227_v25, %v8215_v5  ;;  %v3675_v17 = vmul.f32 %v3673_v57, %v3481_v22  ;;  %v6718_v57 = vld [vmem:[%s10160_s8 + $0x180] sm:$0xff] }
 0x9a8   :  { %v6726_v25 = vld [vmem:[%s10160_s8 + $0x1c0] sm:$0xff] }
 0x9a9   :  { %v3670_v39 = vmul.f32 %v3668_v7, %v3470_v1  ;;  %v3674_v23 = vmul.f32 %v3672_v48, %v3478_v16  ;;  %v3677_v12 = vadd.f32 %v3675_v17, %v3671_v56  ;;  %v6727_v7 = vld [vmem:[%s10160_s8 + $0x1c8] sm:$0xff]  ;;  %v6752_v56 = vcombine.low %v6718_v57, %v6726_v25 }
 0x9ab   :  { %v3676_v35 = vadd.f32 %v3674_v23, %v3670_v39  ;;  %v6702_v39 = vld [vmem:[%s10160_s8 + $0x100] sm:$0xff] }
 0x9ac   :  { %v6710_v23 = vld [vmem:[%s10160_s8 + $0x140] sm:$0xff] }
 0x9ad   :  { %v8229_v49 = vpop.eup %8228  ;;  %v3877_v26 = vpack.c.bf16 %v3677_v12, %v3676_v35  ;;  %v6703_v35 = vld [vmem:[%s10160_s8 + $0x108] sm:$0xff]  ;;  %v6737_v12 = vcombine.high %v6702_v39, %v6710_v23 }
 0x9ae   :  { %v3867_v44 = vmul.f32 %v8229_v49, %v8219_v20  ;;  %v3863_v50 = vmul.f32 %v8229_v49, %v8217_v40  ;;  %v6711_v49 = vld [vmem:[%s10160_s8 + $0x148] sm:$0xff] }
 0x9af   :  { %v8231_v38 = vpop.eup %8230  ;;  %7877 = vmatprep.mubr.msk.bf16.mxu1 %vm202_vm1, %v3877_v26  ;;  %v6736_v26 = vcombine.low %v6702_v39, %v6710_v23  ;;  %v6714_v39 = vld [vmem:[%s10160_s8 + $0x160] sm:$0xff]  ;;  %v6707_v23 = vld [vmem:[%s10160_s8 + $0x128] sm:$0xff] }
 0x9b0   :  { %v3866_v3 = vmul.f32 %v8231_v38, %v8223_v27  ;;  %v3862_v6 = vmul.f32 %v8231_v38, %v8221_v24  ;;  %v3865_v32 = vmul.f32 %v3863_v50, %v3473_v63  ;;  %v3869_v59 = vmul.f32 %v3867_v44, %v3481_v22  ;;  %v6720_v38 = vld [vmem:[%s10160_s8 + $0x190] sm:$0xff] }
 0x9b1   :  { %v6738_v44 = vcombine.low %v6703_v35, %v6711_v49  ;;  %v6739_v50 = vcombine.high %v6703_v35, %v6711_v49  ;;  %v6715_v35 = vld [vmem:[%s10160_s8 + $0x168] sm:$0xff] }
 0x9b2   :  { %v3864_v36 = vmul.f32 %v3862_v6, %v3470_v1  ;;  %v3868_v45 = vmul.f32 %v3866_v3, %v3478_v16  ;;  %v3871_v14 = vadd.f32 %v3869_v59, %v3865_v32  ;;  %v6719_v16 = vld [vmem:[%s10160_s8 + $0x188] sm:$0xff]  ;;  %v6753_v1 = vcombine.high %v6718_v57, %v6726_v25  ;;  %v6728_v3 = vld [vmem:[%s10160_s8 + $0x1d0] sm:$0xff]  ;;  %v6721_v6 = vld [vmem:[%s10160_s8 + $0x198] sm:$0xff] }
 0x9b3   :  { %v6754_v48 = vcombine.low %v6719_v16, %v6727_v7  ;;  %v6755_v17 = vcombine.high %v6719_v16, %v6727_v7  ;;  %v6757_v32 = vcombine.high %v6720_v38, %v6728_v3  ;;  %v6729_v59 = vld [vmem:[%s10160_s8 + $0x1d8] sm:$0xff] }
 0x9b4   :  { %v3870_v51 = vadd.f32 %v3868_v45, %v3864_v36  ;;  %4332 = vmatprep.subr.bf16.mxu0 %v6753_v1  ;;  %v6756_v36 = vcombine.low %v6720_v38, %v6728_v3  ;;  %v6758_v45 = vcombine.low %v6721_v6, %v6729_v59  ;;  %v6732_v38 = vld [vmem:[%s10160_s8 + $0x1f0] sm:$0xff]  ;;  %v6725_v3 = vld [vmem:[%s10160_s8 + $0x1b8] sm:$0xff] }
 0x9b5   :  { %4385 = vmatprep.subr.bf16.mxu1 %v6755_v17  ;;  %4333 = vmatpush1.bf16.msra.mxu0 %v6752_v56  ;;  %v6706_v17 = vld [vmem:[%s10160_s8 + $0x120] sm:$0xff] }
 0x9b6   :  { %v3878_v21 = vpack.c.bf16 %v3871_v14, %v3870_v51  ;;  %4334 = vmatprep.subr.bf16.mxu0 %v6737_v12  ;;  %v6759_v51 = vcombine.high %v6721_v6, %v6729_v59  ;;  %v6733_v6 = vld [vmem:[%s10160_s8 + $0x1f8] sm:$0xff]  ;;  %v6746_v59 = vcombine.low %v6707_v23, %v6715_v35 }
 0x9b8   :  { %7878 = vmatmul.mubr.msk.bf16.vlgmr.msra.gmra.mxu1 %vm202_vm1, %v3878_v21 }
 0x9b9   :  { %4405 = vmatprep.mubr.bf16.mxu1 %v10221_v31  ;;  %4386 = vmatpush1.bf16.msra.mxu1 %v6754_v48 }
 0x9ba   :  { %4387 = vmatprep.subr.bf16.mxu1 %v6739_v50  ;;  %4335 = vmatpush1.bf16.msra.mxu0 %v6736_v26  ;;  %v6745_v26 = vcombine.high %v6706_v17, %v6714_v39  ;;  %v6724_v50 = vld [vmem:[%s10160_s8 + $0x1b0] sm:$0xff] }
 0x9bb   :  { %4438 = vmatprep.subr.bf16.mxu0 %v6757_v32  ;;  %v6744_v32 = vcombine.low %v6706_v17, %v6714_v39  ;;  %v9663_v17 = vld [vmem:[%s10164_s14 + $0x10] sm:$0xff] }
 0x9bd   :  { %4388 = vmatpush1.bf16.msra.mxu1 %v6738_v44  ;;  %v6747_v44 = vcombine.high %v6707_v23, %v6715_v35  ;;  %v10223_v35 = vld [vmem:[#allocation3_spill] sm:$0xff] }
 0x9be   :  { %4491 = vmatprep.subr.bf16.mxu1 %v6759_v51  ;;  %v6708_v51 = vld [vmem:[%s10160_s8 + $0x130] sm:$0xff] }
 0xa78   :  { %v7879_v53 = vpop.f32.mrf.mxu1 }
 0xa79   :  { %v3948_v9 = vadd.f32 %v7879_v53, %v6693_v54 }
 0xa7a   :  { %v3939_v60 = vpop.f32.mrf.mxu1 }
 0xa7b   :  { %v3940_v10 = vadd.f32 %v6693_v54, %v3939_v60  ;;  %v3956_v29 = vadd.f32 %v3948_v9, %v9297_v43 }
 0xa7c   :  { %v7880_v42 = vpop.f32.mrf.mxu1 }
 0xa7d   :  { %v3954_v15 = vadd.f32 %v3940_v10, %v9289_v62  ;;  %v3951_v19 = vadd.f32 %v7880_v42, %v6693_v54  ;;  %v3968_v55 = vsel %vm202_vm1, %v3956_v29, 0.0 }
 0xa7e   :  { %v3942_v8 = vpop.f32.mrf.mxu1 }
 0xa7f   :  { %v3943_v11 = vadd.f32 %v6693_v54, %v3942_v8  ;;  %v3962_v18 = vsel %vm202_vm1, %v3954_v15, 0.0  ;;  %v3957_v46 = vadd.f32 %v3951_v19, %v9299_v2 }
 0xa80   :  { %3963 = vadd.xlane.f32.xlu0 %v3962_v18 }
 0xa81   :  { %v3955_v41 = vadd.f32 %v3943_v11, %v9291_v13  ;;  %v3971_v62 = vsel %vm202_vm1, %v3957_v46, 0.0 }
 0xa83   :  { %v3965_v47 = vsel %vm202_vm1, %v3955_v41, 0.0 }
 0xa84   :  { %3966 = vadd.xlane.f32.xlu1 %v3965_v47  ;;  %3969 = vadd.xlane.f32.xlu0 %v3968_v55 }
 0xa88   :  { %3972 = vadd.xlane.f32.xlu1 %v3971_v62 }
 0xb09   :  { %v3964_v37 = vpop.xlane.xlu0 %3963 }
 0xb0a   :  { %v3974_v28 = vmul.f32 0.03125, %v3964_v37  ;;  %v6701_v37 = vld [vmem:[%s10163_s17 + $0x1] ss:$0 sm:$0xff] }
 0xb0c   :  { %v9370_v33 = vsub.f32 %v3954_v15, %v3974_v28 }
 0xb0d   :  { %v3967_v61 = vpop.xlane.xlu1 %3966  ;;  %v3970_v43 = vpop.xlane.xlu0 %3969 }
 0xb0e   :  { %v3975_v5 = vmul.f32 0.03125, %v3967_v61  ;;  %v3976_v30 = vmul.f32 0.03125, %v3970_v43  ;;  %v3982_v13 = vmul.f32 %v9370_v33, %v9370_v33  ;;  %v6704_v43 = vld [vmem:[%s10160_s8 + $0x110] sm:$0xff] }
 0xb10   :  { %v9374_v40 = vsub.f32 %v3955_v41, %v3975_v5  ;;  %v9376_v20 = vsub.f32 %v3956_v29, %v3976_v30  ;;  %v3986_v2 = vsel %vm202_vm1, %v3982_v13, 0.0  ;;  %v6700_v41 = vld [vmem:[%s10162_s16 + $0x1] ss:$0 sm:$0xff] }
 0xb11   :  { %v3973_v24 = vpop.xlane.xlu1 %3972  ;;  %3987 = vadd.xlane.f32.xlu0 %v3986_v2  ;;  %v6705_v2 = vld [vmem:[%s10160_s8 + $0x118] sm:$0xff] }
 0xb12   :  { %v3977_v52 = vmul.f32 0.03125, %v3973_v24  ;;  %v3983_v27 = vmul.f32 %v9374_v40, %v9374_v40  ;;  %v3984_v58 = vmul.f32 %v9376_v20, %v9376_v20  ;;  %v6713_v24 = vld [vmem:[%s10160_s8 + $0x158] sm:$0xff] }
 0xb13   :  { %v6742_v16 = vcombine.low %v6705_v2, %v6713_v24 }
 0xb14   :  { %v9383_v0 = vsub.f32 %v3957_v46, %v3977_v52  ;;  %v3989_v34 = vsel %vm202_vm1, %v3983_v27, 0.0  ;;  %v3992_v22 = vsel %vm202_vm1, %v3984_v58, 0.0  ;;  %v6743_v58 = vcombine.high %v6705_v2, %v6713_v24  ;;  %v8056_v2 = vld [vmem:[%s10161_s9 + $0x418] sm:$0xff]  }
 0xb15   :  { %3990 = vadd.xlane.f32.xlu1 %v3989_v34  ;;  %3993 = vadd.xlane.f32.xlu0 %v3992_v22  ;;  %v6730_v22 = vld [vmem:[%s10160_s8 + $0x1e0] sm:$0xff]  ;;  %v8057_v24 = vld [vmem:[%s10161_s9 + $0x498] sm:$0xff]  }
 0xb16   :  { %v3985_v63 = vmul.f32 %v9383_v0, %v9383_v0 }
 0xb18   :  { %v3995_v4 = vsel %vm202_vm1, %v3985_v63, 0.0  ;;  %v6723_v63 = vld [vmem:[%s10160_s8 + $0x1a8] sm:$0xff] }
 0xb19   :  { %3996 = vadd.xlane.f32.xlu1 %v3995_v4  ;;  %v6731_v4 = vld [vmem:[%s10160_s8 + $0x1e8] sm:$0xff] }
 0xb1a   :  { %v6763_v7 = vcombine.high %v6723_v63, %v6731_v4  ;;  %v6762_v49 = vcombine.low %v6723_v63, %v6731_v4  ;;  %v8065_v63 = vld [vmem:[%s10161_s9 + $0x488] sm:$0xff]   ;;  %v8066_v4 = vld [vmem:[%s10161_s9 + $0x440] sm:$0xff]  }
 0xb9a   :  { %v3988_v14 = vpop.xlane.xlu0 %3987 }
 0xb9b   :  { %v3998_v21 = vmul.f32 0.03125, %v3988_v14  ;;  %v6716_v14 = vld [vmem:[%s10160_s8 + $0x170] sm:$0xff] }
 0xb9d   :  { %v4002_v53 = vadd.f32 1e-05, %v3998_v21  ;;  %v6709_v21 = vld [vmem:[%s10160_s8 + $0x138] sm:$0xff] }
 0xb9e   :  { %v3991_v54 = vpop.xlane.xlu1 %3990  ;;  %v3994_v60 = vpop.xlane.xlu0 %3993 }
 0xb9f   :  { %8232 = vrsqrt.f32 %v4002_v53  ;;  %v3999_v9 = vmul.f32 0.03125, %v3991_v54  ;;  %v4000_v10 = vmul.f32 0.03125, %v3994_v60  ;;  %v6717_v53 = vld [vmem:[%s10160_s8 + $0x178] sm:$0xff]  ;;  %v6764_v54 = vcombine.low %v6724_v50, %v6732_v38 }
 0xba0   :  { %v6766_v60 = vcombine.low %v6725_v3, %v6733_v6 }
 0xba1   :  { %v4003_v42 = vadd.f32 1e-05, %v3999_v9  ;;  %v4004_v15 = vadd.f32 1e-05, %v4000_v10  ;;  %v6749_v9 = vcombine.high %v6708_v51, %v6716_v14  ;;  %v6751_v10 = vcombine.high %v6709_v21, %v6717_v53 }
 0xba2   :  { %v3997_v8 = vpop.xlane.xlu1 %3996 }
 0xba3   :  { %8234 = vrsqrt.f32 %v4003_v42  ;;  %v4001_v19 = vmul.f32 0.03125, %v3997_v8  ;;  %v6748_v42 = vcombine.low %v6708_v51, %v6716_v14  ;;  %v8038_v8 = vld [vmem:[%s10161_s9 + $0x478] sm:$0xff]  }
 0xba4   :  { %8236 = vrsqrt.f32 %v4004_v15  ;;  %v6750_v15 = vcombine.low %v6709_v21, %v6717_v53 }
 0xba5   :  { %v4005_v11 = vadd.f32 1e-05, %v4001_v19  ;;  %v8039_v19 = vld [vmem:[%s10161_s9 + $0x4f8] sm:$0xff]  }
 0xba7   :  { %8238 = vrsqrt.f32 %v4005_v11  ;;  %v8040_v11 = vld [vmem:[%s10161_s9 + $0x438] sm:$0xff]  }
 0xbac   :  { %v8233_v18 = vpop.eup %8232 }
 0xbad   :  { %v4010_v29 = vmul.f32 %v8233_v18, %v9370_v33  ;;  %v8041_v18 = vld [vmem:[%s10161_s9 + $0x4b8] sm:$0xff]  }
 0xbaf   :  { %v4020_v55 = vmul.f32 %v6700_v41, %v4010_v29  ;;  %v8042_v29 = vld [vmem:[%s10161_s9 + $0x470] sm:$0xff]  }
 0xbb0   :  { %v8235_v47 = vpop.eup %8234 }
 0xbb1   :  { %v4011_v46 = vmul.f32 %v8235_v47, %v9374_v40  ;;  %v8237_v62 = vpop.eup %8236  ;;  %v9437_v33 = vadd.f32 %v6701_v37, %v4020_v55  ;;  %v6712_v40 = vld [vmem:[%s10160_s8 + $0x150] sm:$0xff] }
 0xbb2   :  { %v4012_v30 = vmul.f32 %v8237_v62, %v9376_v20  ;;  %v6741_v20 = vcombine.high %v6704_v43, %v6712_v40  ;;  %v6740_v25 = vcombine.low %v6704_v43, %v6712_v40  ;;  %v8044_v47 = vld [vmem:[%s10161_s9 + $0x430] sm:$0xff]   ;;  %v8048_v62 = vld [vmem:[%s10161_s9 + $0x428] sm:$0xff]   ;;  %v8052_v43 = vld [vmem:[%s10161_s9 + $0x420] sm:$0xff]  }
 0xbb3   :  { %v4021_v28 = vmul.f32 %v6700_v41, %v4011_v46  ;;  %v8045_v55 = vld [vmem:[%s10161_s9 + $0x4b0] sm:$0xff]   ;;  %v8046_v46 = vld [vmem:[%s10161_s9 + $0x468] sm:$0xff]   ;;  %v8055_v40 = vld [vmem:[%s10161_s9 + $0x4d8] sm:$0xff]  }
 0xbb4   :  { %v8239_v61 = vpop.eup %8238  ;;  %v4022_v34 = vmul.f32 %v6700_v41, %v4012_v30  ;;  %v8053_v30 = vld [vmem:[%s10161_s9 + $0x4a0] sm:$0xff]  }
 0xbb5   :  { %v9439_v5 = vadd.f32 %v6701_v37, %v4021_v28  ;;  %v4013_v13 = vmul.f32 %v8239_v61, %v9383_v0  ;;  %v6722_v0 = vld [vmem:[%s10160_s8 + $0x1a0] sm:$0xff] }
 0xbb6   :  { %v6761_v1 = vcombine.high %v6722_v0, %v6730_v22  ;;  %v9476_v56 = vadd.f32 %v6701_v37, %v4022_v34  ;;  %v6760_v12 = vcombine.low %v6722_v0, %v6730_v22  ;;  %v8050_v28 = vld [vmem:[%s10161_s9 + $0x460] sm:$0xff]   ;;  %v8062_v0 = vld [vmem:[%s10161_s9 + $0x448] sm:$0xff]  }
 0xbb7   :  { %v9454_v52 = vpack.c.bf16 %v9439_v5, %v9437_v33  ;;  %v4023_v27 = vmul.f32 %v6700_v41, %v4013_v13  ;;  %v8043_v41 = vld [vmem:[%s10161_s9 + $0x4f0] sm:$0xff]   ;;  %v8051_v61 = vld [vmem:[%s10161_s9 + $0x4e0] sm:$0xff]   ;;  %v8054_v13 = vld [vmem:[%s10161_s9 + $0x458] sm:$0xff]  }
 0xbb8   :  { %v8063_v34 = vld [vmem:[%s10161_s9 + $0x4c8] sm:$0xff]  }
 0xbb9   :  { %6768 = vmatmul.mubr.msk.bf16.vlgmr.msra.gmra.mxu0 %vm202_vm1, %v9454_v52  ;;  %6770 = vmatmul.mubr.msk.bf16.vlgmr.msra.gmra.mxu1 %vm202_vm1, %v9454_v52  ;;  %v9474_v57 = vadd.f32 %v6701_v37, %v4023_v27  ;;  %v8049_v37 = vld [vmem:[%s10161_s9 + $0x4a8] sm:$0xff]   ;;  %v8059_v27 = vld [vmem:[%s10161_s9 + $0x4d0] sm:$0xff]  }
 0xbba   :  { %4362 = vmatprep.mubr.bf16.mxu0 %v10221_v31  ;;  %4415 = vmatprep.mubr.bf16.mxu1 %v10221_v31  ;;  %v8064_v22 = vld [vmem:[%s10161_s9 + $0x408] sm:$0xff]  }
 0xbbb   :  { %10222 = vst [vmem:[#allocation2_spill] sm:$0xff] %v9474_v57  ;;  %4439 = vmatpush1.bf16.msra.mxu0 %v6756_v36  ;;  %4492 = vmatpush1.bf16.msra.mxu1 %v6758_v45  ;;  %v9480_v48 = vpack.c.bf16 %v9474_v57, %v9476_v56  ;;  %v6765_v36 = vcombine.high %v6724_v50, %v6732_v38  ;;  %v10226_v38 = vld [vmem:[#allocation6_spill] sm:$0xff] }
 0xbbc   :  { %4440 = vmatprep.subr.bf16.mxu0 %v6741_v20  ;;  %4493 = vmatprep.subr.bf16.mxu1 %v6743_v58  ;;  %v6767_v45 = vcombine.high %v6725_v3, %v6733_v6  ;;  %v8060_v20 = vld [vmem:[%s10161_s9 + $0x410] sm:$0xff]   ;;  %v4085_v3 = vrot.slane %v9663_v17, %v10226_v38 }
 0xbbd   :  { %v8061_v58 = vld [vmem:[%s10161_s9 + $0x490] sm:$0xff]  }
 0xbbf   :  { %4441 = vmatpush1.bf16.msra.mxu0 %v6740_v25  ;;  %4494 = vmatpush1.bf16.msra.mxu1 %v6742_v16  ;;  %v8067_v25 = vld [vmem:[%s10161_s9 + $0x4c0] sm:$0xff]  }
 0xbc0   :  { %4544 = vmatprep.subr.bf16.mxu0 %v6761_v1  ;;  %4597 = vmatprep.subr.bf16.mxu1 %v6763_v7  ;;  %v8068_v16 = vld [vmem:[%s10161_s9 + $0x400] sm:$0xff]   ;;  %v8070_v7 = vld [vmem:[%s10161_s9 + $0x578] sm:$0xff]  }
 0xbc1   :  { %6769 = vmatmul.mubr.msk.bf16.gmra.mxu0 %vm202_vm1, %v9480_v48  ;;  %6771 = vmatmul.mubr.msk.bf16.gmra.mxu1 %vm202_vm1, %v9480_v48  ;;  %v8069_v1 = vld [vmem:[%s10161_s9 + $0x480] sm:$0xff]  }
 0xbc2   :  { %4458 = vmatprep.mubr.bf16.mxu0 %v10221_v31  ;;  %4511 = vmatprep.mubr.bf16.mxu1 %v10221_v31 }
 0xbc9   :  { %6772 = vmatmul.mubr.msk.bf16.vlgmr.msra.gmra.mxu0 %vm202_vm1, %v9454_v52  ;;  %6774 = vmatmul.mubr.msk.bf16.vlgmr.msra.gmra.mxu1 %vm202_vm1, %v9454_v52 }
 0xbca   :  { %4468 = vmatprep.mubr.bf16.mxu0 %v10221_v31  ;;  %4521 = vmatprep.mubr.bf16.mxu1 %v10221_v31 }
 0xbcb   :  { %4545 = vmatpush1.bf16.msra.mxu0 %v6760_v12  ;;  %4598 = vmatpush1.bf16.msra.mxu1 %v6762_v49  ;;  %v4081_v12 = vrot.slane %v9663_v17, %v10223_v35  ;;  %v10224_v49 = vld [vmem:[#allocation4_spill] sm:$0xff] }
 0xbcc   :  { %4546 = vmatprep.subr.bf16.mxu0 %v6745_v26  ;;  %4599 = vmatprep.subr.bf16.mxu1 %v6747_v44  ;;  %v4089_v26 = vrot.slane %v9663_v17, %v10224_v49  ;;  %v10225_v44 = vld [vmem:[#allocation5_spill] sm:$0xff] }
 0xbcd   :  { %v4077_v50 = vrot.slane %v9663_v17, %v10225_v44 }
 0xbcf   :  { %4547 = vmatpush1.bf16.msra.mxu0 %v6744_v32  ;;  %4600 = vmatpush1.bf16.msra.mxu1 %v6746_v59 }
 0xbd0   :  { %4650 = vmatprep.subr.bf16.mxu0 %v6765_v36  ;;  %4703 = vmatprep.subr.bf16.mxu1 %v6767_v45 }
 0xbd1   :  { %6773 = vmatmul.mubr.msk.bf16.gmra.mxu0 %vm202_vm1, %v9480_v48  ;;  %6775 = vmatmul.mubr.msk.bf16.gmra.mxu1 %vm202_vm1, %v9480_v48 }
 0xbd2   :  { %4564 = vmatprep.mubr.bf16.mxu0 %v10221_v31  ;;  %4617 = vmatprep.mubr.bf16.mxu1 %v10221_v31 }
 0xbd9   :  { %6776 = vmatmul.mubr.msk.bf16.vlgmr.msra.gmra.mxu0 %vm202_vm1, %v9454_v52  ;;  %6778 = vmatmul.mubr.msk.bf16.vlgmr.msra.gmra.mxu1 %vm202_vm1, %v9454_v52 }
 0xbda   :  { %4574 = vmatprep.mubr.bf16.mxu0 %v10221_v31  ;;  %4627 = vmatprep.mubr.bf16.mxu1 %v10221_v31 }
 0xbdb   :  { %4651 = vmatpush1.bf16.msra.mxu0 %v6764_v54  ;;  %4704 = vmatpush1.bf16.msra.mxu1 %v6766_v60 }
 0xbdc   :  { %4652 = vmatprep.subr.bf16.mxu0 %v6749_v9  ;;  %4705 = vmatprep.subr.bf16.mxu1 %v6751_v10 }
 0xbdf   :  { %4653 = vmatpush1.bf16.msra.mxu0 %v6748_v42  ;;  %4706 = vmatpush1.bf16.msra.mxu1 %v6750_v15 }
 0xbe0   :  { %7489 = vmatprep.subr.bf16.mxu0 %v8038_v8  ;;  %7517 = vmatprep.subr.bf16.mxu1 %v8039_v19 }
 0xbe1   :  { %6777 = vmatmul.mubr.msk.bf16.gmra.mxu0 %vm202_vm1, %v9480_v48  ;;  %6779 = vmatmul.mubr.msk.bf16.gmra.mxu1 %vm202_vm1, %v9480_v48 }
 0xbe2   :  { %4670 = vmatprep.mubr.bf16.mxu0 %v10221_v31  ;;  %4723 = vmatprep.mubr.bf16.mxu1 %v10221_v31 }
 0xbe9   :  { %6780 = vmatmul.mubr.msk.bf16.vlgmr.msra.gmra.mxu0 %vm202_vm1, %v9454_v52  ;;  %6782 = vmatmul.mubr.msk.bf16.vlgmr.msra.gmra.mxu1 %vm202_vm1, %v9454_v52  ;;  %v8058_v52 = vld [vmem:[%s10161_s9 + $0x450] sm:$0xff]  }
 0xbea   :  { %4680 = vmatprep.mubr.bf16.mxu0 %v10221_v31  ;;  %4733 = vmatprep.mubr.bf16.mxu1 %v10221_v31  ;;  %v8047_v31 = vld [vmem:[%s10161_s9 + $0x4e8] sm:$0xff]  }
 0xbeb   :  { %7490 = vmatpush3.bf16.msra.mxu0 %v8040_v11  ;;  %7518 = vmatpush3.bf16.msra.mxu1 %v8041_v18 }
 0xbec   :  { %7491 = vmatprep.subr.bf16.mxu0 %v8042_v29  ;;  %7519 = vmatprep.subr.bf16.mxu1 %v8043_v41 }
 0xbef   :  { %7492 = vmatpush3.bf16.msra.mxu0 %v8044_v47  ;;  %7520 = vmatpush3.bf16.msra.mxu1 %v8045_v55 }
 0xbf0   :  { %7493 = vmatprep.subr.bf16.mxu0 %v8046_v46  ;;  %7521 = vmatprep.subr.bf16.mxu1 %v8047_v31 }
 0xbf1   :  { %6781 = vmatmul.mubr.msk.bf16.gmra.mxu0 %vm202_vm1, %v9480_v48  ;;  %6783 = vmatmul.mubr.msk.bf16.gmra.mxu1 %vm202_vm1, %v9480_v48  ;;  %v8071_v48 = vld [vmem:[%s10161_s9 + $0x5f8] sm:$0xff]  }
 0xbf3   :  { %7494 = vmatpush3.bf16.msra.mxu0 %v8048_v62  ;;  %7522 = vmatpush3.bf16.msra.mxu1 %v8049_v37 }
 0xbf4   :  { %7495 = vmatprep.subr.bf16.mxu0 %v8050_v28  ;;  %7523 = vmatprep.subr.bf16.mxu1 %v8051_v61  ;;  %v8072_v61 = vld [vmem:[%s10161_s9 + $0x538] sm:$0xff]  }
 0xbf7   :  { %7496 = vmatpush3.bf16.msra.mxu0 %v8052_v43  ;;  %7524 = vmatpush3.bf16.msra.mxu1 %v8053_v30  ;;  %v8073_v43 = vld [vmem:[%s10161_s9 + $0x5b8] sm:$0xff]  }
 0xbf8   :  { %7497 = vmatprep.subr.bf16.mxu0 %v8054_v13  ;;  %7525 = vmatprep.subr.bf16.mxu1 %v8055_v40 }
 0xbfb   :  { %7498 = vmatpush3.bf16.msra.mxu0 %v8056_v2  ;;  %7526 = vmatpush3.bf16.msra.mxu1 %v8057_v24 }
 0xbfc   :  { %7499 = vmatprep.subr.bf16.mxu0 %v8058_v52  ;;  %7527 = vmatprep.subr.bf16.mxu1 %v8059_v27  ;;  %v8074_v52 = vld [vmem:[%s10161_s9 + $0x570] sm:$0xff]  }
 0xbfd   :  { %v8075_v27 = vld [vmem:[%s10161_s9 + $0x5f0] sm:$0xff]  }
 0xbff   :  { %7500 = vmatpush3.bf16.msra.mxu0 %v8060_v20  ;;  %7528 = vmatpush3.bf16.msra.mxu1 %v8061_v58 }
 0xc00   :  { %7501 = vmatprep.subr.bf16.mxu0 %v8062_v0  ;;  %7529 = vmatprep.subr.bf16.mxu1 %v8063_v34 }
 0xc03   :  { %7502 = vmatpush3.bf16.msra.mxu0 %v8064_v22  ;;  %7530 = vmatpush3.bf16.msra.mxu1 %v8065_v63 }
 0xc04   :  { %7503 = vmatprep.subr.bf16.mxu0 %v8066_v4  ;;  %7531 = vmatprep.subr.bf16.mxu1 %v8067_v25 }
 0xc07   :  { %7504 = vmatpush3.bf16.msra.mxu0 %v8068_v16  ;;  %7532 = vmatpush3.bf16.msra.mxu1 %v8069_v1  ;;  %v8076_v1 = vld [vmem:[%s10161_s9 + $0x530] sm:$0xff]  }
 0xc08   :  { %7545 = vmatprep.subr.bf16.mxu0 %v8070_v7  ;;  %7573 = vmatprep.subr.bf16.mxu1 %v8071_v48 }
 0xc79   :  { %v4354_v39 = vpop.f32.mrf.mxu0  ;;  %v4407_v23 = vpop.f32.mrf.mxu1 }
 0xc7a   :  { %v4355_v53 = vadd.f32 %v4354_v39, %v4077_v50  ;;  %v4408_v54 = vadd.f32 %v4407_v23, %v4085_v3 }
 0xc7b   :  { %v4356_v6 = vpop.f32.mrf.mxu0  ;;  %v4409_v32 = vpop.f32.mrf.mxu1 }
 0xc7c   :  { %v4357_v45 = vadd.f32 %v4356_v6, %v4081_v12  ;;  %v4410_v51 = vadd.f32 %v4409_v32, %v4089_v26  ;;  %v4744_v55 = vmax.f32 %v4355_v53, 0.0  ;;  %v4746_v46 = vmax.f32 %v4408_v54, 0.0  ;;  %v8078_v32 = vld [vmem:[%s10161_s9 + $0x568] sm:$0xff]  }
 0xc7d   :  { %v4358_v59 = vpop.f32.mrf.mxu0  ;;  %v4411_v36 = vpop.f32.mrf.mxu1  ;;  %v8079_v54 = vld [vmem:[%s10161_s9 + $0x5e8] sm:$0xff]  }
 0xc7e   :  { %v4359_v14 = vadd.f32 %v4358_v59, %v4077_v50  ;;  %v4412_v21 = vadd.f32 %v4411_v36, %v4085_v3  ;;  %v4745_v18 = vmax.f32 %v4357_v45, 0.0  ;;  %v4747_v29 = vmax.f32 %v4410_v51, 0.0 }
 0xc7f   :  { %v4360_v60 = vpop.f32.mrf.mxu0  ;;  %v4413_v9 = vpop.f32.mrf.mxu1 }
 0xc80   :  { %v4361_v10 = vadd.f32 %v4360_v60, %v4081_v12  ;;  %v4414_v42 = vadd.f32 %v4413_v9, %v4089_v26  ;;  %v4760_v15 = vmax.f32 %v4359_v14, 0.0  ;;  %v4762_v8 = vmax.f32 %v4412_v21, 0.0 }
 0xc81   :  { %v4364_v19 = vpop.f32.mrf.mxu0  ;;  %v4417_v11 = vpop.f32.mrf.mxu1 }
 0xc82   :  { %v4761_v41 = vmax.f32 %v4361_v10, 0.0  ;;  %v4763_v47 = vmax.f32 %v4414_v42, 0.0  ;;  %v5065_v30 = vpack.c.bf16 %v4760_v15, %v4744_v55  ;;  %v5067_v13 = vpack.c.bf16 %v4762_v8, %v4746_v46  ;;  %v8080_v42 = vld [vmem:[%s10161_s9 + $0x528] sm:$0xff]   ;;  %v8083_v55 = vld [vmem:[%s10161_s9 + $0x5e0] sm:$0xff]  }
 0xc83   :  { %v4366_v31 = vpop.f32.mrf.mxu0  ;;  %v4419_v62 = vpop.f32.mrf.mxu1  ;;  %v4365_v34 = vadd.f32 %v4364_v19, %v4077_v50  ;;  %v4418_v4 = vadd.f32 %v4417_v11, %v4085_v3  ;;  %v8081_v11 = vld [vmem:[%s10161_s9 + $0x5a8] sm:$0xff]  }
 0xc84   :  { %v5066_v37 = vpack.c.bf16 %v4761_v41, %v4745_v18  ;;  %v5068_v28 = vpack.c.bf16 %v4763_v47, %v4747_v29  ;;  %v4367_v40 = vadd.f32 %v4366_v31, %v4081_v12  ;;  %v4420_v20 = vadd.f32 %v4419_v62, %v4089_v26  ;;  %v8082_v18 = vld [vmem:[%s10161_s9 + $0x560] sm:$0xff]  }
 0xc85   :  { %v4368_v2 = vpop.f32.mrf.mxu0  ;;  %v4421_v24 = vpop.f32.mrf.mxu1  ;;  %v4776_v14 = vmax.f32 %v4365_v34, 0.0  ;;  %v4778_v60 = vmax.f32 %v4418_v4, 0.0 }
 0xc86   :  { %v4369_v58 = vadd.f32 %v4368_v2, %v4077_v50  ;;  %v4422_v0 = vadd.f32 %v4421_v24, %v4085_v3  ;;  %5905 = vmatprep.mubr.bf16.mxu0 %v5066_v37  ;;  %5954 = vmatprep.mubr.bf16.mxu1 %v5068_v28  ;;  %v4777_v7 = vmax.f32 %v4367_v40, 0.0  ;;  %v10227_v50 = vld [vmem:[#allocation7_spill] sm:$0xff]  ;;  %v8077_v3 = vld [vmem:[%s10161_s9 + $0x5b0] sm:$0xff]   ;;  %v4779_v59 = vmax.f32 %v4420_v20, 0.0  ;;  %v8084_v28 = vld [vmem:[%s10161_s9 + $0x520] sm:$0xff]  }
 0xc87   :  { %v4370_v22 = vpop.f32.mrf.mxu0  ;;  %v4423_v63 = vpop.f32.mrf.mxu1  ;;  %5906 = vmatmul.mubr.bf16.vlgmr.msra.gmra.mxu0 %v5065_v30  ;;  %5955 = vmatmul.mubr.bf16.vlgmr.msra.gmra.mxu1 %v5067_v13  ;;  %v9694_v6 = vrot.slane %v9663_v17, %v10227_v50  ;;  %v8085_v30 = vld [vmem:[%s10161_s9 + $0x5a0] sm:$0xff]   ;;  %v8086_v13 = vld [vmem:[%s10161_s9 + $0x558] sm:$0xff]  }
 0xc88   :  { %v4371_v25 = vadd.f32 %v4370_v22, %v4081_v12  ;;  %v4424_v16 = vadd.f32 %v4423_v63, %v4089_v26  ;;  %7546 = vmatpush3.bf16.msra.mxu0 %v8072_v61  ;;  %7574 = vmatpush3.bf16.msra.mxu1 %v8073_v43  ;;  %v4792_v48 = vmax.f32 %v4369_v58, 0.0  ;;  %v10228_v12 = vld [vmem:[#allocation8_spill] sm:$0xff]  ;;  %v4794_v36 = vmax.f32 %v4422_v0, 0.0  ;;  %v8088_v22 = vld [vmem:[%s10161_s9 + $0x518] sm:$0xff]  }
 0xc89   :  { %v9688_v39 = vpop.f32.mrf.mxu0  ;;  %v9690_v23 = vpop.f32.mrf.mxu1  ;;  %7547 = vmatprep.subr.bf16.mxu0 %v8074_v52  ;;  %7575 = vmatprep.subr.bf16.mxu1 %v8075_v27  ;;  %v9698_v26 = vrot.slane %v9663_v17, %v10228_v12  ;;  %v8087_v27 = vld [vmem:[%s10161_s9 + $0x5d8] sm:$0xff]  }
 0xc8a   :  { %v4793_v45 = vmax.f32 %v4371_v25, 0.0  ;;  %v4795_v51 = vmax.f32 %v4424_v16, 0.0  ;;  %v5081_v15 = vpack.c.bf16 %v4792_v48, %v4776_v14  ;;  %v5083_v29 = vpack.c.bf16 %v4794_v36, %v4778_v60  ;;  %v8089_v25 = vld [vmem:[%s10161_s9 + $0x598] sm:$0xff]   ;;  %v8090_v16 = vld [vmem:[%s10161_s9 + $0x550] sm:$0xff]  }
 0xc8b   :  { %v4462_v21 = vpop.f32.mrf.mxu0  ;;  %v4515_v53 = vpop.f32.mrf.mxu1  ;;  %v8093_v36 = vld [vmem:[%s10161_s9 + $0x590] sm:$0xff]   ;;  %v10229_v14 = vld [vmem:[#allocation9_spill] sm:$0xff] }
 0xc8c   :  { %v5082_v9 = vpack.c.bf16 %v4793_v45, %v4777_v7  ;;  %v5084_v10 = vpack.c.bf16 %v4795_v51, %v4779_v59  ;;  %7548 = vmatpush3.bf16.msra.mxu0 %v8076_v1  ;;  %7576 = vmatpush3.bf16.msra.mxu1 %v8077_v3  ;;  %v4463_v41 = vadd.f32 %v4462_v21, %v9694_v6  ;;  %v8091_v1 = vld [vmem:[%s10161_s9 + $0x5d0] sm:$0xff]   ;;  %v8094_v45 = vld [vmem:[%s10161_s9 + $0x548] sm:$0xff]  }
 0xc8d   :  { %v9712_v8 = vpop.f32.mrf.mxu0  ;;  %v9714_v19 = vpop.f32.mrf.mxu1  ;;  %7549 = vmatprep.subr.bf16.mxu0 %v8078_v32  ;;  %v4516_v47 = vadd.f32 %v4515_v53, %v9698_v26  ;;  %7577 = vmatprep.subr.bf16.mxu1 %v8079_v54  ;;  %v8092_v3 = vld [vmem:[%s10161_s9 + $0x510] sm:$0xff]   ;;  %v8095_v51 = vld [vmem:[%s10161_s9 + $0x5c8] sm:$0xff]   ;;  %v4093_v21 = vrot.slane %v9663_v17, %v10229_v14  ;;  %v10230_v54 = vld [vmem:[#allocation10_spill] sm:$0xff] }
 0xc8e   :  { %5913 = vmatprep.mubr.bf16.mxu0 %v5082_v9  ;;  %5962 = vmatprep.mubr.bf16.mxu1 %v5084_v10  ;;  %v4749_v40 = vmax.f32 %v4463_v41, 0.0  ;;  %v4101_v60 = vrot.slane %v9663_v17, %v10230_v54  ;;  %v8096_v10 = vld [vmem:[%s10161_s9 + $0x508] sm:$0xff]  }
 0xc8f   :  { %v4466_v46 = vpop.f32.mrf.mxu0  ;;  %v4519_v31 = vpop.f32.mrf.mxu1  ;;  %5914 = vmatmul.mubr.bf16.gmra.mxu0 %v5081_v15  ;;  %5963 = vmatmul.mubr.bf16.gmra.mxu1 %v5083_v29  ;;  %v4751_v2 = vmax.f32 %v4516_v47, 0.0  ;;  %v8097_v15 = vld [vmem:[%s10161_s9 + $0x588] sm:$0xff]   ;;  %v8099_v29 = vld [vmem:[%s10161_s9 + $0x5c0] sm:$0xff]  }
 0xc90   :  { %v4467_v62 = vadd.f32 %v4466_v46, %v9694_v6  ;;  %v4520_v37 = vadd.f32 %v4519_v31, %v9698_v26  ;;  %7550 = vmatpush3.bf16.msra.mxu0 %v8080_v42  ;;  %7578 = vmatpush3.bf16.msra.mxu1 %v8081_v11  ;;  %v4465_v42 = vadd.f32 %v9712_v8, %v4093_v21  ;;  %v8098_v11 = vld [vmem:[%s10161_s9 + $0x540] sm:$0xff]  }
 0xc91   :  { %v9732_v61 = vpop.f32.mrf.mxu0  ;;  %v9734_v43 = vpop.f32.mrf.mxu1  ;;  %7551 = vmatprep.subr.bf16.mxu0 %v8082_v18  ;;  %7579 = vmatprep.subr.bf16.mxu1 %v8083_v55  ;;  %v4518_v17 = vadd.f32 %v9714_v19, %v4101_v60  ;;  %v4461_v8 = vadd.f32 %v9688_v39, %v4093_v21  ;;  %v4514_v55 = vadd.f32 %v9690_v23, %v4101_v60  ;;  %v8100_v19 = vld [vmem:[%s10161_s9 + $0x500] sm:$0xff]   ;;  %v8102_v23 = vld [vmem:[%s10161_s9 + $0x678] sm:$0xff]  }
 0xc92   :  { %v4765_v24 = vmax.f32 %v4467_v62, 0.0  ;;  %v4767_v52 = vmax.f32 %v4520_v37, 0.0  ;;  %v4764_v62 = vmax.f32 %v4465_v42, 0.0  ;;  %v8101_v39 = vld [vmem:[%s10161_s9 + $0x580] sm:$0xff]  }
 0xc93   :  { %v4472_v20 = vpop.f32.mrf.mxu0  ;;  %v4525_v58 = vpop.f32.mrf.mxu1 }
 0xc94   :  { %v5070_v0 = vpack.c.bf16 %v4765_v24, %v4749_v40  ;;  %v5072_v34 = vpack.c.bf16 %v4767_v52, %v4751_v2  ;;  %7552 = vmatpush3.bf16.msra.mxu0 %v8084_v28  ;;  %7580 = vmatpush3.bf16.msra.mxu1 %v8085_v30  ;;  %v4473_v46 = vadd.f32 %v4472_v20, %v9694_v6  ;;  %v8103_v30 = vld [vmem:[%s10161_s9 + $0x6f8] sm:$0xff]   ;;  %v4750_v24 = vmax.f32 %v4514_v55, 0.0 }
 0xc95   :  { %v9748_v63 = vpop.f32.mrf.mxu0  ;;  %v9750_v4 = vpop.f32.mrf.mxu1  ;;  %7553 = vmatprep.subr.bf16.mxu0 %v8086_v13  ;;  %7581 = vmatprep.subr.bf16.mxu1 %v8087_v27  ;;  %v4526_v37 = vadd.f32 %v4525_v58, %v9698_v26  ;;  %v4748_v13 = vmax.f32 %v4461_v8, 0.0 }
 0xc96   :  { %6003 = vmatprep.mubr.bf16.mxu0 %v5070_v0  ;;  %6052 = vmatprep.mubr.bf16.mxu1 %v5072_v34  ;;  %v4781_v52 = vmax.f32 %v4473_v46, 0.0  ;;  %v4475_v34 = vadd.f32 %v9748_v63, %v4093_v21  ;;  %v8105_v63 = vld [vmem:[%s10161_s9 + $0x6b8] sm:$0xff]  }
 0xc97   :  { %v4476_v7 = vpop.f32.mrf.mxu0  ;;  %v4529_v48 = vpop.f32.mrf.mxu1  ;;  %v5069_v58 = vpack.c.bf16 %v4764_v62, %v4748_v13  ;;  %v4783_v0 = vmax.f32 %v4526_v37, 0.0  ;;  %v8112_v62 = vld [vmem:[%s10161_s9 + $0x628] sm:$0xff]  }
 0xc98   :  { %7554 = vmatpush3.bf16.msra.mxu0 %v8088_v22  ;;  %7582 = vmatpush3.bf16.msra.mxu1 %v8089_v25  ;;  %v4477_v18 = vadd.f32 %v4476_v7, %v9694_v6  ;;  %v4530_v41 = vadd.f32 %v4529_v48, %v9698_v26  ;;  %v4766_v6 = vmax.f32 %v4518_v17, 0.0  ;;  %v9822_v26 = vld [vmem:[%s10164_s14 + $0x18] sm:$0xff]  ;;  %v4471_v48 = vadd.f32 %v9732_v61, %v4093_v21 }
 0xc99   :  { %v9764_v32 = vpop.f32.mrf.mxu0  ;;  %v9766_v59 = vpop.f32.mrf.mxu1  ;;  %7555 = vmatprep.subr.bf16.mxu0 %v8090_v16  ;;  %7583 = vmatprep.subr.bf16.mxu1 %v8091_v1  ;;  %v9826_v27 = vrot.slane %v9822_v26, %v10223_v35  ;;  %v9831_v22 = vrot.slane %v9822_v26, %v10224_v49  ;;  %v8104_v25 = vld [vmem:[%s10161_s9 + $0x638] sm:$0xff]   ;;  %v4528_v35 = vadd.f32 %v9750_v4, %v4101_v60  ;;  %v8106_v49 = vld [vmem:[%s10161_s9 + $0x670] sm:$0xff]   ;;  %v4796_v42 = vmax.f32 %v4475_v34, 0.0 }
 0xc9a   :  { %v4797_v28 = vmax.f32 %v4477_v18, 0.0  ;;  %v4799_v40 = vmax.f32 %v4530_v41, 0.0  ;;  %v5071_v16 = vpack.c.bf16 %v4766_v6, %v4750_v24  ;;  %v8107_v4 = vld [vmem:[%s10161_s9 + $0x6f0] sm:$0xff]   ;;  %v8111_v18 = vld [vmem:[%s10161_s9 + $0x6e8] sm:$0xff]   ;;  %v8114_v6 = vld [vmem:[%s10161_s9 + $0x660] sm:$0xff]  }
 0xc9b   :  { %v4568_v53 = vpop.f32.mrf.mxu0  ;;  %v9781_v9 = vpop.f32.mrf.mxu1  ;;  %v8117_v24 = vld [vmem:[%s10161_s9 + $0x6a0] sm:$0xff]   ;;  %v8120_v34 = vld [vmem:[%s10161_s9 + $0x618] sm:$0xff]  }
 0xc9c   :  { %7556 = vmatpush3.bf16.msra.mxu0 %v8092_v3  ;;  %7584 = vmatpush3.bf16.msra.mxu1 %v8093_v36  ;;  %v5086_v1 = vpack.c.bf16 %v4797_v28, %v4781_v52  ;;  %v5088_v3 = vpack.c.bf16 %v4799_v40, %v4783_v0  ;;  %v4622_v61 = vadd.f32 %v9781_v9, %v9831_v22  ;;  %v4780_v9 = vmax.f32 %v4471_v48, 0.0  ;;  %v8118_v52 = vld [vmem:[%s10161_s9 + $0x658] sm:$0xff]   ;;  %v8126_v48 = vld [vmem:[%s10161_s9 + $0x648] sm:$0xff]  }
 0xc9d   :  { %7557 = vmatprep.subr.bf16.mxu0 %v8094_v45  ;;  %7585 = vmatprep.subr.bf16.mxu1 %v8095_v51  ;;  %v9800_v47 = vpop.f32.mrf.mxu0  ;;  %v9804_v31 = vpop.f32.mrf.mxu1  ;;  %v4524_v45 = vadd.f32 %v9734_v43, %v4101_v60  ;;  %v4569_v51 = vadd.f32 %v4568_v53, %v9826_v27  ;;  %v8109_v53 = vld [vmem:[%s10161_s9 + $0x6b0] sm:$0xff]   ;;  %v8110_v60 = vld [vmem:[%s10161_s9 + $0x668] sm:$0xff]  }
 0xc9e   :  { %v5085_v55 = vpack.c.bf16 %v4796_v42, %v4780_v9  ;;  %v4755_v46 = vmax.f32 %v4622_v61, 0.0  ;;  %v8128_v42 = vld [vmem:[%s10161_s9 + $0x608] sm:$0xff]  }
 0xc9f   :  { %v4572_v2 = vpop.f32.mrf.mxu0  ;;  %v4625_v20 = vpop.f32.mrf.mxu1  ;;  %v4753_v8 = vmax.f32 %v4569_v51, 0.0 }
 0xca0   :  { %7558 = vmatpush3.bf16.msra.mxu0 %v8096_v10  ;;  %7586 = vmatpush3.bf16.msra.mxu1 %v8097_v15  ;;  %v4573_v7 = vadd.f32 %v4572_v2, %v9826_v27  ;;  %v4626_v36 = vadd.f32 %v4625_v20, %v9831_v22  ;;  %v8108_v15 = vld [vmem:[%s10161_s9 + $0x630] sm:$0xff]   ;;  %v8116_v2 = vld [vmem:[%s10161_s9 + $0x620] sm:$0xff]   ;;  %v8119_v20 = vld [vmem:[%s10161_s9 + $0x6d8] sm:$0xff]  }
 0xca1   :  { %7559 = vmatprep.subr.bf16.mxu0 %v8098_v11  ;;  %7587 = vmatprep.subr.bf16.mxu1 %v8099_v29  ;;  %v9851_v10 = vpop.f32.mrf.mxu0  ;;  %v9855_v21 = vpop.f32.mrf.mxu1  ;;  %v4798_v11 = vmax.f32 %v4528_v35, 0.0  ;;  %v4782_v29 = vmax.f32 %v4524_v45, 0.0  ;;  %v8123_v35 = vld [vmem:[%s10161_s9 + $0x6d0] sm:$0xff]   ;;  %v4117_v45 = vrot.slane %v9822_v26, %v10226_v38 }
 0xca2   :  { %v4769_v43 = vmax.f32 %v4573_v7, 0.0  ;;  %v4771_v17 = vmax.f32 %v4626_v36, 0.0  ;;  %v4109_v36 = vrot.slane %v9822_v26, %v10225_v44  ;;  %v8130_v44 = vld [vmem:[%s10161_s9 + $0x640] sm:$0xff]  }
 0xca3   :  { %v9869_v41 = vpop.f32.mrf.mxu0  ;;  %v5087_v37 = vpack.c.bf16 %v4798_v11, %v4782_v29  ;;  %v4624_v38 = vadd.f32 %v9804_v31, %v4117_v45  ;;  %v4620_v9 = vadd.f32 %v9766_v59, %v4117_v45  ;;  %v8132_v31 = vld [vmem:[%s10161_s9 + $0x600] sm:$0xff]  }
 0xca4   :  { %7560 = vmatpush3.bf16.msra.mxu0 %v8100_v19  ;;  %7588 = vmatpush3.bf16.msra.mxu1 %v8101_v39  ;;  %v9871_v19 = vpop.f32.mrf.mxu1  ;;  %v5074_v39 = vpack.c.bf16 %v4769_v43, %v4753_v8  ;;  %v5076_v28 = vpack.c.bf16 %v4771_v17, %v4755_v46  ;;  %v4571_v61 = vadd.f32 %v9800_v47, %v4109_v36  ;;  %v8131_v43 = vld [vmem:[%s10161_s9 + $0x6c0] sm:$0xff]  }
 0xca5   :  { %7601 = vmatprep.subr.bf16.mxu0 %v8102_v23  ;;  %7629 = vmatprep.subr.bf16.mxu1 %v8103_v30  ;;  %v8113_v23 = vld [vmem:[%s10161_s9 + $0x6a8] sm:$0xff]   ;;  %v8115_v30 = vld [vmem:[%s10161_s9 + $0x6e0] sm:$0xff]   ;;  %v9885_v13 = vpop.f32.mrf.mxu0  ;;  %v4567_v47 = vadd.f32 %v9764_v32, %v4109_v36  ;;  %v4579_v17 = vadd.f32 %v9869_v41, %v9826_v27  ;;  %v4632_v32 = vadd.f32 %v9871_v19, %v9831_v22  ;;  %v4770_v8 = vmax.f32 %v4624_v38, 0.0 }
 0xca6   :  { %v9887_v40 = vpop.f32.mrf.mxu1  ;;  %v4768_v29 = vmax.f32 %v4571_v61, 0.0  ;;  %v8133_v59 = vld [vmem:[%s10161_s9 + $0x680] sm:$0xff]   ;;  %v4754_v19 = vmax.f32 %v4620_v9, 0.0  ;;  %v8144_v38 = vld [vmem:[%s10161_s9 + $0x728] sm:$0xff]  }
 0xca7   :  { %6004 = vmatmul.mubr.bf16.vlgmr.msra.gmra.mxu0 %v5069_v58  ;;  %6053 = vmatmul.mubr.bf16.vlgmr.msra.gmra.mxu1 %v5071_v16  ;;  %v4582_v58 = vpop.f32.mrf.mxu0  ;;  %v8122_v16 = vld [vmem:[%s10161_s9 + $0x650] sm:$0xff]   ;;  %v4752_v46 = vmax.f32 %v4567_v47, 0.0  ;;  %v8145_v47 = vld [vmem:[%s10161_s9 + $0x7a8] sm:$0xff]  }
 0xca8   :  { %6011 = vmatprep.mubr.bf16.mxu0 %v5086_v1  ;;  %6060 = vmatprep.mubr.bf16.mxu1 %v5088_v3  ;;  %v4635_v0 = vpop.f32.mrf.mxu1  ;;  %v8127_v3 = vld [vmem:[%s10161_s9 + $0x6c8] sm:$0xff]   ;;  %v4583_v11 = vadd.f32 %v4582_v58, %v9826_v27  ;;  %v8134_v27 = vld [vmem:[%s10161_s9 + $0x778] sm:$0xff]  }
 0xca9   :  { %7602 = vmatpush3.bf16.msra.mxu0 %v8104_v25  ;;  %7630 = vmatpush3.bf16.msra.mxu1 %v8105_v63  ;;  %v8121_v25 = vld [vmem:[%s10161_s9 + $0x698] sm:$0xff]   ;;  %v9913_v1 = vpop.f32.mrf.mxu0  ;;  %v8124_v63 = vld [vmem:[%s10161_s9 + $0x610] sm:$0xff]  }
 0xcaa   :  { %7603 = vmatprep.subr.bf16.mxu0 %v8106_v49  ;;  %7631 = vmatprep.subr.bf16.mxu1 %v8107_v4  ;;  %v9915_v7 = vpop.f32.mrf.mxu1  ;;  %v8125_v49 = vld [vmem:[%s10161_s9 + $0x690] sm:$0xff]   ;;  %v4801_v41 = vmax.f32 %v4583_v11, 0.0 }
 0xcab   :  { %v4674_v4 = vpop.f32.mrf.mxu0 }
 0xcac   :  { %v4727_v51 = vpop.f32.mrf.mxu1 }
 0xcad   :  { %7604 = vmatpush3.bf16.msra.mxu0 %v8108_v15  ;;  %7632 = vmatpush3.bf16.msra.mxu1 %v8109_v53  ;;  %v8129_v15 = vld [vmem:[%s10161_s9 + $0x688] sm:$0xff]   ;;  %v4636_v53 = vadd.f32 %v4635_v0, %v9831_v22  ;;  %v4577_v0 = vadd.f32 %v9851_v10, %v4109_v36  ;;  %v8140_v10 = vld [vmem:[%s10161_s9 + $0x730] sm:$0xff]  }
 0xcae   :  { %7605 = vmatprep.subr.bf16.mxu0 %v8110_v60  ;;  %7633 = vmatprep.subr.bf16.mxu1 %v8111_v18  ;;  %v9950_v60 = vpop.f32.mrf.mxu0  ;;  %v9955_v18 = vpop.f32.mrf.mxu1 }
 0xcaf   :  { %6012 = vmatmul.mubr.bf16.gmra.mxu0 %v5085_v55  ;;  %6061 = vmatmul.mubr.bf16.gmra.mxu1 %v5087_v37  ;;  %v8135_v55 = vld [vmem:[%s10161_s9 + $0x7f8] sm:$0xff]   ;;  %v4785_v37 = vmax.f32 %v4579_v17, 0.0  ;;  %v8147_v17 = vld [vmem:[%s10161_s9 + $0x7e0] sm:$0xff]  }
 0xcb0   :  { %6101 = vmatprep.mubr.bf16.mxu0 %v5074_v39  ;;  %6150 = vmatprep.mubr.bf16.mxu1 %v5076_v28  ;;  %v4678_v22 = vpop.f32.mrf.mxu0  ;;  %v9973_v39 = vrot.slane %v9822_v26, %v10227_v50  ;;  %v4787_v28 = vmax.f32 %v4632_v32, 0.0  ;;  %v4634_v50 = vadd.f32 %v9887_v40, %v4117_v45  ;;  %v8139_v40 = vld [vmem:[%s10161_s9 + $0x7f0] sm:$0xff]   ;;  %v8148_v32 = vld [vmem:[%s10161_s9 + $0x720] sm:$0xff]  }
 0xcb1   :  { %7606 = vmatpush3.bf16.msra.mxu0 %v8112_v62  ;;  %7634 = vmatpush3.bf16.msra.mxu1 %v8113_v23  ;;  %v4803_v62 = vmax.f32 %v4636_v53, 0.0  ;;  %v4731_v23 = vpop.f32.mrf.mxu1  ;;  %v8146_v53 = vld [vmem:[%s10161_s9 + $0x760] sm:$0xff]  }
 0xcb2   :  { %7607 = vmatprep.subr.bf16.mxu0 %v8114_v6  ;;  %7635 = vmatprep.subr.bf16.mxu1 %v8115_v30  ;;  %v5073_v6 = vpack.c.bf16 %v4768_v29, %v4752_v46  ;;  %v4581_v30 = vadd.f32 %v9885_v13, %v4109_v36  ;;  %v4679_v58 = vadd.f32 %v4678_v22, %v9973_v39  ;;  %v8137_v13 = vld [vmem:[%s10161_s9 + $0x7b8] sm:$0xff]   ;;  %v8142_v36 = vld [vmem:[%s10161_s9 + $0x768] sm:$0xff]   ;;  %v8154_v22 = vld [vmem:[%s10161_s9 + $0x750] sm:$0xff]  }
 0xcb3   :  { %v10025_v29 = vpop.f32.mrf.mxu1  ;;  %v8152_v46 = vld [vmem:[%s10161_s9 + $0x718] sm:$0xff]  }
 0xcb5   :  { %7608 = vmatpush3.bf16.msra.mxu0 %v8116_v2  ;;  %7636 = vmatpush3.bf16.msra.mxu1 %v8117_v24  ;;  %v9978_v2 = vrot.slane %v9822_v26, %v10228_v12  ;;  %v8136_v24 = vld [vmem:[%s10161_s9 + $0x738] sm:$0xff]   ;;  %v8138_v12 = vld [vmem:[%s10161_s9 + $0x770] sm:$0xff]  }
 0xcb6   :  { %7609 = vmatprep.subr.bf16.mxu0 %v8118_v52  ;;  %7637 = vmatprep.subr.bf16.mxu1 %v8119_v20  ;;  %v5075_v52 = vpack.c.bf16 %v4770_v8, %v4754_v19  ;;  %v5090_v20 = vpack.c.bf16 %v4801_v41, %v4785_v37  ;;  %v8151_v8 = vld [vmem:[%s10161_s9 + $0x7d8] sm:$0xff]   ;;  %v8155_v19 = vld [vmem:[%s10161_s9 + $0x7d0] sm:$0xff]  }
 0xcb9   :  { %7610 = vmatpush3.bf16.msra.mxu0 %v8120_v34  ;;  %7638 = vmatpush3.bf16.msra.mxu1 %v8121_v25  ;;  %v5092_v34 = vpack.c.bf16 %v4803_v62, %v4787_v28  ;;  %v4732_v25 = vadd.f32 %v4731_v23, %v9978_v2  ;;  %v8153_v62 = vld [vmem:[%s10161_s9 + $0x798] sm:$0xff]   ;;  %v8157_v28 = vld [vmem:[%s10161_s9 + $0x790] sm:$0xff]  }
 0xcba   :  { %7611 = vmatprep.subr.bf16.mxu0 %v8122_v16  ;;  %7639 = vmatprep.subr.bf16.mxu1 %v8123_v35  ;;  %v4630_v16 = vadd.f32 %v9855_v21, %v4117_v45  ;;  %v4675_v35 = vadd.f32 %v4674_v4, %v9973_v39  ;;  %v8141_v21 = vld [vmem:[%s10161_s9 + $0x7b0] sm:$0xff]   ;;  %v4784_v4 = vmax.f32 %v4577_v0, 0.0  ;;  %v8161_v0 = vld [vmem:[%s10161_s9 + $0x788] sm:$0xff]  }
 0xcbb   :  { %v4775_v45 = vmax.f32 %v4732_v25, 0.0 }
 0xcbc   :  { %v4757_v61 = vmax.f32 %v4675_v35, 0.0 }
 0xcbd   :  { %7612 = vmatpush3.bf16.msra.mxu0 %v8124_v63  ;;  %7640 = vmatpush3.bf16.msra.mxu1 %v8125_v49  ;;  %v4800_v63 = vmax.f32 %v4581_v30, 0.0  ;;  %v4728_v49 = vadd.f32 %v4727_v51, %v9978_v2  ;;  %v8143_v51 = vld [vmem:[%s10161_s9 + $0x7e8] sm:$0xff]  }
 0xcbe   :  { %7613 = vmatprep.subr.bf16.mxu0 %v8126_v48  ;;  %7641 = vmatprep.subr.bf16.mxu1 %v8127_v3  ;;  %v4802_v48 = vmax.f32 %v4634_v50, 0.0  ;;  %v4773_v3 = vmax.f32 %v4679_v58, 0.0  ;;  %v8158_v30 = vld [vmem:[%s10161_s9 + $0x748] sm:$0xff]  }
 0xcc1   :  { %7614 = vmatpush3.bf16.msra.mxu0 %v8128_v42  ;;  %7642 = vmatpush3.bf16.msra.mxu1 %v8129_v15  ;;  %v4786_v42 = vmax.f32 %v4630_v16, 0.0  ;;  %v5089_v15 = vpack.c.bf16 %v4800_v63, %v4784_v4 }
 0xcc2   :  { %7615 = vmatprep.subr.bf16.mxu0 %v8130_v44  ;;  %7643 = vmatprep.subr.bf16.mxu1 %v8131_v43  ;;  %v4759_v44 = vmax.f32 %v4728_v49, 0.0  ;;  %v5078_v43 = vpack.c.bf16 %v4773_v3, %v4757_v61 }
 0xcc3   :  { %v5091_v11 = vpack.c.bf16 %v4802_v48, %v4786_v42 }
 0xcc4   :  { %v5080_v9 = vpack.c.bf16 %v4775_v45, %v4759_v44 }
 0xcc5   :  { %7616 = vmatpush3.bf16.msra.mxu0 %v8132_v31  ;;  %7644 = vmatpush3.bf16.msra.mxu1 %v8133_v59  ;;  %v10023_v31 = vpop.f32.mrf.mxu0  ;;  %v8149_v59 = vld [vmem:[%s10161_s9 + $0x7a0] sm:$0xff]  }
 0xcc6   :  { %7657 = vmatprep.subr.bf16.mxu0 %v8134_v27  ;;  %7685 = vmatprep.subr.bf16.mxu1 %v8135_v55  ;;  %v8150_v27 = vld [vmem:[%s10161_s9 + $0x758] sm:$0xff]   ;;  %v4737_v55 = vpop.f32.mrf.mxu1 }
 0xcc7   :  { %v4684_v41 = vpop.f32.mrf.mxu0  ;;  %v4738_v63 = vadd.f32 %v4737_v55, %v9978_v2 }
 0xcc8   :  { %6102 = vmatmul.mubr.bf16.vlgmr.msra.gmra.mxu0 %v5073_v6  ;;  %6151 = vmatmul.mubr.bf16.vlgmr.msra.gmra.mxu1 %v5075_v52  ;;  %v4739_v23 = vpop.f32.mrf.mxu1  ;;  %v8156_v6 = vld [vmem:[%s10161_s9 + $0x710] sm:$0xff]   ;;  %v4125_v52 = vrot.slane %v9822_v26, %v10229_v14  ;;  %v8162_v14 = vld [vmem:[%s10161_s9 + $0x740] sm:$0xff]   ;;  %v4685_v16 = vadd.f32 %v4684_v41, %v9973_v39 }
 0xcc9   :  { %6109 = vmatprep.mubr.bf16.mxu0 %v5090_v20  ;;  %6158 = vmatprep.mubr.bf16.mxu1 %v5092_v34  ;;  %v4686_v37 = vpop.f32.mrf.mxu0  ;;  %v4133_v20 = vrot.slane %v9822_v26, %v10230_v54  ;;  %v8163_v34 = vld [vmem:[%s10161_s9 + $0x7c0] sm:$0xff]  }
 0xcca   :  { %7658 = vmatpush3.bf16.msra.mxu0 %v8136_v24  ;;  %7686 = vmatpush3.bf16.msra.mxu1 %v8137_v13  ;;  %v8159_v24 = vld [vmem:[%s10161_s9 + $0x7c8] sm:$0xff]   ;;  %v4741_v58 = vpop.f32.mrf.mxu1  ;;  %v4789_v3 = vmax.f32 %v4685_v16, 0.0  ;;  %v4687_v4 = vadd.f32 %v4686_v37, %v4125_v52  ;;  %v4683_v42 = vadd.f32 %v10023_v31, %v4125_v52 }
 0xccb   :  { %7659 = vmatprep.subr.bf16.mxu0 %v8138_v12  ;;  %7687 = vmatprep.subr.bf16.mxu1 %v8139_v40  ;;  %v4688_v50 = vpop.f32.mrf.mxu0  ;;  %v8160_v13 = vld [vmem:[%s10161_s9 + $0x708] sm:$0xff]   ;;  %v4677_v12 = vadd.f32 %v9950_v60, %v4125_v52  ;;  %v4730_v54 = vadd.f32 %v9955_v18, %v4133_v20  ;;  %v4673_v60 = vadd.f32 %v9913_v1, %v4125_v52  ;;  %v8164_v18 = vld [vmem:[%s10161_s9 + $0x700] sm:$0xff]  }
 0xccc   :  { %v4689_v26 = vadd.f32 %v4688_v50, %v9973_v39  ;;  %v4742_v25 = vadd.f32 %v4741_v58, %v9978_v2  ;;  %v4726_v40 = vadd.f32 %v9915_v7, %v4133_v20  ;;  %v8165_v1 = vld [vmem:[%s10161_s9 + $0x780] sm:$0xff]   ;;  %v4740_v2 = vadd.f32 %v4739_v23, %v4133_v20 }
 0xccd   :  { %v4772_v35 = vmax.f32 %v4677_v12, 0.0  ;;  %v4774_v49 = vmax.f32 %v4730_v54, 0.0  ;;  %v4756_v7 = vmax.f32 %v4673_v60, 0.0  ;;  %v4804_v44 = vmax.f32 %v4687_v4, 0.0 }
 0xcce   :  { %7660 = vmatpush3.bf16.msra.mxu0 %v8140_v10  ;;  %7688 = vmatpush3.bf16.msra.mxu1 %v8141_v21  ;;  %v4805_v10 = vmax.f32 %v4689_v26, 0.0  ;;  %v4807_v48 = vmax.f32 %v4742_v25, 0.0  ;;  %v4758_v39 = vmax.f32 %v4726_v40, 0.0 }
 0xccf   :  { %7661 = vmatprep.subr.bf16.mxu0 %v8142_v36  ;;  %7689 = vmatprep.subr.bf16.mxu1 %v8143_v51  ;;  %v5077_v21 = vpack.c.bf16 %v4772_v35, %v4756_v7  ;;  %v4791_v36 = vmax.f32 %v4738_v63, 0.0  ;;  %v7041_v7 = vld [vmem:[%s10165_s15 + $0x1] ss:$0 sm:$0xff] }
 0xcd0   :  { %6110 = vmatmul.mubr.bf16.gmra.mxu0 %v5089_v15  ;;  %6159 = vmatmul.mubr.bf16.gmra.mxu1 %v5091_v11  ;;  %v5079_v45 = vpack.c.bf16 %v4774_v49, %v4758_v39  ;;  %v5094_v51 = vpack.c.bf16 %v4805_v10, %v4789_v3  ;;  %v4736_v15 = vadd.f32 %v10025_v29, %v4133_v20  ;;  %v4788_v11 = vmax.f32 %v4683_v42, 0.0 }
 0xcd1   :  { %6199 = vmatprep.mubr.bf16.mxu0 %v5078_v43  ;;  %6248 = vmatprep.mubr.bf16.mxu1 %v5080_v9  ;;  %v5096_v61 = vpack.c.bf16 %v4807_v48, %v4791_v36 }
 0xcd2   :  { %7662 = vmatpush3.bf16.msra.mxu0 %v8144_v38  ;;  %7690 = vmatpush3.bf16.msra.mxu1 %v8145_v47  ;;  %v4806_v38 = vmax.f32 %v4740_v2, 0.0  ;;  %v4790_v43 = vmax.f32 %v4736_v15, 0.0  ;;  %v5093_v47 = vpack.c.bf16 %v4804_v44, %v4788_v11 }
 0xcd3   :  { %7663 = vmatprep.subr.bf16.mxu0 %v8146_v53  ;;  %7691 = vmatprep.subr.bf16.mxu1 %v8147_v17 }
 0xcd4   :  { %v5095_v53 = vpack.c.bf16 %v4806_v38, %v4790_v43 }
 0xcd6   :  { %7664 = vmatpush3.bf16.msra.mxu0 %v8148_v32  ;;  %7692 = vmatpush3.bf16.msra.mxu1 %v8149_v59 }
 0xcd7   :  { %7665 = vmatprep.subr.bf16.mxu0 %v8150_v27  ;;  %7693 = vmatprep.subr.bf16.mxu1 %v8151_v8 }
 0xcda   :  { %7666 = vmatpush3.bf16.msra.mxu0 %v8152_v46  ;;  %7694 = vmatpush3.bf16.msra.mxu1 %v8153_v62 }
 0xcdb   :  { %7667 = vmatprep.subr.bf16.mxu0 %v8154_v22  ;;  %7695 = vmatprep.subr.bf16.mxu1 %v8155_v19 }
 0xcde   :  { %7668 = vmatpush3.bf16.msra.mxu0 %v8156_v6  ;;  %7696 = vmatpush3.bf16.msra.mxu1 %v8157_v28 }
 0xcdf   :  { %7669 = vmatprep.subr.bf16.mxu0 %v8158_v30  ;;  %7697 = vmatprep.subr.bf16.mxu1 %v8159_v24 }
 0xce2   :  { %7670 = vmatpush3.bf16.msra.mxu0 %v8160_v13  ;;  %7698 = vmatpush3.bf16.msra.mxu1 %v8161_v0 }
 0xce3   :  { %7671 = vmatprep.subr.bf16.mxu0 %v8162_v14  ;;  %7699 = vmatprep.subr.bf16.mxu1 %v8163_v34 }
 0xce6   :  { %7672 = vmatpush3.bf16.msra.mxu0 %v8164_v18  ;;  %7700 = vmatpush3.bf16.msra.mxu1 %v8165_v1 }
 0xce9   :  { %6200 = vmatmul.mubr.bf16.vlgmr.msra.gmra.mxu0 %v5077_v21  ;;  %6249 = vmatmul.mubr.bf16.vlgmr.msra.gmra.mxu1 %v5079_v45 }
 0xcea   :  { %6207 = vmatprep.mubr.bf16.mxu0 %v5094_v51  ;;  %6256 = vmatprep.mubr.bf16.mxu1 %v5096_v61 }
 0xcf1   :  { %6208 = vmatmul.mubr.bf16.gmra.mxu0 %v5093_v47  ;;  %6257 = vmatmul.mubr.bf16.gmra.mxu1 %v5095_v53 }
 0xd47   :  { %v7505_v9 = vpop.f32.mrf.mxu0  ;;  %v7533_v17 = vpop.f32.mrf.mxu1 }
 0xd49   :  { %v7506_v32 = vpop.f32.mrf.mxu0  ;;  %v7534_v59 = vpop.f32.mrf.mxu1 }
 0xd4a   :  { %v7507_v49 = vadd.f32 %v7506_v32, %v7505_v9  ;;  %v7535_v36 = vadd.f32 %v7534_v59, %v7533_v17 }
 0xd4b   :  { %v7508_v31 = vpop.f32.mrf.mxu0  ;;  %v7536_v27 = vpop.f32.mrf.mxu1 }
 0xd4c   :  { %v5908_v39 = vadd.f32 %v7507_v49, %v7041_v7 }
 0xd4d   :  { %v7509_v8 = vpop.f32.mrf.mxu0  ;;  %v7537_v41 = vpop.f32.mrf.mxu1 }
 0xd4e   :  { %v7510_v3 = vadd.f32 %v7509_v8, %v7508_v31  ;;  %v5957_v51 = vadd.f32 %v7535_v36, %v5908_v39  ;;  %v7538_v15 = vadd.f32 %v7537_v41, %v7536_v27 }
 0xd4f   :  { %v7511_v29 = vpop.f32.mrf.mxu0  ;;  %v7539_v55 = vpop.f32.mrf.mxu1 }
 0xd50   :  { %v5911_v42 = vadd.f32 %v7510_v3, %v7041_v7 }
 0xd51   :  { %v7512_v46 = vpop.f32.mrf.mxu0  ;;  %v7540_v62 = vpop.f32.mrf.mxu1 }
 0xd52   :  { %v7513_v45 = vadd.f32 %v7512_v46, %v7511_v29  ;;  %v5960_v47 = vadd.f32 %v7538_v15, %v5911_v42  ;;  %v7541_v49 = vadd.f32 %v7540_v62, %v7539_v55 }
 0xd53   :  { %v7514_v22 = vpop.f32.mrf.mxu0  ;;  %v10095_v19 = vpop.f32.mrf.mxu1 }
 0xd54   :  { %v5916_v11 = vadd.f32 %v7513_v45, %v7041_v7 }
 0xd55   :  { %v7515_v37 = vpop.f32.mrf.mxu0  ;;  %v7543_v23 = vpop.f32.mrf.mxu1 }
 0xd56   :  { %v7516_v53 = vadd.f32 %v7515_v37, %v7514_v22  ;;  %v5965_v59 = vadd.f32 %v7541_v49, %v5916_v11 }
 0xd58   :  { %v5919_v46 = vadd.f32 %v7516_v53, %v7041_v7 }
 0xd67   :  { %v7561_v6 = vpop.f32.mrf.mxu0  ;;  %v7589_v28 = vpop.f32.mrf.mxu1 }
 0xd69   :  { %v7562_v30 = vpop.f32.mrf.mxu0  ;;  %v7590_v24 = vpop.f32.mrf.mxu1 }
 0xd6a   :  { %v7563_v4 = vadd.f32 %v7562_v30, %v7561_v6  ;;  %v7591_v9 = vadd.f32 %v7590_v24, %v7589_v28 }
 0xd6b   :  { %v7564_v52 = vpop.f32.mrf.mxu0  ;;  %v7592_v50 = vpop.f32.mrf.mxu1 }
 0xd6c   :  { %v6006_v44 = vadd.f32 %v7563_v4, %v5957_v51 }
 0xd6d   :  { %v7565_v20 = vpop.f32.mrf.mxu0  ;;  %v7593_v58 = vpop.f32.mrf.mxu1 }
 0xd6e   :  { %v7566_v38 = vadd.f32 %v7565_v20, %v7564_v52  ;;  %v6055_v8 = vadd.f32 %v7591_v9, %v6006_v44  ;;  %v7594_v6 = vadd.f32 %v7593_v58, %v7592_v50  ;;  %v7544_v20 = vadd.f32 %v7543_v23, %v10095_v19 }
 0xd6f   :  { %v7567_v13 = vpop.f32.mrf.mxu0  ;;  %v7595_v12 = vpop.f32.mrf.mxu1 }
 0xd70   :  { %v6009_v17 = vadd.f32 %v7566_v38, %v5960_v47 }
 0xd71   :  { %v7568_v0 = vpop.f32.mrf.mxu0  ;;  %v7596_v14 = vpop.f32.mrf.mxu1 }
 0xd72   :  { %v7569_v31 = vadd.f32 %v7568_v0, %v7567_v13  ;;  %v6058_v3 = vadd.f32 %v7594_v6, %v6009_v17  ;;  %v7597_v24 = vadd.f32 %v7596_v14, %v7595_v12  ;;  %v5968_v13 = vadd.f32 %v7544_v20, %v5919_v46 }
 0xd73   :  { %v7570_v54 = vpop.f32.mrf.mxu0  ;;  %v10097_v26 = vpop.f32.mrf.mxu1 }
 0xd74   :  { %v6014_v41 = vadd.f32 %v7569_v31, %v5965_v59 }
 0xd75   :  { %v7571_v34 = vpop.f32.mrf.mxu0  ;;  %v10099_v60 = vpop.f32.mrf.mxu1 }
 0xd76   :  { %v7572_v22 = vadd.f32 %v7571_v34, %v7570_v54  ;;  %v6063_v50 = vadd.f32 %v7597_v24, %v6014_v41  ;;  %v7600_v19 = vadd.f32 %v10099_v60, %v10097_v26 }
 0xd88   :  { %v7617_v25 = vpop.f32.mrf.mxu0  ;;  %v7645_v40 = vpop.f32.mrf.mxu1 }
 0xd8a   :  { %v7618_v16 = vpop.f32.mrf.mxu0  ;;  %v7646_v18 = vpop.f32.mrf.mxu1 }
 0xd8b   :  { %v7619_v32 = vadd.f32 %v7618_v16, %v7617_v25  ;;  %v7647_v37 = vadd.f32 %v7646_v18, %v7645_v40 }
 0xd8c   :  { %v7620_v35 = vpop.f32.mrf.mxu0  ;;  %v7648_v63 = vpop.f32.mrf.mxu1 }
 0xd8d   :  { %v6104_v30 = vadd.f32 %v7619_v32, %v6055_v8 }
 0xd8e   :  { %v7621_v1 = vpop.f32.mrf.mxu0  ;;  %v7649_v10 = vpop.f32.mrf.mxu1 }
 0xd8f   :  { %v7622_v39 = vadd.f32 %v7621_v1, %v7620_v35  ;;  %v6153_v0 = vadd.f32 %v7647_v37, %v6104_v30  ;;  %v6017_v35 = vadd.f32 %v7572_v22, %v5968_v13  ;;  %v7650_v1 = vadd.f32 %v7649_v10, %v7648_v63 }
 0xd90   :  { %v7623_v48 = vpop.f32.mrf.mxu0  ;;  %v7651_v21 = vpop.f32.mrf.mxu1 }
 0xd91   :  { %v6107_v25 = vadd.f32 %v7622_v39, %v6058_v3  ;;  %v6066_v51 = vadd.f32 %v7600_v19, %v6017_v35 }
 0xd92   :  { %v7624_v2 = vpop.f32.mrf.mxu0  ;;  %v7652_v61 = vpop.f32.mrf.mxu1 }
 0xd93   :  { %v7625_v55 = vadd.f32 %v7624_v2, %v7623_v48  ;;  %v6156_v12 = vadd.f32 %v7650_v1, %v6107_v25  ;;  %v7653_v48 = vadd.f32 %v7652_v61, %v7651_v21 }
 0xd94   :  { %v7626_v43 = vpop.f32.mrf.mxu0  ;;  %v7654_v57 = vpop.f32.mrf.mxu1 }
 0xd95   :  { %v6112_v23 = vadd.f32 %v7625_v55, %v6063_v50 }
 0xd96   :  { %v7627_v29 = vpop.f32.mrf.mxu0  ;;  %v7655_v27 = vpop.f32.mrf.mxu1 }
 0xd97   :  { %v7628_v14 = vadd.f32 %v7627_v29, %v7626_v43  ;;  %v6161_v10 = vadd.f32 %v7653_v48, %v6112_v23  ;;  %v7656_v9 = vadd.f32 %v7655_v27, %v7654_v57  ;;  %v10231_v27 = vld [vmem:[#allocation2_spill] sm:$0xff] }
 0xd99   :  { %v6115_v11 = vadd.f32 %v7628_v14, %v6066_v51 }
 0xd9b   :  { %v6164_v8 = vadd.f32 %v7656_v9, %v6115_v11 }
 0xda9   :  { %v7673_v52 = vpop.f32.mrf.mxu0  ;;  %v7701_v28 = vpop.f32.mrf.mxu1 }
 0xdab   :  { %v7674_v62 = vpop.f32.mrf.mxu0  ;;  %v7702_v7 = vpop.f32.mrf.mxu1 }
 0xdac   :  { %v7675_v16 = vadd.f32 %v7674_v62, %v7673_v52  ;;  %v7703_v4 = vadd.f32 %v7702_v7, %v7701_v28 }
 0xdad   :  { %v7676_v58 = vpop.f32.mrf.mxu0  ;;  %v7704_v45 = vpop.f32.mrf.mxu1 }
 0xdae   :  { %v6202_v36 = vadd.f32 %v7675_v16, %v6153_v0 }
 0xdaf   :  { %v7677_v54 = vpop.f32.mrf.mxu0  ;;  %v7705_v18 = vpop.f32.mrf.mxu1 }
 0xdb0   :  { %v6251_v34 = vadd.f32 %v7703_v4, %v6202_v36  ;;  %v7678_v40 = vadd.f32 %v7677_v54, %v7676_v58  ;;  %v7706_v15 = vadd.f32 %v7705_v18, %v7704_v45  ;;  %v8166_v4 = vld [vmem:[%s10168_s20 + $0x8] sm:$0xff]   ;;  %v8167_v45 = vld [vmem:[%s10168_s20] sm:$0xff]  }
 0xdb1   :  { %v7679_v2 = vpop.f32.mrf.mxu0  ;;  %v7707_v44 = vpop.f32.mrf.mxu1  ;;  %7881 = vmatprep.subr.bf16.mxu0 %v8166_v4 }
 0xdb2   :  { %v6205_v42 = vadd.f32 %v7678_v40, %v6156_v12  ;;  %v6265_v63 = vadd.f32 %v6251_v34, %v9437_v33  ;;  %7882 = vmatpush3.bf16.msra.mxu0 %v8166_v4 }
 0xdb3   :  { %v7680_v38 = vpop.f32.mrf.mxu0  ;;  %v7708_v60 = vpop.f32.mrf.mxu1  ;;  %7883 = vmatprep.subr.bf16.mxu0 %v8167_v45 }
 0xdb4   :  { %v6254_v47 = vadd.f32 %v7706_v15, %v6205_v42  ;;  %v7681_v26 = vadd.f32 %v7680_v38, %v7679_v2  ;;  %v6273_v53 = vsel %vm202_vm1, %v6265_v63, 0.0  ;;  %v7709_v21 = vadd.f32 %v7708_v60, %v7707_v44 }
 0xdb5   :  { %v7682_v43 = vpop.f32.mrf.mxu0  ;;  %6274 = vadd.xlane.f32.xlu0 %v6273_v53  ;;  %v7710_v61 = vpop.f32.mrf.mxu1 }
 0xdb6   :  { %v6210_v32 = vadd.f32 %v7681_v26, %v6161_v10  ;;  %v6266_v49 = vadd.f32 %v6254_v47, %v9439_v5  ;;  %7884 = vmatpush3.bf16.msra.mxu0 %v8167_v45  ;;  %v7173_v47 = vld [vmem:[%s10167_s19 + $0x1] ss:$0 sm:$0xff] }
 0xdb7   :  { %v7683_v31 = vpop.f32.mrf.mxu0  ;;  %v7711_v59 = vpop.f32.mrf.mxu1 }
 0xdb8   :  { %v6259_v17 = vadd.f32 %v7709_v21, %v6210_v32  ;;  %v7684_v33 = vadd.f32 %v7683_v31, %v7682_v43  ;;  %v6276_v29 = vsel %vm202_vm1, %v6266_v49, 0.0  ;;  %v7712_v6 = vadd.f32 %v7711_v59, %v7710_v61  ;;  %v7174_v59 = vld [vmem:[%s10169_s21] ss:$0 sm:$0xff] }
 0xdb9   :  { %6277 = vadd.xlane.f32.xlu1 %v6276_v29 }
 0xdba   :  { %v6213_v46 = vadd.f32 %v7684_v33, %v6164_v8  ;;  %v6267_v30 = vadd.f32 %v6259_v17, %v9476_v56 }
 0xdbc   :  { %v6262_v39 = vadd.f32 %v7712_v6, %v6213_v46  ;;  %v6279_v57 = vsel %vm202_vm1, %v6267_v30, 0.0 }
 0xdbd   :  { %6280 = vadd.xlane.f32.xlu0 %v6279_v57 }
 0xdbe   :  { %v6268_v41 = vadd.f32 %v6262_v39, %v10231_v27 }
 0xdc0   :  { %v6282_v5 = vsel %vm202_vm1, %v6268_v41, 0.0 }
 0xdc1   :  { %6283 = vadd.xlane.f32.xlu1 %v6282_v5 }
 0xe3e   :  { %v6275_v52 = vpop.xlane.xlu0 %6274 }
 0xe3f   :  { %v6285_v20 = vmul.f32 0.03125, %v6275_v52 }
 0xe41   :  { %v6289_v3 = vsub.f32 %v6265_v63, %v6285_v20  ;;  %v7172_v63 = vld [vmem:[%s10166_s18 + $0x1] ss:$0 sm:$0xff] }
 0xe42   :  { %v6278_v22 = vpop.xlane.xlu1 %6277 }
 0xe43   :  { %v6286_v37 = vmul.f32 0.03125, %v6278_v22  ;;  %v6293_v28 = vmul.f32 %v6289_v3, %v6289_v3 }
 0xe45   :  { %v6290_v24 = vsub.f32 %v6266_v49, %v6286_v37  ;;  %v6297_v55 = vsel %vm202_vm1, %v6293_v28, 0.0 }
 0xe46   :  { %6298 = vadd.xlane.f32.xlu0 %v6297_v55  ;;  %v6281_v56 = vpop.xlane.xlu0 %6280 }
 0xe47   :  { %v6287_v62 = vmul.f32 0.03125, %v6281_v56  ;;  %v6294_v13 = vmul.f32 %v6290_v24, %v6290_v24 }
 0xe49   :  { %v6291_v0 = vsub.f32 %v6267_v30, %v6287_v62  ;;  %v6300_v25 = vsel %vm202_vm1, %v6294_v13, 0.0 }
 0xe4a   :  { %6301 = vadd.xlane.f32.xlu1 %v6300_v25  ;;  %v6284_v16 = vpop.xlane.xlu1 %6283 }
 0xe4b   :  { %v6288_v7 = vmul.f32 0.03125, %v6284_v16  ;;  %v6295_v50 = vmul.f32 %v6291_v0, %v6291_v0 }
 0xe4d   :  { %v6292_v58 = vsub.f32 %v6268_v41, %v6288_v7  ;;  %v6303_v35 = vsel %vm202_vm1, %v6295_v50, 0.0 }
 0xe4e   :  { %6304 = vadd.xlane.f32.xlu0 %v6303_v35 }
 0xe4f   :  { %v6296_v1 = vmul.f32 %v6292_v58, %v6292_v58 }
 0xe51   :  { %v6306_v36 = vsel %vm202_vm1, %v6296_v1, 0.0 }
 0xe52   :  { %6307 = vadd.xlane.f32.xlu1 %v6306_v36 }
 0xecf   :  { %v6299_v19 = vpop.xlane.xlu0 %6298 }
 0xed0   :  { %v6309_v23 = vmul.f32 0.03125, %v6299_v19 }
 0xed2   :  { %v6313_v54 = vadd.f32 1e-05, %v6309_v23 }
 0xed3   :  { %v6302_v12 = vpop.xlane.xlu1 %6301 }
 0xed4   :  { %8240 = vrsqrt.f32 %v6313_v54  ;;  %v6310_v14 = vmul.f32 0.03125, %v6302_v12 }
 0xed6   :  { %v6314_v34 = vadd.f32 1e-05, %v6310_v14 }
 0xed7   :  { %v6305_v40 = vpop.xlane.xlu0 %6304 }
 0xed8   :  { %8242 = vrsqrt.f32 %v6314_v34  ;;  %v6311_v18 = vmul.f32 0.03125, %v6305_v40 }
 0xeda   :  { %v6315_v48 = vadd.f32 1e-05, %v6311_v18 }
 0xedb   :  { %v6308_v2 = vpop.xlane.xlu1 %6307 }
 0xedc   :  { %8244 = vrsqrt.f32 %v6315_v48  ;;  %v6312_v51 = vmul.f32 0.03125, %v6308_v2 }
 0xede   :  { %v6316_v42 = vadd.f32 1e-05, %v6312_v51 }
 0xee0   :  { %8246 = vrsqrt.f32 %v6316_v42 }
 0xee1   :  { %v8241_v15 = vpop.eup %8240 }
 0xee2   :  { %v6321_v44 = vmul.f32 %v8241_v15, %v6289_v3 }
 0xee4   :  { %v6331_v11 = vmul.f32 %v7172_v63, %v6321_v44 }
 0xee5   :  { %v8243_v10 = vpop.eup %8242 }
 0xee6   :  { %v6322_v38 = vmul.f32 %v8243_v10, %v6290_v24  ;;  %v6341_v43 = vadd.f32 %v7173_v47, %v6331_v11 }
 0xee8   :  { %v6332_v26 = vmul.f32 %v7172_v63, %v6322_v38 }
 0xee9   :  { %v8245_v60 = vpop.eup %8244 }
 0xeea   :  { %v6323_v53 = vmul.f32 %v8245_v60, %v6291_v0  ;;  %v6342_v9 = vadd.f32 %v7173_v47, %v6332_v26 }
 0xeec   :  { %v6349_v32 = vpack.c.bf16 %v6342_v9, %v6341_v43  ;;  %v6333_v49 = vmul.f32 %v7172_v63, %v6323_v53 }
 0xeed   :  { %v8247_v21 = vpop.eup %8246 }
 0xeee   :  { %v6324_v61 = vmul.f32 %v8247_v21, %v6292_v58  ;;  %7885 = vmatprep.mubr.msk.bf16.mxu0 %vm202_vm1, %v6349_v32  ;;  %v6343_v8 = vadd.f32 %v7173_v47, %v6333_v49 }
 0xef0   :  { %v6334_v31 = vmul.f32 %v7172_v63, %v6324_v61 }
 0xef2   :  { %v6344_v17 = vadd.f32 %v7173_v47, %v6334_v31 }
 0xef4   :  { %v6350_v33 = vpack.c.bf16 %v6344_v17, %v6343_v8 }
 0xef6   :  { %7886 = vmatmul.mubr.msk.bf16.vlgmr.msra.gmra.mxu0 %vm202_vm1, %v6350_v33 }
 0xfb6   :  { %v7887_v29 = vpop.f32.mrf.mxu0 }
 0xfb7   :  { %v6419_v46 = vadd.f32 %v7887_v29, %v7174_v59 }
 0xfb8   :  { %v6410_v6 = vpop.f32.mrf.mxu0 }
 0xfb9   :  { %6428 = vst.msk [vmem:[%s10170_s22 + $0x10] sm:$0xff] %vm6425_vm2, %v6419_v46  ;;  %v6411_v30 = vadd.f32 %v7174_v59, %v6410_v6 }
 0xfba   :  { %v7888_v39 = vpop.f32.mrf.mxu0 }
 0xfbb   :  { %6426 = vst.msk [vmem:[%s10170_s22] sm:$0xff] %vm6425_vm2, %v6411_v30  ;;  %v6422_v57 = vadd.f32 %v7888_v39, %v7174_v59 }
 0xfbc   :  { %v6413_v27 = vpop.f32.mrf.mxu0 }
 0xfbd   :  { %6429 = vst.msk [vmem:[%s10170_s22 + $0x18] sm:$0xff] %vm6425_vm2, %v6422_v57  ;;  %v6414_v41 = vadd.f32 %v7174_v59, %v6413_v27 }
 0xfbf   :  { %6427 = vst.msk [vmem:[%s10170_s22 + $0x8] sm:$0xff] %vm6425_vm2, %v6414_v41 }

</bundles_post_ra>
